<compile_context>
chip_gen: v6e
topology: v6e:2x2x1
jax: 0.10.0
libtpu: 0.0.40
codegen_flags: <defaults>
</compile_context>

<pallas_src>
import functools

import jax
import jax.numpy as jnp
from jax import lax
from jax.experimental import pallas as pl
from jax.experimental.pallas import tpu as pltpu

EPS = 1e-5                    # norm_eps
MXU_DTYPE = jnp.bfloat16      # matmul-input dtype (accumulation is always f32)


# ----------------------------------------------------------------------------
# Generation-aware defaults + small feature probes (keep the script runnable
# on any TPU generation / jax build while still applying the perf features).
# ----------------------------------------------------------------------------
def _tpu_defaults():
    kind = ""
    try:
        kind = jax.devices()[0].device_kind.lower()
    except Exception:
        pass
    if "v5" in kind or "v6" in kind:
        # 128 MiB VMEM: large tiles, high scoped-vmem limit.
        return dict(vmem=100 * 1024 * 1024, q_tile=512, pix_tile=256, seq_tile=512)
    # v7x (64 MiB physical per TC) or unknown: conservative budget.
    return dict(vmem=44 * 1024 * 1024, q_tile=256, pix_tile=128, seq_tile=256)


def _pick_tile(n, cap):
    """Largest divisor of n that is <= cap and a multiple of 8 (else full n)."""
    if n <= cap:
        return n
    for d in range(cap, 7, -1):
        if n % d == 0 and d % 8 == 0:
            return d
    # TODO(synk): pad-to-multiple instead of full-dim fallback for prime-ish n.
    return n


_BUFFERED_OK = None


def _buffered_supported():
    """Probe whether pipeline_mode=pl.Buffered(1) lowers on this jax/TPU."""
    global _BUFFERED_OK
    if _BUFFERED_OK is None:
        try:
            def k(x_ref, o_ref):
                o_ref[...] = x_ref[...] + 1.0

            f = pl.pallas_call(
                k,
                out_shape=jax.ShapeDtypeStruct((8, 128), jnp.float32),
                grid=(2,),
                in_specs=[pl.BlockSpec((8, 128), lambda i: (0, 0),
                                       pipeline_mode=pl.Buffered(1))],
                out_specs=pl.BlockSpec((8, 128), lambda i: (0, 0)))
            x = jnp.ones((8, 128), jnp.float32)
            r = jax.block_until_ready(f(x))
            _BUFFERED_OK = bool(jnp.allclose(r, x + 1.0))
        except Exception:
            _BUFFERED_OK = False
    return _BUFFERED_OK


def _const_spec(shape, index_map):
    """BlockSpec for a grid-invariant operand (single-buffered when possible)."""
    if _buffered_supported():
        return pl.BlockSpec(shape, index_map, pipeline_mode=pl.Buffered(1))
    return pl.BlockSpec(shape, index_map)


def _swap01(x, mode):
    """(a, b, c) -> (b, a, c) swap inside a kernel."""
    if mode == "einshape":
        return pltpu.einshape("abc->bac", x)
    return jnp.swapaxes(x, 0, 1)


_SWAP_MODE = {}


def _swap_mode_for(shape):
    """Pick an in-kernel major<->sublane swap lowering that works for `shape`."""
    shape = tuple(int(s) for s in shape)
    if shape in _SWAP_MODE:
        return _SWAP_MODE[shape]
    a, b, c = shape
    x = jnp.arange(a * b * c, dtype=jnp.float32).reshape(a, b, c)
    want = jnp.swapaxes(x, 0, 1)
    found = None
    for mode in ("einshape", "transpose"):
        if mode == "einshape" and not hasattr(pltpu, "einshape"):
            continue
        try:
            def k(x_ref, o_ref, mode=mode):
                o_ref[...] = _swap01(x_ref[...], mode)

            f = pl.pallas_call(
                k, out_shape=jax.ShapeDtypeStruct((b, a, c), jnp.float32))
            r = jax.block_until_ready(f(x))
            if bool(jnp.array_equal(r, want)):
                found = mode
                break
        except Exception:
            continue
    _SWAP_MODE[shape] = found
    return found


# ----------------------------------------------------------------------------
# Kernel 1: fused  LN(no affine) -> adaLN modulate -> spatial MHSA -> out proj
#           -> gate -> residual.
# K / V (full frame) are projected once per (b, t) and cached in VMEM scratch;
# the q-tile axis is "arbitrary" and only re-does the cheap query-side work.
# ----------------------------------------------------------------------------
def _spatial_attn_kernel(x_ref, shift_ref, scale_ref, gate_ref,
                         wq_ref, wk_ref, wv_ref, wo_ref, bo_ref,
                         o_ref, k_sc, v_sc,
                         *, heads, head_dim, q_tile, scale_attn, eps):
    shift = shift_ref[...]      # (1, C)
    scale = scale_ref[...]      # (1, C)
    gate = gate_ref[...]        # (1, C)

    def ln_mod(v):
        mu = jnp.mean(v, axis=-1, keepdims=True)
        var = jnp.mean(jnp.square(v - mu), axis=-1, keepdims=True)
        return ((v - mu) * lax.rsqrt(var + eps)) * (1.0 + scale) + shift

    # K / V projection of the whole frame: once per (b, t), cached across q.
    @pl.when(pl.program_id(2) == 0)
    def _():
        kvn = ln_mod(x_ref[...]).astype(MXU_DTYPE)                 # (S, C)
        k_sc[...] = jnp.dot(kvn, wk_ref[...].astype(MXU_DTYPE),
                            preferred_element_type=jnp.float32).astype(k_sc.dtype)
        v_sc[...] = jnp.dot(kvn, wv_ref[...].astype(MXU_DTYPE),
                            preferred_element_type=jnp.float32).astype(v_sc.dtype)

    # Query / residual rows are a slice of the resident (S, C) block.
    start = pl.multiple_of(pl.program_id(2) * q_tile, q_tile)
    xq = x_ref[pl.ds(start, q_tile), :]                            # (QT, C)
    qn = ln_mod(xq).astype(MXU_DTYPE)
    q = jnp.dot(qn, wq_ref[...].astype(MXU_DTYPE),
                preferred_element_type=jnp.float32)                # (QT, Di) f32

    outs = []
    for h in range(heads):                                         # static unroll
        lo = h * head_dim
        qh = (q[:, lo:lo + head_dim] * scale_attn).astype(MXU_DTYPE)
        kh = k_sc[:, lo:lo + head_dim]                             # (S, hd) bf16
        vh = v_sc[:, lo:lo + head_dim]
        s = lax.dot_general(qh, kh, (((1,), (1,)), ((), ())),
                            preferred_element_type=jnp.float32)    # (QT, S)
        s = s - jnp.max(s, axis=-1, keepdims=True)
        p = jnp.exp(s)
        p = p * pl.reciprocal(jnp.sum(p, axis=-1, keepdims=True), approx=True)
        outs.append(jnp.dot(p.astype(MXU_DTYPE), vh,
                            preferred_element_type=jnp.float32))   # (QT, hd)
    attn = jnp.concatenate(outs, axis=-1) if heads > 1 else outs[0]   # (QT, Di)
    attn = jnp.dot(attn.astype(MXU_DTYPE), wo_ref[...].astype(MXU_DTYPE),
                   preferred_element_type=jnp.float32) + bo_ref[...]
    o_ref[...] = (xq + gate * attn).astype(o_ref.dtype)


def spatial_attention(h4, shift, scale, gate, wq, wk, wv, wo, bo,
                      heads, head_dim, *, q_tile, vmem_limit, eps=EPS):
    B, T, S, C = h4.shape
    Di = heads * head_dim
    QT = _pick_tile(S, q_tile)
    nQ = S // QT
    shift3 = shift.reshape(B, 1, C)
    scale3 = scale.reshape(B, 1, C)
    gate3 = gate.reshape(B, 1, C)

    kernel = functools.partial(_spatial_attn_kernel, heads=heads,
                               head_dim=head_dim, q_tile=QT,
                               scale_attn=1.0 / float(head_dim) ** 0.5, eps=eps)
    cond_spec = pl.BlockSpec((None, 1, C), lambda b, t, q: (b, 0, 0))

    # TODO(synk): for v7x at S >= 2048 switch to a kv-tile grid axis with
    #             online (flash) softmax instead of holding the full frame.
    return pl.pallas_call(
        kernel,
        out_shape=jax.ShapeDtypeStruct((B, T, S, C), h4.dtype),
        grid=(B, T, nQ),
        in_specs=[
            pl.BlockSpec((None, None, S, C), lambda b, t, q: (b, t, 0, 0)),
            cond_spec, cond_spec, cond_spec,
            _const_spec((C, Di), lambda b, t, q: (0, 0)),
            _const_spec((C, Di), lambda b, t, q: (0, 0)),
            _const_spec((C, Di), lambda b, t, q: (0, 0)),
            _const_spec((Di, C), lambda b, t, q: (0, 0)),
            _const_spec((1, C), lambda b, t, q: (0, 0)),
        ],
        out_specs=pl.BlockSpec((None, None, QT, C), lambda b, t, q: (b, t, q, 0)),
        scratch_shapes=[pltpu.VMEM((S, Di), MXU_DTYPE),
                        pltpu.VMEM((S, Di), MXU_DTYPE)],
        compiler_params=pltpu.CompilerParams(
            dimension_semantics=("parallel", "parallel", "arbitrary"),
            vmem_limit_bytes=vmem_limit),
    )(h4, shift3, scale3, gate3, wq, wk, wv, wo, bo)


# ----------------------------------------------------------------------------
# Kernel 2: fused  LN -> adaLN modulate -> temporal MHSA (per-pixel, batched
#           over a pixel tile) -> out proj -> gate -> residual.
# Consumes / produces the natural (B, T, HW, C) layout; the (T, PT) <-> (PT, T)
# swap is done in VMEM (no HBM transposes).
# ----------------------------------------------------------------------------
def _temporal_attn_kernel(x_ref, shift_ref, scale_ref, gate_ref,
                          wq_ref, wk_ref, wv_ref, wo_ref, bo_ref,
                          o_ref, *, heads, head_dim, scale_attn, eps, swap_mode):
    x = x_ref[...]              # swap_mode: (T, PT, C) time-major; else (PT, T, C)
    shift = shift_ref[...]
    scale = scale_ref[...]
    gate = gate_ref[...]

    xp = _swap01(x, swap_mode) if swap_mode is not None else x     # (PT, T, C)
    PT, T, C = xp.shape

    x2 = xp.reshape(PT * T, C)
    mu = jnp.mean(x2, axis=-1, keepdims=True)
    var = jnp.mean(jnp.square(x2 - mu), axis=-1, keepdims=True)
    xn = (((x2 - mu) * lax.rsqrt(var + eps)) * (1.0 + scale) + shift).astype(MXU_DTYPE)

    q = jnp.dot(xn, wq_ref[...].astype(MXU_DTYPE), preferred_element_type=jnp.float32)
    k = jnp.dot(xn, wk_ref[...].astype(MXU_DTYPE), preferred_element_type=jnp.float32)
    v = jnp.dot(xn, wv_ref[...].astype(MXU_DTYPE), preferred_element_type=jnp.float32)

    outs = []
    for h in range(heads):                                         # static unroll
        lo = h * head_dim
        qh = (q[:, lo:lo + head_dim] * scale_attn).astype(MXU_DTYPE).reshape(PT, T, head_dim)
        kh = k[:, lo:lo + head_dim].astype(MXU_DTYPE).reshape(PT, T, head_dim)
        vh = v[:, lo:lo + head_dim].astype(MXU_DTYPE).reshape(PT, T, head_dim)
        s = jnp.einsum("ptd,psd->pts", qh, kh,
                       preferred_element_type=jnp.float32)
        s = s - jnp.max(s, axis=-1, keepdims=True)
        p = jnp.exp(s)
        p = p * pl.reciprocal(jnp.sum(p, axis=-1, keepdims=True), approx=True)
        oh = jnp.einsum("pts,psd->ptd", p.astype(MXU_DTYPE), vh,
                        preferred_element_type=jnp.float32)
        outs.append(oh.reshape(PT * T, head_dim))
    attn = jnp.concatenate(outs, axis=-1) if heads > 1 else outs[0]  # (PT*T, Di)
    attn = jnp.dot(attn.astype(MXU_DTYPE), wo_ref[...].astype(MXU_DTYPE),
                   preferred_element_type=jnp.float32) + bo_ref[...]
    out = xp + gate * attn.reshape(PT, T, C)
    if swap_mode is not None:
        out = _swap01(out, swap_mode)                              # back to (T, PT, C)
    o_ref[...] = out.astype(o_ref.dtype)


def temporal_attention(h4, shift, scale, gate, wq, wk, wv, wo, bo,
                       heads, head_dim, *, pix_tile, vmem_limit, eps=EPS):
    B, T, S, C = h4.shape       # natural layout: S == H*W pixels, attention over T
    Di = heads * head_dim
    PT = _pick_tile(S, pix_tile)
    nP = S // PT
    shift3 = shift.reshape(B, 1, C)
    scale3 = scale.reshape(B, 1, C)
    gate3 = gate.reshape(B, 1, C)
    swap_mode = _swap_mode_for((T, PT, C))

    cond_spec = pl.BlockSpec((None, 1, C), lambda b, p: (b, 0, 0))
    wspecs = [
        _const_spec((C, Di), lambda b, p: (0, 0)),
        _const_spec((C, Di), lambda b, p: (0, 0)),
        _const_spec((C, Di), lambda b, p: (0, 0)),
        _const_spec((Di, C), lambda b, p: (0, 0)),
        _const_spec((1, C), lambda b, p: (0, 0)),
    ]
    kernel = functools.partial(_temporal_attn_kernel, heads=heads,
                               head_dim=head_dim,
                               scale_attn=1.0 / float(head_dim) ** 0.5,
                               eps=eps, swap_mode=swap_mode)
    cp = pltpu.CompilerParams(dimension_semantics=("parallel", "parallel"),
                              vmem_limit_bytes=vmem_limit)

    if swap_mode is not None:
        # Transpose-free path: read / write the (B, T, HW, C) layout directly.
        blk = pl.BlockSpec((None, T, PT, C), lambda b, p: (b, 0, p, 0))
        return pl.pallas_call(
            kernel,
            out_shape=jax.ShapeDtypeStruct((B, T, S, C), h4.dtype),
            grid=(B, nP),
            in_specs=[blk, cond_spec, cond_spec, cond_spec] + wspecs,
            out_specs=blk,
            input_output_aliases={0: 0},
            compiler_params=cp,
        )(h4, shift3, scale3, gate3, wq, wk, wv, wo, bo)

    # Fallback (only if neither einshape nor lax.transpose lowers): XLA transposes.
    xt = jnp.transpose(h4, (0, 2, 1, 3))                           # (B, HW, T, C)
    blk = pl.BlockSpec((None, PT, T, C), lambda b, p: (b, p, 0, 0))
    out = pl.pallas_call(
        kernel,
        out_shape=jax.ShapeDtypeStruct((B, S, T, C), h4.dtype),
        grid=(B, nP),
        in_specs=[blk, cond_spec, cond_spec, cond_spec] + wspecs,
        out_specs=blk,
        input_output_aliases={0: 0},
        compiler_params=cp,
    )(xt, shift3, scale3, gate3, wq, wk, wv, wo, bo)
    return jnp.transpose(out, (0, 2, 1, 3))


# ----------------------------------------------------------------------------
# Kernel 3: fused  LN(norm3 affine) -> adaLN-mlp modulate -> GEGLU FF -> gate
#           -> residual.   Token-tiled.
# ----------------------------------------------------------------------------
def _ff_geglu_kernel(x_ref, gamma_ref, beta_ref, shift_ref, scale_ref, gate_ref,
                     w1v_ref, b1v_ref, w1g_ref, b1g_ref, w2_ref, b2_ref,
                     o_ref, *, eps):
    x = x_ref[...]              # (ST, C)
    mu = jnp.mean(x, axis=-1, keepdims=True)
    var = jnp.mean(jnp.square(x - mu), axis=-1, keepdims=True)
    xn = ((x - mu) * lax.rsqrt(var + eps)) * gamma_ref[...] + beta_ref[...]
    xn = (xn * (1.0 + scale_ref[...]) + shift_ref[...]).astype(MXU_DTYPE)

    val = jnp.dot(xn, w1v_ref[...].astype(MXU_DTYPE),
                  preferred_element_type=jnp.float32) + b1v_ref[...]
    gct = jnp.dot(xn, w1g_ref[...].astype(MXU_DTYPE),
                  preferred_element_type=jnp.float32) + b1g_ref[...]
    # TODO(synk): PyTorch GEGLU uses the exact erf-based F.gelu; tanh approx here.
    act = jax.nn.gelu(gct, approximate=True)
    ff = jnp.dot((val * act).astype(MXU_DTYPE), w2_ref[...].astype(MXU_DTYPE),
                 preferred_element_type=jnp.float32) + b2_ref[...]
    o_ref[...] = (x + gate_ref[...] * ff).astype(o_ref.dtype)


def ff_geglu(h, gamma, beta, shift, scale, gate, w1, b1, w2, b2,
             *, seq_tile, vmem_limit, eps=EPS):
    B, L, C = h.shape
    d_ff = w1.shape[1] // 2
    w1v, w1g = w1[:, :d_ff], w1[:, d_ff:]
    b1v, b1g = b1[:, :d_ff], b1[:, d_ff:]
    ST = _pick_tile(L, seq_tile)
    nS = L // ST

    gamma2 = gamma.reshape(1, C)
    beta2 = beta.reshape(1, C)
    shift3 = shift.reshape(B, 1, C)
    scale3 = scale.reshape(B, 1, C)
    gate3 = gate.reshape(B, 1, C)
    cond_spec = pl.BlockSpec((None, 1, C), lambda b, s: (b, 0, 0))

    # TODO(synk): add a d_ff reduction grid axis ("arbitrary") for v7x at
    #             C >= 1024 so FF weight slabs never exceed the 64 MiB VMEM.
    return pl.pallas_call(
        functools.partial(_ff_geglu_kernel, eps=eps),
        out_shape=jax.ShapeDtypeStruct((B, L, C), h.dtype),
        grid=(B, nS),
        in_specs=[
            pl.BlockSpec((None, ST, C), lambda b, s: (b, s, 0)),
            _const_spec((1, C), lambda b, s: (0, 0)),
            _const_spec((1, C), lambda b, s: (0, 0)),
            cond_spec, cond_spec, cond_spec,
            _const_spec((C, d_ff), lambda b, s: (0, 0)),
            _const_spec((1, d_ff), lambda b, s: (0, 0)),
            _const_spec((C, d_ff), lambda b, s: (0, 0)),
            _const_spec((1, d_ff), lambda b, s: (0, 0)),
            _const_spec((d_ff, C), lambda b, s: (0, 0)),
            _const_spec((1, C), lambda b, s: (0, 0)),
        ],
        out_specs=pl.BlockSpec((None, ST, C), lambda b, s: (b, s, 0)),
        input_output_aliases={0: 0},
        compiler_params=pltpu.CompilerParams(
            dimension_semantics=("parallel", "parallel"),
            vmem_limit_bytes=vmem_limit),
    )(h, gamma2, beta2, shift3, scale3, gate3, w1v, b1v, w1g, b1g, w2, b2)


# ----------------------------------------------------------------------------
# Full block forward (tiny conditioning matmuls + layout glue in plain JAX)
# ----------------------------------------------------------------------------
def st_basic_transformer_block(params, hidden_states, temb, q_height, q_width,
                               heads, head_dim, config=None):
    cfg = config or _tpu_defaults()
    B, L, C = hidden_states.shape
    HW = q_height * q_width
    T = L // HW

    # adaLN-zero conditioning (tiny matmuls; kept as plain-JAX glue).
    silu_t = jax.nn.silu(temb)
    emb1 = silu_t @ params["ada1_w"] + params["ada1_b"]            # (B, 6C)
    (shift_msa, scale_msa, gate_msa,
     shift_mlp, scale_mlp, gate_mlp) = jnp.split(emb1, 6, axis=-1)
    embt = silu_t @ params["adat_w"] + params["adat_b"]            # (B, 3C)
    shift_t, scale_t, gate_t = jnp.split(embt, 3, axis=-1)

    h4 = hidden_states.reshape(B, T, HW, C)

    # norm1 + spatial self-attention + gate + residual (one fused kernel).
    h4 = spatial_attention(h4, shift_msa, scale_msa, gate_msa,
                           params["q1_w"], params["k1_w"], params["v1_w"],
                           params["o1_w"], params["o1_b"], heads, head_dim,
                           q_tile=cfg["q_tile"], vmem_limit=cfg["vmem"])

    # normt + temporal self-attention + gate + residual (one fused kernel,
    # no HBM transposes around it).
    h4 = temporal_attention(h4, shift_t, scale_t, gate_t,
                            params["qt_w"], params["kt_w"], params["vt_w"],
                            params["ot_w"], params["ot_b"], heads, head_dim,
                            pix_tile=cfg["pix_tile"], vmem_limit=cfg["vmem"])

    # attn2 is None (cross_attention_dim=None, double_self_attention=False).

    # norm3 + adaLN-mlp modulation + GEGLU FF + gate + residual (fused).
    h = h4.reshape(B, L, C)
    h = ff_geglu(h, params["norm3_w"], params["norm3_b"],
                 shift_mlp, scale_mlp, gate_mlp,
                 params["ff1_w"], params["ff1_b"],
                 params["ff2_w"], params["ff2_b"],
                 seq_tile=cfg["seq_tile"], vmem_limit=cfg["vmem"])
    return h


# ----------------------------------------------------------------------------
# Pure-JAX reference (same math, f32) for a correctness check
# ----------------------------------------------------------------------------
def reference_block(params, hidden_states, temb, q_height, q_width, heads,
                    head_dim):
    B, L, C = hidden_states.shape
    HW = q_height * q_width
    T = L // HW

    def layernorm(x, gamma, beta):
        mean = jnp.mean(x, -1, keepdims=True)
        var = jnp.mean((x - mean) ** 2, -1, keepdims=True)
        return (x - mean) * lax.rsqrt(var + EPS) * gamma + beta

    def attn(x, wq, wk, wv, wo, bo):
        N, S, _ = x.shape
        q = (x @ wq).reshape(N, S, heads, head_dim).transpose(0, 2, 1, 3)
        k = (x @ wk).reshape(N, S, heads, head_dim).transpose(0, 2, 1, 3)
        v = (x @ wv).reshape(N, S, heads, head_dim).transpose(0, 2, 1, 3)
        s = jnp.einsum("nhqd,nhkd->nhqk", q, k) * (1.0 / float(head_dim) ** 0.5)
        p = jax.nn.softmax(s, axis=-1)
        o = jnp.einsum("nhqk,nhkd->nhqd", p, v)
        o = o.transpose(0, 2, 1, 3).reshape(N, S, heads * head_dim)
        return o @ wo + bo

    silu_t = jax.nn.silu(temb)
    emb1 = silu_t @ params["ada1_w"] + params["ada1_b"]
    (shift_msa, scale_msa, gate_msa,
     shift_mlp, scale_mlp, gate_mlp) = jnp.split(emb1, 6, axis=-1)
    embt = silu_t @ params["adat_w"] + params["adat_b"]
    shift_t, scale_t, gate_t = jnp.split(embt, 3, axis=-1)

    ones = jnp.ones((C,), jnp.float32)
    zeros = jnp.zeros((C,), jnp.float32)

    nh = layernorm(hidden_states, ones, zeros) * (1 + scale_msa[:, None]) + shift_msa[:, None]
    a = attn(nh.reshape(B * T, HW, C), params["q1_w"], params["k1_w"],
             params["v1_w"], params["o1_w"], params["o1_b"]).reshape(B, L, C)
    hidden_states = hidden_states + gate_msa[:, None] * a

    nh = layernorm(hidden_states, ones, zeros) * (1 + scale_t[:, None]) + shift_t[:, None]
    x_t = nh.reshape(B, T, q_height, q_width, C).transpose(0, 2, 3, 1, 4).reshape(B * HW, T, C)
    a = attn(x_t, params["qt_w"], params["kt_w"], params["vt_w"],
             params["ot_w"], params["ot_b"])
    a = a.reshape(B, q_height, q_width, T, C).transpose(0, 3, 1, 2, 4).reshape(B, L, C)
    hidden_states = hidden_states + gate_t[:, None] * a

    nh = layernorm(hidden_states, params["norm3_w"], params["norm3_b"])
    nh = nh * (1 + scale_mlp[:, None]) + shift_mlp[:, None]
    h = nh @ params["ff1_w"] + params["ff1_b"]
    d_ff = params["ff2_w"].shape[0]
    ff = (h[..., :d_ff] * jax.nn.gelu(h[..., d_ff:], approximate=True)) @ params["ff2_w"] + params["ff2_b"]
    return hidden_states + gate_mlp[:, None] * ff


if __name__ == "__main__":
    B, T, H, W = 2, 4, 4, 4
    C = 32                      # dim
    heads, head_dim = 2, 16     # num_attention_heads, attention_head_dim
    Di = heads * head_dim       # == dim
    d_ff = 4 * C                # FeedForward default inner_dim
    L = T * H * W

    key = jax.random.PRNGKey(0)
    ks = jax.random.split(key, 20)

    def pinit(k, shape, scale=0.05):
        return (scale * jax.random.normal(k, shape)).astype(jnp.float32)

    hidden_states = jax.random.normal(ks[0], (B, L, C), jnp.float32)
    temb = jax.random.normal(ks[1], (B, C), jnp.float32)   # timestep embedding

    params = {
        "ada1_w": pinit(ks[2], (C, 6 * C)),
        "ada1_b": pinit(ks[3], (6 * C,)),
        "adat_w": pinit(ks[4], (C, 3 * C)),
        "adat_b": pinit(ks[5], (3 * C,)),
        "q1_w": pinit(ks[6], (C, Di)),
        "k1_w": pinit(ks[7], (C, Di)),
        "v1_w": pinit(ks[8], (C, Di)),
        "o1_w": pinit(ks[9], (Di, C)),
        "o1_b": pinit(ks[10], (1, C)),
        "qt_w": pinit(ks[11], (C, Di)),
        "kt_w": pinit(ks[12], (C, Di)),
        "vt_w": pinit(ks[13], (C, Di)),
        "ot_w": pinit(ks[14], (Di, C)),
        "ot_b": pinit(ks[15], (1, C)),
        "norm3_w": jnp.ones((C,), jnp.float32),   # nn.LayerNorm default init
        "norm3_b": jnp.zeros((C,), jnp.float32),
        "ff1_w": pinit(ks[16], (C, 2 * d_ff)),
        "ff1_b": pinit(ks[17], (1, 2 * d_ff)),
        "ff2_w": pinit(ks[18], (d_ff, C)),
        "ff2_b": pinit(ks[19], (1, C)),
    }

    fwd = jax.jit(functools.partial(st_basic_transformer_block,
                                    q_height=H, q_width=W,
                                    heads=heads, head_dim=head_dim))
    out = fwd(params, hidden_states, temb)
    out = jax.block_until_ready(out)

    ref = reference_block(params, hidden_states, temb, H, W, heads, head_dim)
    assert out.shape == (B, L, C)
    err = float(jnp.max(jnp.abs(out - ref)))
    if not bool(jnp.all(jnp.isfinite(out))) or err > 2e-2:
        raise SystemExit(f"mismatch: max abs err = {err}")
    print("KERNEL_OK")
</pallas_src>

<mosaic_0001>
module attributes {stable_mosaic.version = 11 : i64} {
  func.func @_spatial_attn_kernel(%arg0: i32, %arg1: i32, %arg2: i32, %arg3: memref<1x1x16x32xf32, #tpu.memory_space<vmem>>, %arg4: memref<1x1x32xf32, #tpu.memory_space<vmem>>, %arg5: memref<1x1x32xf32, #tpu.memory_space<vmem>>, %arg6: memref<1x1x32xf32, #tpu.memory_space<vmem>>, %arg7: memref<32x32xf32, #tpu.memory_space<vmem>>, %arg8: memref<32x32xf32, #tpu.memory_space<vmem>>, %arg9: memref<32x32xf32, #tpu.memory_space<vmem>>, %arg10: memref<32x32xf32, #tpu.memory_space<vmem>>, %arg11: memref<1x32xf32, #tpu.memory_space<vmem>>, %arg12: memref<1x1x16x32xf32, #tpu.memory_space<vmem>>, %arg13: memref<16x32xbf16, #tpu.memory_space<vmem>>, %arg14: memref<16x32xbf16, #tpu.memory_space<vmem>>) attributes {dimension_semantics = [#tpu.dimension_semantics<parallel>, #tpu.dimension_semantics<parallel>, #tpu.dimension_semantics<arbitrary>], iteration_bounds = array<i64: 2, 4, 1>, scalar_prefetch = 0 : i64, scratch_operands = 2 : i64, tpu.core_type = #tpu.core_type<tc>, window_params = [{transform_indices = @transform_0, window_bounds = array<i64: 1, 1, 16, 32>}, {transform_indices = @transform_1, window_bounds = array<i64: 1, 1, 32>}, {transform_indices = @transform_2, window_bounds = array<i64: 1, 1, 32>}, {transform_indices = @transform_3, window_bounds = array<i64: 1, 1, 32>}, {pipeline_mode = #tpu.pipeline_mode<synchronous>, transform_indices = @transform_4, window_bounds = array<i64: 32, 32>}, {pipeline_mode = #tpu.pipeline_mode<synchronous>, transform_indices = @transform_5, window_bounds = array<i64: 32, 32>}, {pipeline_mode = #tpu.pipeline_mode<synchronous>, transform_indices = @transform_6, window_bounds = array<i64: 32, 32>}, {pipeline_mode = #tpu.pipeline_mode<synchronous>, transform_indices = @transform_7, window_bounds = array<i64: 32, 32>}, {pipeline_mode = #tpu.pipeline_mode<synchronous>, transform_indices = @transform_8, window_bounds = array<i64: 1, 32>}, {transform_indices = @transform_9, window_bounds = array<i64: 1, 1, 16, 32>}]} {
    %c0 = arith.constant 0 : index
    %c0_0 = arith.constant 0 : index
    %c0_1 = arith.constant 0 : index
    %0 = vector.load %arg4[%c0, %c0_0, %c0_1] : memref<1x1x32xf32, #tpu.memory_space<vmem>>, vector<1x1x32xf32>
    %1 = vector.shape_cast %0 : vector<1x1x32xf32> to vector<1x32xf32>
    %c0_2 = arith.constant 0 : index
    %c0_3 = arith.constant 0 : index
    %c0_4 = arith.constant 0 : index
    %2 = vector.load %arg5[%c0_2, %c0_3, %c0_4] : memref<1x1x32xf32, #tpu.memory_space<vmem>>, vector<1x1x32xf32>
    %3 = vector.shape_cast %2 : vector<1x1x32xf32> to vector<1x32xf32>
    %c0_5 = arith.constant 0 : index
    %c0_6 = arith.constant 0 : index
    %c0_7 = arith.constant 0 : index
    %4 = vector.load %arg6[%c0_5, %c0_6, %c0_7] : memref<1x1x32xf32, #tpu.memory_space<vmem>>, vector<1x1x32xf32>
    %5 = vector.shape_cast %4 : vector<1x1x32xf32> to vector<1x32xf32>
    %c0_i32 = arith.constant 0 : i32
    %6 = arith.cmpi eq, %arg2, %c0_i32 : i32
    %7 = arith.extui %6 : i1 to i32
    %c0_i32_8 = arith.constant 0 : i32
    %8 = arith.cmpi ne, %7, %c0_i32_8 : i32
    scf.if %8 {
      %c0_46 = arith.constant 0 : index
      %c0_47 = arith.constant 0 : index
      %c0_48 = arith.constant 0 : index
      %c0_49 = arith.constant 0 : index
      %94 = vector.load %arg3[%c0_46, %c0_47, %c0_48, %c0_49] : memref<1x1x16x32xf32, #tpu.memory_space<vmem>>, vector<1x1x16x32xf32>
      %95 = vector.shape_cast %94 : vector<1x1x16x32xf32> to vector<16x32xf32>
      %cst_50 = arith.constant dense<0.000000e+00> : vector<16xf32>
      %96 = vector.multi_reduction <add>, %95, %cst_50 [1] : vector<16x32xf32> to vector<16xf32>
      %97 = vector.shape_cast %96 : vector<16xf32> to vector<16x1xf32>
      %cst_51 = arith.constant 3.200000e+01 : f32
      %98 = vector.broadcast %cst_51 : f32 to vector<16x1xf32>
      %99 = arith.divf %97, %98 : vector<16x1xf32>
      %100 = vector.broadcast %99 : vector<16x1xf32> to vector<16x32xf32>
      %101 = arith.subf %95, %100 : vector<16x32xf32>
      %102 = arith.mulf %101, %101 : vector<16x32xf32>
      %cst_52 = arith.constant dense<0.000000e+00> : vector<16xf32>
      %103 = vector.multi_reduction <add>, %102, %cst_52 [1] : vector<16x32xf32> to vector<16xf32>
      %104 = vector.shape_cast %103 : vector<16xf32> to vector<16x1xf32>
      %cst_53 = arith.constant 3.200000e+01 : f32
      %105 = vector.broadcast %cst_53 : f32 to vector<16x1xf32>
      %106 = arith.divf %104, %105 : vector<16x1xf32>
      %107 = vector.broadcast %99 : vector<16x1xf32> to vector<16x32xf32>
      %108 = arith.subf %95, %107 : vector<16x32xf32>
      %cst_54 = arith.constant 9.99999974E-6 : f32
      %109 = vector.broadcast %cst_54 : f32 to vector<16x1xf32>
      %110 = arith.addf %106, %109 : vector<16x1xf32>
      %111 = math.rsqrt %110 : vector<16x1xf32>
      %112 = vector.broadcast %111 : vector<16x1xf32> to vector<16x32xf32>
      %113 = arith.mulf %108, %112 : vector<16x32xf32>
      %cst_55 = arith.constant 1.000000e+00 : f32
      %114 = vector.broadcast %cst_55 : f32 to vector<1x32xf32>
      %115 = arith.addf %114, %3 : vector<1x32xf32>
      %116 = vector.broadcast %115 : vector<1x32xf32> to vector<16x32xf32>
      %117 = arith.mulf %113, %116 : vector<16x32xf32>
      %118 = vector.broadcast %1 : vector<1x32xf32> to vector<16x32xf32>
      %119 = arith.addf %117, %118 : vector<16x32xf32>
      %120 = arith.truncf %119 : vector<16x32xf32> to vector<16x32xbf16>
      %c0_56 = arith.constant 0 : index
      %c0_57 = arith.constant 0 : index
      %121 = vector.load %arg8[%c0_56, %c0_57] : memref<32x32xf32, #tpu.memory_space<vmem>>, vector<32x32xf32>
      %122 = arith.truncf %121 : vector<32x32xf32> to vector<32x32xbf16>
      %cst_58 = arith.constant dense<0.000000e+00> : vector<16x32xf32>
      %123 = tpu.matmul %120, %122, %cst_58 {dimension_numbers = #tpu.dot_dimension_numbers<[1], [0], [0], [1], [0, 0, 1, 1], [], []>} : vector<16x32xbf16>, vector<32x32xbf16>, vector<16x32xf32> -> vector<16x32xf32>
      %124 = arith.truncf %123 : vector<16x32xf32> to vector<16x32xbf16>
      %c0_59 = arith.constant 0 : index
      %c0_60 = arith.constant 0 : index
      %125 = vector.load %arg13[%c0_59, %c0_60] : memref<16x32xbf16, #tpu.memory_space<vmem>>, vector<16x32xbf16>
      tpu.vector_store %arg13[%c0_59, %c0_60], %124 {strides = array<i32>} : memref<16x32xbf16, #tpu.memory_space<vmem>>, vector<16x32xbf16>,
      %c0_61 = arith.constant 0 : index
      %c0_62 = arith.constant 0 : index
      %126 = vector.load %arg9[%c0_61, %c0_62] : memref<32x32xf32, #tpu.memory_space<vmem>>, vector<32x32xf32>
      %127 = arith.truncf %126 : vector<32x32xf32> to vector<32x32xbf16>
      %cst_63 = arith.constant dense<0.000000e+00> : vector<16x32xf32>
      %128 = tpu.matmul %120, %127, %cst_63 {dimension_numbers = #tpu.dot_dimension_numbers<[1], [0], [0], [1], [0, 0, 1, 1], [], []>} : vector<16x32xbf16>, vector<32x32xbf16>, vector<16x32xf32> -> vector<16x32xf32>
      %129 = arith.truncf %128 : vector<16x32xf32> to vector<16x32xbf16>
      %c0_64 = arith.constant 0 : index
      %c0_65 = arith.constant 0 : index
      %130 = vector.load %arg14[%c0_64, %c0_65] : memref<16x32xbf16, #tpu.memory_space<vmem>>, vector<16x32xbf16>
      tpu.vector_store %arg14[%c0_64, %c0_65], %129 {strides = array<i32>} : memref<16x32xbf16, #tpu.memory_space<vmem>>, vector<16x32xbf16>,
    } else {
    }
    %c16_i32 = arith.constant 16 : i32
    %9 = arith.muli %arg2, %c16_i32 : i32
    %10 = tpu.assume_multiple %9, 16 : i32
    %c0_9 = arith.constant 0 : index
    %c0_10 = arith.constant 0 : index
    %11 = arith.index_cast %10 : i32 to index
    %c0_11 = arith.constant 0 : index
    %12 = vector.load %arg3[%c0_9, %c0_10, %11, %c0_11] : memref<1x1x16x32xf32, #tpu.memory_space<vmem>>, vector<1x1x16x32xf32>
    %13 = vector.shape_cast %12 : vector<1x1x16x32xf32> to vector<16x32xf32>
    %cst = arith.constant dense<0.000000e+00> : vector<16xf32>
    %14 = vector.multi_reduction <add>, %13, %cst [1] : vector<16x32xf32> to vector<16xf32>
    %15 = vector.shape_cast %14 : vector<16xf32> to vector<16x1xf32>
    %cst_12 = arith.constant 3.200000e+01 : f32
    %16 = vector.broadcast %cst_12 : f32 to vector<16x1xf32>
    %17 = arith.divf %15, %16 : vector<16x1xf32>
    %18 = vector.broadcast %17 : vector<16x1xf32> to vector<16x32xf32>
    %19 = arith.subf %13, %18 : vector<16x32xf32>
    %20 = arith.mulf %19, %19 : vector<16x32xf32>
    %cst_13 = arith.constant dense<0.000000e+00> : vector<16xf32>
    %21 = vector.multi_reduction <add>, %20, %cst_13 [1] : vector<16x32xf32> to vector<16xf32>
    %22 = vector.shape_cast %21 : vector<16xf32> to vector<16x1xf32>
    %cst_14 = arith.constant 3.200000e+01 : f32
    %23 = vector.broadcast %cst_14 : f32 to vector<16x1xf32>
    %24 = arith.divf %22, %23 : vector<16x1xf32>
    %25 = vector.broadcast %17 : vector<16x1xf32> to vector<16x32xf32>
    %26 = arith.subf %13, %25 : vector<16x32xf32>
    %cst_15 = arith.constant 9.99999974E-6 : f32
    %27 = vector.broadcast %cst_15 : f32 to vector<16x1xf32>
    %28 = arith.addf %24, %27 : vector<16x1xf32>
    %29 = math.rsqrt %28 : vector<16x1xf32>
    %30 = vector.broadcast %29 : vector<16x1xf32> to vector<16x32xf32>
    %31 = arith.mulf %26, %30 : vector<16x32xf32>
    %cst_16 = arith.constant 1.000000e+00 : f32
    %32 = vector.broadcast %cst_16 : f32 to vector<1x32xf32>
    %33 = arith.addf %32, %3 : vector<1x32xf32>
    %34 = vector.broadcast %33 : vector<1x32xf32> to vector<16x32xf32>
    %35 = arith.mulf %31, %34 : vector<16x32xf32>
    %36 = vector.broadcast %1 : vector<1x32xf32> to vector<16x32xf32>
    %37 = arith.addf %35, %36 : vector<16x32xf32>
    %38 = arith.truncf %37 : vector<16x32xf32> to vector<16x32xbf16>
    %c0_17 = arith.constant 0 : index
    %c0_18 = arith.constant 0 : index
    %39 = vector.load %arg7[%c0_17, %c0_18] : memref<32x32xf32, #tpu.memory_space<vmem>>, vector<32x32xf32>
    %40 = arith.truncf %39 : vector<32x32xf32> to vector<32x32xbf16>
    %cst_19 = arith.constant dense<0.000000e+00> : vector<16x32xf32>
    %41 = tpu.matmul %38, %40, %cst_19 {dimension_numbers = #tpu.dot_dimension_numbers<[1], [0], [0], [1], [0, 0, 1, 1], [], []>} : vector<16x32xbf16>, vector<32x32xbf16>, vector<16x32xf32> -> vector<16x32xf32>
    %42 = vector.extract_strided_slice %41 {offsets = [0, 0], sizes = [16, 16], strides = [1, 1]} : vector<16x32xf32> to vector<16x16xf32>
    %cst_20 = arith.constant 2.500000e-01 : f32
    %43 = vector.broadcast %cst_20 : f32 to vector<16x16xf32>
    %44 = arith.mulf %42, %43 : vector<16x16xf32>
    %45 = arith.truncf %44 : vector<16x16xf32> to vector<16x16xbf16>
    %c0_21 = arith.constant 0 : index
    %c0_22 = arith.constant 0 : index
    %46 = vector.load %arg13[%c0_21, %c0_22] : memref<16x32xbf16, #tpu.memory_space<vmem>>, vector<16x16xbf16>
    %c0_23 = arith.constant 0 : index
    %c0_24 = arith.constant 0 : index
    %47 = vector.load %arg14[%c0_23, %c0_24] : memref<16x32xbf16, #tpu.memory_space<vmem>>, vector<16x16xbf16>
    %cst_25 = arith.constant dense<0.000000e+00> : vector<16x16xf32>
    %48 = tpu.matmul %45, %46, %cst_25 {dimension_numbers = #tpu.dot_dimension_numbers<[1], [1], [0], [0], [0, 0, 1, 0], [], []>} : vector<16x16xbf16>, vector<16x16xbf16>, vector<16x16xf32> -> vector<16x16xf32>
    %cst_26 = arith.constant dense<0xFF800000> : vector<16xf32>
    %49 = vector.multi_reduction <maximumf>, %48, %cst_26 [1] : vector<16x16xf32> to vector<16xf32>
    %50 = vector.shape_cast %49 : vector<16xf32> to vector<16x1xf32>
    %51 = vector.broadcast %50 : vector<16x1xf32> to vector<16x16xf32>
    %52 = arith.subf %48, %51 : vector<16x16xf32>
    %53 = math.exp %52 : vector<16x16xf32>
    %cst_27 = arith.constant dense<0.000000e+00> : vector<16xf32>
    %54 = vector.multi_reduction <add>, %53, %cst_27 [1] : vector<16x16xf32> to vector<16xf32>
    %55 = vector.shape_cast %54 : vector<16xf32> to vector<16x1xf32>
    %56 = tpu.reciprocal %55 {approx = true} : vector<16x1xf32> -> vector<16x1xf32>
    %57 = vector.broadcast %56 : vector<16x1xf32> to vector<16x16xf32>
    %58 = arith.mulf %53, %57 : vector<16x16xf32>
    %59 = arith.truncf %58 : vector<16x16xf32> to vector<16x16xbf16>
    %cst_28 = arith.constant dense<0.000000e+00> : vector<16x16xf32>
    %60 = tpu.matmul %59, %47, %cst_28 {dimension_numbers = #tpu.dot_dimension_numbers<[1], [0], [0], [1], [0, 0, 1, 1], [], []>} : vector<16x16xbf16>, vector<16x16xbf16>, vector<16x16xf32> -> vector<16x16xf32>
    %61 = vector.extract_strided_slice %41 {offsets = [0, 16], sizes = [16, 16], strides = [1, 1]} : vector<16x32xf32> to vector<16x16xf32>
    %cst_29 = arith.constant 2.500000e-01 : f32
    %62 = vector.broadcast %cst_29 : f32 to vector<16x16xf32>
    %63 = arith.mulf %61, %62 : vector<16x16xf32>
    %64 = arith.truncf %63 : vector<16x16xf32> to vector<16x16xbf16>
    %c0_30 = arith.constant 0 : index
    %c16 = arith.constant 16 : index
    %65 = vector.load %arg13[%c0_30, %c16] : memref<16x32xbf16, #tpu.memory_space<vmem>>, vector<16x16xbf16>
    %c0_31 = arith.constant 0 : index
    %c16_32 = arith.constant 16 : index
    %66 = vector.load %arg14[%c0_31, %c16_32] : memref<16x32xbf16, #tpu.memory_space<vmem>>, vector<16x16xbf16>
    %cst_33 = arith.constant dense<0.000000e+00> : vector<16x16xf32>
    %67 = tpu.matmul %64, %65, %cst_33 {dimension_numbers = #tpu.dot_dimension_numbers<[1], [1], [0], [0], [0, 0, 1, 0], [], []>} : vector<16x16xbf16>, vector<16x16xbf16>, vector<16x16xf32> -> vector<16x16xf32>
    %cst_34 = arith.constant dense<0xFF800000> : vector<16xf32>
    %68 = vector.multi_reduction <maximumf>, %67, %cst_34 [1] : vector<16x16xf32> to vector<16xf32>
    %69 = vector.shape_cast %68 : vector<16xf32> to vector<16x1xf32>
    %70 = vector.broadcast %69 : vector<16x1xf32> to vector<16x16xf32>
    %71 = arith.subf %67, %70 : vector<16x16xf32>
    %72 = math.exp %71 : vector<16x16xf32>
    %cst_35 = arith.constant dense<0.000000e+00> : vector<16xf32>
    %73 = vector.multi_reduction <add>, %72, %cst_35 [1] : vector<16x16xf32> to vector<16xf32>
    %74 = vector.shape_cast %73 : vector<16xf32> to vector<16x1xf32>
    %75 = tpu.reciprocal %74 {approx = true} : vector<16x1xf32> -> vector<16x1xf32>
    %76 = vector.broadcast %75 : vector<16x1xf32> to vector<16x16xf32>
    %77 = arith.mulf %72, %76 : vector<16x16xf32>
    %78 = arith.truncf %77 : vector<16x16xf32> to vector<16x16xbf16>
    %cst_36 = arith.constant dense<0.000000e+00> : vector<16x16xf32>
    %79 = tpu.matmul %78, %66, %cst_36 {dimension_numbers = #tpu.dot_dimension_numbers<[1], [0], [0], [1], [0, 0, 1, 1], [], []>} : vector<16x16xbf16>, vector<16x16xbf16>, vector<16x16xf32> -> vector<16x16xf32>
    %80 = tpu.concatenate %60, %79 in 1 : vector<16x16xf32>, vector<16x16xf32> -> vector<16x32xf32>
    %81 = arith.truncf %80 : vector<16x32xf32> to vector<16x32xbf16>
    %c0_37 = arith.constant 0 : index
    %c0_38 = arith.constant 0 : index
    %82 = vector.load %arg10[%c0_37, %c0_38] : memref<32x32xf32, #tpu.memory_space<vmem>>, vector<32x32xf32>
    %83 = arith.truncf %82 : vector<32x32xf32> to vector<32x32xbf16>
    %cst_39 = arith.constant dense<0.000000e+00> : vector<16x32xf32>
    %84 = tpu.matmul %81, %83, %cst_39 {dimension_numbers = #tpu.dot_dimension_numbers<[1], [0], [0], [1], [0, 0, 1, 1], [], []>} : vector<16x32xbf16>, vector<32x32xbf16>, vector<16x32xf32> -> vector<16x32xf32>
    %c0_40 = arith.constant 0 : index
    %c0_41 = arith.constant 0 : index
    %85 = vector.load %arg11[%c0_40, %c0_41] : memref<1x32xf32, #tpu.memory_space<vmem>>, vector<1x32xf32>
    %86 = vector.broadcast %85 : vector<1x32xf32> to vector<16x32xf32>
    %87 = arith.addf %84, %86 : vector<16x32xf32>
    %88 = vector.broadcast %5 : vector<1x32xf32> to vector<16x32xf32>
    %89 = arith.mulf %88, %87 : vector<16x32xf32>
    %90 = arith.addf %13, %89 : vector<16x32xf32>
    %c0_42 = arith.constant 0 : index
    %c0_43 = arith.constant 0 : index
    %c0_44 = arith.constant 0 : index
    %c0_45 = arith.constant 0 : index
    %91 = vector.load %arg12[%c0_42, %c0_43, %c0_44, %c0_45] : memref<1x1x16x32xf32, #tpu.memory_space<vmem>>, vector<1x1x16x32xf32>
    %92 = vector.shape_cast %91 : vector<1x1x16x32xf32> to vector<16x32xf32>
    %93 = vector.shape_cast %90 : vector<16x32xf32> to vector<1x1x16x32xf32>
    tpu.vector_store %arg12[%c0_42, %c0_43, %c0_44, %c0_45], %93 {strides = array<i32>} : memref<1x1x16x32xf32, #tpu.memory_space<vmem>>, vector<1x1x16x32xf32>,
    return
  }
  func.func @transform_0(%arg0: i32, %arg1: i32, %arg2: i32) -> (i32, i32, i32, i32) {
    %c0_i32 = arith.constant 0 : i32
    %c0_i32_0 = arith.constant 0 : i32
    %c0_i32_1 = arith.constant 0 : i32
    return %arg0, %arg1, %c0_i32, %c0_i32_0 : i32, i32, i32, i32
  }
  func.func @transform_1(%arg0: i32, %arg1: i32, %arg2: i32) -> (i32, i32, i32) {
    %c0_i32 = arith.constant 0 : i32
    %c0_i32_0 = arith.constant 0 : i32
    %c0_i32_1 = arith.constant 0 : i32
    return %arg0, %c0_i32, %c0_i32_0 : i32, i32, i32
  }
  func.func @transform_2(%arg0: i32, %arg1: i32, %arg2: i32) -> (i32, i32, i32) {
    %c0_i32 = arith.constant 0 : i32
    %c0_i32_0 = arith.constant 0 : i32
    %c0_i32_1 = arith.constant 0 : i32
    return %arg0, %c0_i32, %c0_i32_0 : i32, i32, i32
  }
  func.func @transform_3(%arg0: i32, %arg1: i32, %arg2: i32) -> (i32, i32, i32) {
    %c0_i32 = arith.constant 0 : i32
    %c0_i32_0 = arith.constant 0 : i32
    %c0_i32_1 = arith.constant 0 : i32
    return %arg0, %c0_i32, %c0_i32_0 : i32, i32, i32
  }
  func.func @transform_4(%arg0: i32, %arg1: i32, %arg2: i32) -> (i32, i32) {
    %c0_i32 = arith.constant 0 : i32
    %c0_i32_0 = arith.constant 0 : i32
    %c0_i32_1 = arith.constant 0 : i32
    return %c0_i32, %c0_i32_0 : i32, i32
  }
  func.func @transform_5(%arg0: i32, %arg1: i32, %arg2: i32) -> (i32, i32) {
    %c0_i32 = arith.constant 0 : i32
    %c0_i32_0 = arith.constant 0 : i32
    %c0_i32_1 = arith.constant 0 : i32
    return %c0_i32, %c0_i32_0 : i32, i32
  }
  func.func @transform_6(%arg0: i32, %arg1: i32, %arg2: i32) -> (i32, i32) {
    %c0_i32 = arith.constant 0 : i32
    %c0_i32_0 = arith.constant 0 : i32
    %c0_i32_1 = arith.constant 0 : i32
    return %c0_i32, %c0_i32_0 : i32, i32
  }
  func.func @transform_7(%arg0: i32, %arg1: i32, %arg2: i32) -> (i32, i32) {
    %c0_i32 = arith.constant 0 : i32
    %c0_i32_0 = arith.constant 0 : i32
    %c0_i32_1 = arith.constant 0 : i32
    return %c0_i32, %c0_i32_0 : i32, i32
  }
  func.func @transform_8(%arg0: i32, %arg1: i32, %arg2: i32) -> (i32, i32) {
    %c0_i32 = arith.constant 0 : i32
    %c0_i32_0 = arith.constant 0 : i32
    %c0_i32_1 = arith.constant 0 : i32
    return %c0_i32, %c0_i32_0 : i32, i32
  }
  func.func @transform_9(%arg0: i32, %arg1: i32, %arg2: i32) -> (i32, i32, i32, i32) {
    %c0_i32 = arith.constant 0 : i32
    %c0_i32_0 = arith.constant 0 : i32
    return %arg0, %arg1, %arg2, %c0_i32 : i32, i32, i32, i32
  }
}

module attributes {stable_mosaic.version = 11 : i64} {
  func.func @_temporal_attn_kernel(%arg0: i32, %arg1: i32, %arg2: memref<1x16x4x32xf32, #tpu.memory_space<vmem>>, %arg3: memref<1x1x32xf32, #tpu.memory_space<vmem>>, %arg4: memref<1x1x32xf32, #tpu.memory_space<vmem>>, %arg5: memref<1x1x32xf32, #tpu.memory_space<vmem>>, %arg6: memref<32x32xf32, #tpu.memory_space<vmem>>, %arg7: memref<32x32xf32, #tpu.memory_space<vmem>>, %arg8: memref<32x32xf32, #tpu.memory_space<vmem>>, %arg9: memref<32x32xf32, #tpu.memory_space<vmem>>, %arg10: memref<1x32xf32, #tpu.memory_space<vmem>>, %arg11: memref<1x16x4x32xf32, #tpu.memory_space<vmem>>) attributes {dimension_semantics = [#tpu.dimension_semantics<parallel>, #tpu.dimension_semantics<parallel>], iteration_bounds = array<i64: 2, 1>, scalar_prefetch = 0 : i64, scratch_operands = 0 : i64, tpu.core_type = #tpu.core_type<tc>, window_params = [{transform_indices = @transform_0, window_bounds = array<i64: 1, 16, 4, 32>}, {transform_indices = @transform_1, window_bounds = array<i64: 1, 1, 32>}, {transform_indices = @transform_2, window_bounds = array<i64: 1, 1, 32>}, {transform_indices = @transform_3, window_bounds = array<i64: 1, 1, 32>}, {pipeline_mode = #tpu.pipeline_mode<synchronous>, transform_indices = @transform_4, window_bounds = array<i64: 32, 32>}, {pipeline_mode = #tpu.pipeline_mode<synchronous>, transform_indices = @transform_5, window_bounds = array<i64: 32, 32>}, {pipeline_mode = #tpu.pipeline_mode<synchronous>, transform_indices = @transform_6, window_bounds = array<i64: 32, 32>}, {pipeline_mode = #tpu.pipeline_mode<synchronous>, transform_indices = @transform_7, window_bounds = array<i64: 32, 32>}, {pipeline_mode = #tpu.pipeline_mode<synchronous>, transform_indices = @transform_8, window_bounds = array<i64: 1, 32>}, {transform_indices = @transform_9, window_bounds = array<i64: 1, 16, 4, 32>}]} {
    %c0 = arith.constant 0 : index
    %c0_0 = arith.constant 0 : index
    %c0_1 = arith.constant 0 : index
    %c0_2 = arith.constant 0 : index
    %0 = vector.load %arg2[%c0, %c0_0, %c0_1, %c0_2] : memref<1x16x4x32xf32, #tpu.memory_space<vmem>>, vector<1x16x4x32xf32>
    %1 = vector.shape_cast %0 : vector<1x16x4x32xf32> to vector<16x4x32xf32>
    %c0_3 = arith.constant 0 : index
    %c0_4 = arith.constant 0 : index
    %c0_5 = arith.constant 0 : index
    %2 = vector.load %arg3[%c0_3, %c0_4, %c0_5] : memref<1x1x32xf32, #tpu.memory_space<vmem>>, vector<1x1x32xf32>
    %3 = vector.shape_cast %2 : vector<1x1x32xf32> to vector<1x32xf32>
    %c0_6 = arith.constant 0 : index
    %c0_7 = arith.constant 0 : index
    %c0_8 = arith.constant 0 : index
    %4 = vector.load %arg4[%c0_6, %c0_7, %c0_8] : memref<1x1x32xf32, #tpu.memory_space<vmem>>, vector<1x1x32xf32>
    %5 = vector.shape_cast %4 : vector<1x1x32xf32> to vector<1x32xf32>
    %c0_9 = arith.constant 0 : index
    %c0_10 = arith.constant 0 : index
    %c0_11 = arith.constant 0 : index
    %6 = vector.load %arg5[%c0_9, %c0_10, %c0_11] : memref<1x1x32xf32, #tpu.memory_space<vmem>>, vector<1x1x32xf32>
    %7 = vector.shape_cast %6 : vector<1x1x32xf32> to vector<1x32xf32>
    %8 = vector.shape_cast %1 : vector<16x4x32xf32> to vector<64x32xf32>
    %cst = arith.constant dense<0.000000e+00> : vector<64xf32>
    %9 = vector.multi_reduction <add>, %8, %cst [1] : vector<64x32xf32> to vector<64xf32>
    %10 = vector.shape_cast %9 : vector<64xf32> to vector<64x1xf32>
    %cst_12 = arith.constant 3.200000e+01 : f32
    %11 = vector.broadcast %cst_12 : f32 to vector<64x1xf32>
    %12 = arith.divf %10, %11 : vector<64x1xf32>
    %13 = vector.broadcast %12 : vector<64x1xf32> to vector<64x32xf32>
    %14 = arith.subf %8, %13 : vector<64x32xf32>
    %15 = arith.mulf %14, %14 : vector<64x32xf32>
    %cst_13 = arith.constant dense<0.000000e+00> : vector<64xf32>
    %16 = vector.multi_reduction <add>, %15, %cst_13 [1] : vector<64x32xf32> to vector<64xf32>
    %17 = vector.shape_cast %16 : vector<64xf32> to vector<64x1xf32>
    %cst_14 = arith.constant 3.200000e+01 : f32
    %18 = vector.broadcast %cst_14 : f32 to vector<64x1xf32>
    %19 = arith.divf %17, %18 : vector<64x1xf32>
    %20 = vector.broadcast %12 : vector<64x1xf32> to vector<64x32xf32>
    %21 = arith.subf %8, %20 : vector<64x32xf32>
    %cst_15 = arith.constant 9.99999974E-6 : f32
    %22 = vector.broadcast %cst_15 : f32 to vector<64x1xf32>
    %23 = arith.addf %19, %22 : vector<64x1xf32>
    %24 = math.rsqrt %23 : vector<64x1xf32>
    %25 = vector.broadcast %24 : vector<64x1xf32> to vector<64x32xf32>
    %26 = arith.mulf %21, %25 : vector<64x32xf32>
    %cst_16 = arith.constant 1.000000e+00 : f32
    %27 = vector.broadcast %cst_16 : f32 to vector<1x32xf32>
    %28 = arith.addf %27, %5 : vector<1x32xf32>
    %29 = vector.broadcast %28 : vector<1x32xf32> to vector<64x32xf32>
    %30 = arith.mulf %26, %29 : vector<64x32xf32>
    %31 = vector.broadcast %3 : vector<1x32xf32> to vector<64x32xf32>
    %32 = arith.addf %30, %31 : vector<64x32xf32>
    %33 = arith.truncf %32 : vector<64x32xf32> to vector<64x32xbf16>
    %c0_17 = arith.constant 0 : index
    %c0_18 = arith.constant 0 : index
    %34 = vector.load %arg6[%c0_17, %c0_18] : memref<32x32xf32, #tpu.memory_space<vmem>>, vector<32x32xf32>
    %35 = arith.truncf %34 : vector<32x32xf32> to vector<32x32xbf16>
    %cst_19 = arith.constant dense<0.000000e+00> : vector<64x32xf32>
    %36 = tpu.matmul %33, %35, %cst_19 {dimension_numbers = #tpu.dot_dimension_numbers<[1], [0], [0], [1], [0, 0, 1, 1], [], []>} : vector<64x32xbf16>, vector<32x32xbf16>, vector<64x32xf32> -> vector<64x32xf32>
    %c0_20 = arith.constant 0 : index
    %c0_21 = arith.constant 0 : index
    %37 = vector.load %arg7[%c0_20, %c0_21] : memref<32x32xf32, #tpu.memory_space<vmem>>, vector<32x32xf32>
    %38 = arith.truncf %37 : vector<32x32xf32> to vector<32x32xbf16>
    %cst_22 = arith.constant dense<0.000000e+00> : vector<64x32xf32>
    %39 = tpu.matmul %33, %38, %cst_22 {dimension_numbers = #tpu.dot_dimension_numbers<[1], [0], [0], [1], [0, 0, 1, 1], [], []>} : vector<64x32xbf16>, vector<32x32xbf16>, vector<64x32xf32> -> vector<64x32xf32>
    %c0_23 = arith.constant 0 : index
    %c0_24 = arith.constant 0 : index
    %40 = vector.load %arg8[%c0_23, %c0_24] : memref<32x32xf32, #tpu.memory_space<vmem>>, vector<32x32xf32>
    %41 = arith.truncf %40 : vector<32x32xf32> to vector<32x32xbf16>
    %cst_25 = arith.constant dense<0.000000e+00> : vector<64x32xf32>
    %42 = tpu.matmul %33, %41, %cst_25 {dimension_numbers = #tpu.dot_dimension_numbers<[1], [0], [0], [1], [0, 0, 1, 1], [], []>} : vector<64x32xbf16>, vector<32x32xbf16>, vector<64x32xf32> -> vector<64x32xf32>
    %43 = vector.extract_strided_slice %36 {offsets = [0, 0], sizes = [64, 16], strides = [1, 1]} : vector<64x32xf32> to vector<64x16xf32>
    %cst_26 = arith.constant 2.500000e-01 : f32
    %44 = vector.broadcast %cst_26 : f32 to vector<64x16xf32>
    %45 = arith.mulf %43, %44 : vector<64x16xf32>
    %46 = arith.truncf %45 : vector<64x16xf32> to vector<64x16xbf16>
    %47 = vector.shape_cast %46 : vector<64x16xbf16> to vector<16x4x16xbf16>
    %48 = vector.extract_strided_slice %39 {offsets = [0, 0], sizes = [64, 16], strides = [1, 1]} : vector<64x32xf32> to vector<64x16xf32>
    %49 = arith.truncf %48 : vector<64x16xf32> to vector<64x16xbf16>
    %50 = vector.shape_cast %49 : vector<64x16xbf16> to vector<16x4x16xbf16>
    %51 = vector.extract_strided_slice %42 {offsets = [0, 0], sizes = [64, 16], strides = [1, 1]} : vector<64x32xf32> to vector<64x16xf32>
    %52 = arith.truncf %51 : vector<64x16xf32> to vector<64x16xbf16>
    %53 = vector.shape_cast %52 : vector<64x16xbf16> to vector<16x4x16xbf16>
    "tpu.trace_start"() <{level = 10 : i32, message = "ptd,psd->pts"}> : () -> ()
    %cst_27 = arith.constant dense<0.000000e+00> : vector<16x4x4xf32>
    %54 = tpu.matmul %47, %50, %cst_27 {dimension_numbers = #tpu.dot_dimension_numbers<[2], [2], [1], [1], [0, 0, 0, 1, 1, 1], [0], [0]>} : vector<16x4x16xbf16>, vector<16x4x16xbf16>, vector<16x4x4xf32> -> vector<16x4x4xf32>
    "tpu.trace_stop"() : () -> ()
    %cst_28 = arith.constant dense<0xFF800000> : vector<16x4xf32>
    %55 = vector.multi_reduction <maximumf>, %54, %cst_28 [2] : vector<16x4x4xf32> to vector<16x4xf32>
    %56 = vector.shape_cast %55 : vector<16x4xf32> to vector<16x4x1xf32>
    %57 = vector.broadcast %56 : vector<16x4x1xf32> to vector<16x4x4xf32>
    %58 = arith.subf %54, %57 : vector<16x4x4xf32>
    %59 = math.exp %58 : vector<16x4x4xf32>
    %cst_29 = arith.constant dense<0.000000e+00> : vector<16x4xf32>
    %60 = vector.multi_reduction <add>, %59, %cst_29 [2] : vector<16x4x4xf32> to vector<16x4xf32>
    %61 = vector.shape_cast %60 : vector<16x4xf32> to vector<16x4x1xf32>
    %62 = tpu.reciprocal %61 {approx = true} : vector<16x4x1xf32> -> vector<16x4x1xf32>
    %63 = vector.broadcast %62 : vector<16x4x1xf32> to vector<16x4x4xf32>
    %64 = arith.mulf %59, %63 : vector<16x4x4xf32>
    %65 = arith.truncf %64 : vector<16x4x4xf32> to vector<16x4x4xbf16>
    "tpu.trace_start"() <{level = 10 : i32, message = "pts,psd->ptd"}> : () -> ()
    %cst_30 = arith.constant dense<0.000000e+00> : vector<16x4x16xf32>
    %66 = tpu.matmul %65, %53, %cst_30 {dimension_numbers = #tpu.dot_dimension_numbers<[2], [1], [1], [2], [0, 0, 0, 1, 1, 2], [0], [0]>} : vector<16x4x4xbf16>, vector<16x4x16xbf16>, vector<16x4x16xf32> -> vector<16x4x16xf32>
    "tpu.trace_stop"() : () -> ()
    %67 = vector.shape_cast %66 : vector<16x4x16xf32> to vector<64x16xf32>
    %68 = vector.extract_strided_slice %36 {offsets = [0, 16], sizes = [64, 16], strides = [1, 1]} : vector<64x32xf32> to vector<64x16xf32>
    %cst_31 = arith.constant 2.500000e-01 : f32
    %69 = vector.broadcast %cst_31 : f32 to vector<64x16xf32>
    %70 = arith.mulf %68, %69 : vector<64x16xf32>
    %71 = arith.truncf %70 : vector<64x16xf32> to vector<64x16xbf16>
    %72 = vector.shape_cast %71 : vector<64x16xbf16> to vector<16x4x16xbf16>
    %73 = vector.extract_strided_slice %39 {offsets = [0, 16], sizes = [64, 16], strides = [1, 1]} : vector<64x32xf32> to vector<64x16xf32>
    %74 = arith.truncf %73 : vector<64x16xf32> to vector<64x16xbf16>
    %75 = vector.shape_cast %74 : vector<64x16xbf16> to vector<16x4x16xbf16>
    %76 = vector.extract_strided_slice %42 {offsets = [0, 16], sizes = [64, 16], strides = [1, 1]} : vector<64x32xf32> to vector<64x16xf32>
    %77 = arith.truncf %76 : vector<64x16xf32> to vector<64x16xbf16>
    %78 = vector.shape_cast %77 : vector<64x16xbf16> to vector<16x4x16xbf16>
    "tpu.trace_start"() <{level = 10 : i32, message = "ptd,psd->pts"}> : () -> ()
    %cst_32 = arith.constant dense<0.000000e+00> : vector<16x4x4xf32>
    %79 = tpu.matmul %72, %75, %cst_32 {dimension_numbers = #tpu.dot_dimension_numbers<[2], [2], [1], [1], [0, 0, 0, 1, 1, 1], [0], [0]>} : vector<16x4x16xbf16>, vector<16x4x16xbf16>, vector<16x4x4xf32> -> vector<16x4x4xf32>
    "tpu.trace_stop"() : () -> ()
    %cst_33 = arith.constant dense<0xFF800000> : vector<16x4xf32>
    %80 = vector.multi_reduction <maximumf>, %79, %cst_33 [2] : vector<16x4x4xf32> to vector<16x4xf32>
    %81 = vector.shape_cast %80 : vector<16x4xf32> to vector<16x4x1xf32>
    %82 = vector.broadcast %81 : vector<16x4x1xf32> to vector<16x4x4xf32>
    %83 = arith.subf %79, %82 : vector<16x4x4xf32>
    %84 = math.exp %83 : vector<16x4x4xf32>
    %cst_34 = arith.constant dense<0.000000e+00> : vector<16x4xf32>
    %85 = vector.multi_reduction <add>, %84, %cst_34 [2] : vector<16x4x4xf32> to vector<16x4xf32>
    %86 = vector.shape_cast %85 : vector<16x4xf32> to vector<16x4x1xf32>
    %87 = tpu.reciprocal %86 {approx = true} : vector<16x4x1xf32> -> vector<16x4x1xf32>
    %88 = vector.broadcast %87 : vector<16x4x1xf32> to vector<16x4x4xf32>
    %89 = arith.mulf %84, %88 : vector<16x4x4xf32>
    %90 = arith.truncf %89 : vector<16x4x4xf32> to vector<16x4x4xbf16>
    "tpu.trace_start"() <{level = 10 : i32, message = "pts,psd->ptd"}> : () -> ()
    %cst_35 = arith.constant dense<0.000000e+00> : vector<16x4x16xf32>
    %91 = tpu.matmul %90, %78, %cst_35 {dimension_numbers = #tpu.dot_dimension_numbers<[2], [1], [1], [2], [0, 0, 0, 1, 1, 2], [0], [0]>} : vector<16x4x4xbf16>, vector<16x4x16xbf16>, vector<16x4x16xf32> -> vector<16x4x16xf32>
    "tpu.trace_stop"() : () -> ()
    %92 = vector.shape_cast %91 : vector<16x4x16xf32> to vector<64x16xf32>
    %93 = tpu.concatenate %67, %92 in 1 : vector<64x16xf32>, vector<64x16xf32> -> vector<64x32xf32>
    %94 = arith.truncf %93 : vector<64x32xf32> to vector<64x32xbf16>
    %c0_36 = arith.constant 0 : index
    %c0_37 = arith.constant 0 : index
    %95 = vector.load %arg9[%c0_36, %c0_37] : memref<32x32xf32, #tpu.memory_space<vmem>>, vector<32x32xf32>
    %96 = arith.truncf %95 : vector<32x32xf32> to vector<32x32xbf16>
    %cst_38 = arith.constant dense<0.000000e+00> : vector<64x32xf32>
    %97 = tpu.matmul %94, %96, %cst_38 {dimension_numbers = #tpu.dot_dimension_numbers<[1], [0], [0], [1], [0, 0, 1, 1], [], []>} : vector<64x32xbf16>, vector<32x32xbf16>, vector<64x32xf32> -> vector<64x32xf32>
    %c0_39 = arith.constant 0 : index
    %c0_40 = arith.constant 0 : index
    %98 = vector.load %arg10[%c0_39, %c0_40] : memref<1x32xf32, #tpu.memory_space<vmem>>, vector<1x32xf32>
    %99 = vector.broadcast %98 : vector<1x32xf32> to vector<64x32xf32>
    %100 = arith.addf %97, %99 : vector<64x32xf32>
    %101 = vector.shape_cast %100 : vector<64x32xf32> to vector<16x4x32xf32>
    %102 = vector.shape_cast %7 : vector<1x32xf32> to vector<1x1x32xf32>
    %103 = vector.broadcast %102 : vector<1x1x32xf32> to vector<16x4x32xf32>
    %104 = arith.mulf %103, %101 : vector<16x4x32xf32>
    %105 = arith.addf %1, %104 : vector<16x4x32xf32>
    %c0_41 = arith.constant 0 : index
    %c0_42 = arith.constant 0 : index
    %c0_43 = arith.constant 0 : index
    %c0_44 = arith.constant 0 : index
    %106 = vector.load %arg11[%c0_41, %c0_42, %c0_43, %c0_44] : memref<1x16x4x32xf32, #tpu.memory_space<vmem>>, vector<1x16x4x32xf32>
    %107 = vector.shape_cast %106 : vector<1x16x4x32xf32> to vector<16x4x32xf32>
    %108 = vector.shape_cast %105 : vector<16x4x32xf32> to vector<1x16x4x32xf32>
    tpu.vector_store %arg11[%c0_41, %c0_42, %c0_43, %c0_44], %108 {strides = array<i32>} : memref<1x16x4x32xf32, #tpu.memory_space<vmem>>, vector<1x16x4x32xf32>,
    return
  }
  func.func @transform_0(%arg0: i32, %arg1: i32) -> (i32, i32, i32, i32) {
    %c0_i32 = arith.constant 0 : i32
    %c0_i32_0 = arith.constant 0 : i32
    %c0_i32_1 = arith.constant 0 : i32
    return %arg0, %arg1, %c0_i32, %c0_i32_0 : i32, i32, i32, i32
  }
  func.func @transform_1(%arg0: i32, %arg1: i32) -> (i32, i32, i32) {
    %c0_i32 = arith.constant 0 : i32
    %c0_i32_0 = arith.constant 0 : i32
    %c0_i32_1 = arith.constant 0 : i32
    return %arg0, %c0_i32, %c0_i32_0 : i32, i32, i32
  }
  func.func @transform_2(%arg0: i32, %arg1: i32) -> (i32, i32, i32) {
    %c0_i32 = arith.constant 0 : i32
    %c0_i32_0 = arith.constant 0 : i32
    %c0_i32_1 = arith.constant 0 : i32
    return %arg0, %c0_i32, %c0_i32_0 : i32, i32, i32
  }
  func.func @transform_3(%arg0: i32, %arg1: i32) -> (i32, i32, i32) {
    %c0_i32 = arith.constant 0 : i32
    %c0_i32_0 = arith.constant 0 : i32
    %c0_i32_1 = arith.constant 0 : i32
    return %arg0, %c0_i32, %c0_i32_0 : i32, i32, i32
  }
  func.func @transform_4(%arg0: i32, %arg1: i32) -> (i32, i32) {
    %c0_i32 = arith.constant 0 : i32
    %c0_i32_0 = arith.constant 0 : i32
    %c0_i32_1 = arith.constant 0 : i32
    return %c0_i32, %c0_i32_0 : i32, i32
  }
  func.func @transform_5(%arg0: i32, %arg1: i32) -> (i32, i32) {
    %c0_i32 = arith.constant 0 : i32
    %c0_i32_0 = arith.constant 0 : i32
    %c0_i32_1 = arith.constant 0 : i32
    return %c0_i32, %c0_i32_0 : i32, i32
  }
  func.func @transform_6(%arg0: i32, %arg1: i32) -> (i32, i32) {
    %c0_i32 = arith.constant 0 : i32
    %c0_i32_0 = arith.constant 0 : i32
    %c0_i32_1 = arith.constant 0 : i32
    return %c0_i32, %c0_i32_0 : i32, i32
  }
  func.func @transform_7(%arg0: i32, %arg1: i32) -> (i32, i32) {
    %c0_i32 = arith.constant 0 : i32
    %c0_i32_0 = arith.constant 0 : i32
    %c0_i32_1 = arith.constant 0 : i32
    return %c0_i32, %c0_i32_0 : i32, i32
  }
  func.func @transform_8(%arg0: i32, %arg1: i32) -> (i32, i32) {
    %c0_i32 = arith.constant 0 : i32
    %c0_i32_0 = arith.constant 0 : i32
    %c0_i32_1 = arith.constant 0 : i32
    return %c0_i32, %c0_i32_0 : i32, i32
  }
  func.func @transform_9(%arg0: i32, %arg1: i32) -> (i32, i32, i32, i32) {
    %c0_i32 = arith.constant 0 : i32
    %c0_i32_0 = arith.constant 0 : i32
    %c0_i32_1 = arith.constant 0 : i32
    return %arg0, %arg1, %c0_i32, %c0_i32_0 : i32, i32, i32, i32
  }
}

module attributes {stable_mosaic.version = 11 : i64} {
  func.func @_ff_geglu_kernel(%arg0: i32, %arg1: i32, %arg2: memref<1x64x32xf32, #tpu.memory_space<vmem>>, %arg3: memref<1x32xf32, #tpu.memory_space<vmem>>, %arg4: memref<1x32xf32, #tpu.memory_space<vmem>>, %arg5: memref<1x1x32xf32, #tpu.memory_space<vmem>>, %arg6: memref<1x1x32xf32, #tpu.memory_space<vmem>>, %arg7: memref<1x1x32xf32, #tpu.memory_space<vmem>>, %arg8: memref<32x128xf32, #tpu.memory_space<vmem>>, %arg9: memref<1x128xf32, #tpu.memory_space<vmem>>, %arg10: memref<32x128xf32, #tpu.memory_space<vmem>>, %arg11: memref<1x128xf32, #tpu.memory_space<vmem>>, %arg12: memref<128x32xf32, #tpu.memory_space<vmem>>, %arg13: memref<1x32xf32, #tpu.memory_space<vmem>>, %arg14: memref<1x64x32xf32, #tpu.memory_space<vmem>>) attributes {dimension_semantics = [#tpu.dimension_semantics<parallel>, #tpu.dimension_semantics<parallel>], iteration_bounds = array<i64: 2, 1>, scalar_prefetch = 0 : i64, scratch_operands = 0 : i64, tpu.core_type = #tpu.core_type<tc>, window_params = [{transform_indices = @transform_0, window_bounds = array<i64: 1, 64, 32>}, {pipeline_mode = #tpu.pipeline_mode<synchronous>, transform_indices = @transform_1, window_bounds = array<i64: 1, 32>}, {pipeline_mode = #tpu.pipeline_mode<synchronous>, transform_indices = @transform_2, window_bounds = array<i64: 1, 32>}, {transform_indices = @transform_3, window_bounds = array<i64: 1, 1, 32>}, {transform_indices = @transform_4, window_bounds = array<i64: 1, 1, 32>}, {transform_indices = @transform_5, window_bounds = array<i64: 1, 1, 32>}, {pipeline_mode = #tpu.pipeline_mode<synchronous>, transform_indices = @transform_6, window_bounds = array<i64: 32, 128>}, {pipeline_mode = #tpu.pipeline_mode<synchronous>, transform_indices = @transform_7, window_bounds = array<i64: 1, 128>}, {pipeline_mode = #tpu.pipeline_mode<synchronous>, transform_indices = @transform_8, window_bounds = array<i64: 32, 128>}, {pipeline_mode = #tpu.pipeline_mode<synchronous>, transform_indices = @transform_9, window_bounds = array<i64: 1, 128>}, {pipeline_mode = #tpu.pipeline_mode<synchronous>, transform_indices = @transform_10, window_bounds = array<i64: 128, 32>}, {pipeline_mode = #tpu.pipeline_mode<synchronous>, transform_indices = @transform_11, window_bounds = array<i64: 1, 32>}, {transform_indices = @transform_12, window_bounds = array<i64: 1, 64, 32>}]} {
    %c0 = arith.constant 0 : index
    %c0_0 = arith.constant 0 : index
    %c0_1 = arith.constant 0 : index
    %0 = vector.load %arg2[%c0, %c0_0, %c0_1] : memref<1x64x32xf32, #tpu.memory_space<vmem>>, vector<1x64x32xf32>
    %1 = vector.shape_cast %0 : vector<1x64x32xf32> to vector<64x32xf32>
    %cst = arith.constant dense<0.000000e+00> : vector<64xf32>
    %2 = vector.multi_reduction <add>, %1, %cst [1] : vector<64x32xf32> to vector<64xf32>
    %3 = vector.shape_cast %2 : vector<64xf32> to vector<64x1xf32>
    %cst_2 = arith.constant 3.200000e+01 : f32
    %4 = vector.broadcast %cst_2 : f32 to vector<64x1xf32>
    %5 = arith.divf %3, %4 : vector<64x1xf32>
    %6 = vector.broadcast %5 : vector<64x1xf32> to vector<64x32xf32>
    %7 = arith.subf %1, %6 : vector<64x32xf32>
    %8 = arith.mulf %7, %7 : vector<64x32xf32>
    %cst_3 = arith.constant dense<0.000000e+00> : vector<64xf32>
    %9 = vector.multi_reduction <add>, %8, %cst_3 [1] : vector<64x32xf32> to vector<64xf32>
    %10 = vector.shape_cast %9 : vector<64xf32> to vector<64x1xf32>
    %cst_4 = arith.constant 3.200000e+01 : f32
    %11 = vector.broadcast %cst_4 : f32 to vector<64x1xf32>
    %12 = arith.divf %10, %11 : vector<64x1xf32>
    %13 = vector.broadcast %5 : vector<64x1xf32> to vector<64x32xf32>
    %14 = arith.subf %1, %13 : vector<64x32xf32>
    %cst_5 = arith.constant 9.99999974E-6 : f32
    %15 = vector.broadcast %cst_5 : f32 to vector<64x1xf32>
    %16 = arith.addf %12, %15 : vector<64x1xf32>
    %17 = math.rsqrt %16 : vector<64x1xf32>
    %18 = vector.broadcast %17 : vector<64x1xf32> to vector<64x32xf32>
    %19 = arith.mulf %14, %18 : vector<64x32xf32>
    %c0_6 = arith.constant 0 : index
    %c0_7 = arith.constant 0 : index
    %20 = vector.load %arg3[%c0_6, %c0_7] : memref<1x32xf32, #tpu.memory_space<vmem>>, vector<1x32xf32>
    %21 = vector.broadcast %20 : vector<1x32xf32> to vector<64x32xf32>
    %22 = arith.mulf %19, %21 : vector<64x32xf32>
    %c0_8 = arith.constant 0 : index
    %c0_9 = arith.constant 0 : index
    %23 = vector.load %arg4[%c0_8, %c0_9] : memref<1x32xf32, #tpu.memory_space<vmem>>, vector<1x32xf32>
    %24 = vector.broadcast %23 : vector<1x32xf32> to vector<64x32xf32>
    %25 = arith.addf %22, %24 : vector<64x32xf32>
    %c0_10 = arith.constant 0 : index
    %c0_11 = arith.constant 0 : index
    %c0_12 = arith.constant 0 : index
    %26 = vector.load %arg6[%c0_10, %c0_11, %c0_12] : memref<1x1x32xf32, #tpu.memory_space<vmem>>, vector<1x1x32xf32>
    %27 = vector.shape_cast %26 : vector<1x1x32xf32> to vector<1x32xf32>
    %cst_13 = arith.constant 1.000000e+00 : f32
    %28 = vector.broadcast %cst_13 : f32 to vector<1x32xf32>
    %29 = arith.addf %28, %27 : vector<1x32xf32>
    %30 = vector.broadcast %29 : vector<1x32xf32> to vector<64x32xf32>
    %31 = arith.mulf %25, %30 : vector<64x32xf32>
    %c0_14 = arith.constant 0 : index
    %c0_15 = arith.constant 0 : index
    %c0_16 = arith.constant 0 : index
    %32 = vector.load %arg5[%c0_14, %c0_15, %c0_16] : memref<1x1x32xf32, #tpu.memory_space<vmem>>, vector<1x1x32xf32>
    %33 = vector.shape_cast %32 : vector<1x1x32xf32> to vector<1x32xf32>
    %34 = vector.broadcast %33 : vector<1x32xf32> to vector<64x32xf32>
    %35 = arith.addf %31, %34 : vector<64x32xf32>
    %36 = arith.truncf %35 : vector<64x32xf32> to vector<64x32xbf16>
    %c0_17 = arith.constant 0 : index
    %c0_18 = arith.constant 0 : index
    %37 = vector.load %arg8[%c0_17, %c0_18] : memref<32x128xf32, #tpu.memory_space<vmem>>, vector<32x128xf32>
    %38 = arith.truncf %37 : vector<32x128xf32> to vector<32x128xbf16>
    %cst_19 = arith.constant dense<0.000000e+00> : vector<64x128xf32>
    %39 = tpu.matmul %36, %38, %cst_19 {dimension_numbers = #tpu.dot_dimension_numbers<[1], [0], [0], [1], [0, 0, 1, 1], [], []>} : vector<64x32xbf16>, vector<32x128xbf16>, vector<64x128xf32> -> vector<64x128xf32>
    %c0_20 = arith.constant 0 : index
    %c0_21 = arith.constant 0 : index
    %40 = vector.load %arg9[%c0_20, %c0_21] : memref<1x128xf32, #tpu.memory_space<vmem>>, vector<1x128xf32>
    %41 = vector.broadcast %40 : vector<1x128xf32> to vector<64x128xf32>
    %42 = arith.addf %39, %41 : vector<64x128xf32>
    %c0_22 = arith.constant 0 : index
    %c0_23 = arith.constant 0 : index
    %43 = vector.load %arg10[%c0_22, %c0_23] : memref<32x128xf32, #tpu.memory_space<vmem>>, vector<32x128xf32>
    %44 = arith.truncf %43 : vector<32x128xf32> to vector<32x128xbf16>
    %cst_24 = arith.constant dense<0.000000e+00> : vector<64x128xf32>
    %45 = tpu.matmul %36, %44, %cst_24 {dimension_numbers = #tpu.dot_dimension_numbers<[1], [0], [0], [1], [0, 0, 1, 1], [], []>} : vector<64x32xbf16>, vector<32x128xbf16>, vector<64x128xf32> -> vector<64x128xf32>
    %c0_25 = arith.constant 0 : index
    %c0_26 = arith.constant 0 : index
    %46 = vector.load %arg11[%c0_25, %c0_26] : memref<1x128xf32, #tpu.memory_space<vmem>>, vector<1x128xf32>
    %47 = vector.broadcast %46 : vector<1x128xf32> to vector<64x128xf32>
    %48 = arith.addf %45, %47 : vector<64x128xf32>
    %49 = arith.mulf %48, %48 : vector<64x128xf32>
    %50 = arith.mulf %48, %49 : vector<64x128xf32>
    %cst_27 = arith.constant 4.471500e-02 : f32
    %51 = vector.broadcast %cst_27 : f32 to vector<64x128xf32>
    %52 = arith.mulf %51, %50 : vector<64x128xf32>
    %53 = arith.addf %48, %52 : vector<64x128xf32>
    %cst_28 = arith.constant 0.797884583 : f32
    %54 = vector.broadcast %cst_28 : f32 to vector<64x128xf32>
    %55 = arith.mulf %54, %53 : vector<64x128xf32>
    %56 = math.tanh %55 : vector<64x128xf32>
    %cst_29 = arith.constant 1.000000e+00 : f32
    %57 = vector.broadcast %cst_29 : f32 to vector<64x128xf32>
    %58 = arith.addf %57, %56 : vector<64x128xf32>
    %cst_30 = arith.constant 5.000000e-01 : f32
    %59 = vector.broadcast %cst_30 : f32 to vector<64x128xf32>
    %60 = arith.mulf %59, %58 : vector<64x128xf32>
    %61 = arith.mulf %48, %60 : vector<64x128xf32>
    %62 = arith.mulf %42, %61 : vector<64x128xf32>
    %63 = arith.truncf %62 : vector<64x128xf32> to vector<64x128xbf16>
    %c0_31 = arith.constant 0 : index
    %c0_32 = arith.constant 0 : index
    %64 = vector.load %arg12[%c0_31, %c0_32] : memref<128x32xf32, #tpu.memory_space<vmem>>, vector<128x32xf32>
    %65 = arith.truncf %64 : vector<128x32xf32> to vector<128x32xbf16>
    %cst_33 = arith.constant dense<0.000000e+00> : vector<64x32xf32>
    %66 = tpu.matmul %63, %65, %cst_33 {dimension_numbers = #tpu.dot_dimension_numbers<[1], [0], [0], [1], [0, 0, 1, 1], [], []>} : vector<64x128xbf16>, vector<128x32xbf16>, vector<64x32xf32> -> vector<64x32xf32>
    %c0_34 = arith.constant 0 : index
    %c0_35 = arith.constant 0 : index
    %67 = vector.load %arg13[%c0_34, %c0_35] : memref<1x32xf32, #tpu.memory_space<vmem>>, vector<1x32xf32>
    %68 = vector.broadcast %67 : vector<1x32xf32> to vector<64x32xf32>
    %69 = arith.addf %66, %68 : vector<64x32xf32>
    %c0_36 = arith.constant 0 : index
    %c0_37 = arith.constant 0 : index
    %c0_38 = arith.constant 0 : index
    %70 = vector.load %arg7[%c0_36, %c0_37, %c0_38] : memref<1x1x32xf32, #tpu.memory_space<vmem>>, vector<1x1x32xf32>
    %71 = vector.shape_cast %70 : vector<1x1x32xf32> to vector<1x32xf32>
    %72 = vector.broadcast %71 : vector<1x32xf32> to vector<64x32xf32>
    %73 = arith.mulf %72, %69 : vector<64x32xf32>
    %74 = arith.addf %1, %73 : vector<64x32xf32>
    %c0_39 = arith.constant 0 : index
    %c0_40 = arith.constant 0 : index
    %c0_41 = arith.constant 0 : index
    %75 = vector.load %arg14[%c0_39, %c0_40, %c0_41] : memref<1x64x32xf32, #tpu.memory_space<vmem>>, vector<1x64x32xf32>
    %76 = vector.shape_cast %75 : vector<1x64x32xf32> to vector<64x32xf32>
    %77 = vector.shape_cast %74 : vector<64x32xf32> to vector<1x64x32xf32>
    tpu.vector_store %arg14[%c0_39, %c0_40, %c0_41], %77 {strides = array<i32>} : memref<1x64x32xf32, #tpu.memory_space<vmem>>, vector<1x64x32xf32>,
    return
  }
  func.func @transform_0(%arg0: i32, %arg1: i32) -> (i32, i32, i32) {
    %c0_i32 = arith.constant 0 : i32
    %c0_i32_0 = arith.constant 0 : i32
    return %arg0, %arg1, %c0_i32 : i32, i32, i32
  }
  func.func @transform_1(%arg0: i32, %arg1: i32) -> (i32, i32) {
    %c0_i32 = arith.constant 0 : i32
    %c0_i32_0 = arith.constant 0 : i32
    %c0_i32_1 = arith.constant 0 : i32
    return %c0_i32, %c0_i32_0 : i32, i32
  }
  func.func @transform_2(%arg0: i32, %arg1: i32) -> (i32, i32) {
    %c0_i32 = arith.constant 0 : i32
    %c0_i32_0 = arith.constant 0 : i32
    %c0_i32_1 = arith.constant 0 : i32
    return %c0_i32, %c0_i32_0 : i32, i32
  }
  func.func @transform_3(%arg0: i32, %arg1: i32) -> (i32, i32, i32) {
    %c0_i32 = arith.constant 0 : i32
    %c0_i32_0 = arith.constant 0 : i32
    %c0_i32_1 = arith.constant 0 : i32
    return %arg0, %c0_i32, %c0_i32_0 : i32, i32, i32
  }
  func.func @transform_4(%arg0: i32, %arg1: i32) -> (i32, i32, i32) {
    %c0_i32 = arith.constant 0 : i32
    %c0_i32_0 = arith.constant 0 : i32
    %c0_i32_1 = arith.constant 0 : i32
    return %arg0, %c0_i32, %c0_i32_0 : i32, i32, i32
  }
  func.func @transform_5(%arg0: i32, %arg1: i32) -> (i32, i32, i32) {
    %c0_i32 = arith.constant 0 : i32
    %c0_i32_0 = arith.constant 0 : i32
    %c0_i32_1 = arith.constant 0 : i32
    return %arg0, %c0_i32, %c0_i32_0 : i32, i32, i32
  }
  func.func @transform_6(%arg0: i32, %arg1: i32) -> (i32, i32) {
    %c0_i32 = arith.constant 0 : i32
    %c0_i32_0 = arith.constant 0 : i32
    %c0_i32_1 = arith.constant 0 : i32
    return %c0_i32, %c0_i32_0 : i32, i32
  }
  func.func @transform_7(%arg0: i32, %arg1: i32) -> (i32, i32) {
    %c0_i32 = arith.constant 0 : i32
    %c0_i32_0 = arith.constant 0 : i32
    %c0_i32_1 = arith.constant 0 : i32
    return %c0_i32, %c0_i32_0 : i32, i32
  }
  func.func @transform_8(%arg0: i32, %arg1: i32) -> (i32, i32) {
    %c0_i32 = arith.constant 0 : i32
    %c0_i32_0 = arith.constant 0 : i32
    %c0_i32_1 = arith.constant 0 : i32
    return %c0_i32, %c0_i32_0 : i32, i32
  }
  func.func @transform_9(%arg0: i32, %arg1: i32) -> (i32, i32) {
    %c0_i32 = arith.constant 0 : i32
    %c0_i32_0 = arith.constant 0 : i32
    %c0_i32_1 = arith.constant 0 : i32
    return %c0_i32, %c0_i32_0 : i32, i32
  }
  func.func @transform_10(%arg0: i32, %arg1: i32) -> (i32, i32) {
    %c0_i32 = arith.constant 0 : i32
    %c0_i32_0 = arith.constant 0 : i32
    %c0_i32_1 = arith.constant 0 : i32
    return %c0_i32, %c0_i32_0 : i32, i32
  }
  func.func @transform_11(%arg0: i32, %arg1: i32) -> (i32, i32) {
    %c0_i32 = arith.constant 0 : i32
    %c0_i32_0 = arith.constant 0 : i32
    %c0_i32_1 = arith.constant 0 : i32
    return %c0_i32, %c0_i32_0 : i32, i32
  }
  func.func @transform_12(%arg0: i32, %arg1: i32) -> (i32, i32, i32) {
    %c0_i32 = arith.constant 0 : i32
    %c0_i32_0 = arith.constant 0 : i32
    return %arg0, %arg1, %c0_i32 : i32, i32, i32
  }
}

</mosaic_0001>

<bundles_post_ra>
// kernel: st_basic_transformer_block.3
= control target key start
LH: loop header
LB: loop body
LE: loop exit
PB: predicated region body
PF: predicated region fallthrough
CT: control target
= control target key end

     0   :  { %s1458_s30 = smov 0   ;;  %s1460_s10 = smov 0   ;;  %s1673_s0 = inlined_call_operand.vmem [shape: f32[2,4,16,32], index: 0, kind: input, shape index: {}]   ;;  %s1674_s1 = inlined_call_operand.vmem [shape: f32[2,1,32], index: 1, kind: input, shape index: {}]   ;;  %s1675_s2 = inlined_call_operand.vmem [shape: f32[2,1,32], index: 2, kind: input, shape index: {}]   ;;  %s1676_s3 = inlined_call_operand.vmem [shape: f32[2,1,32], index: 3, kind: input, shape index: {}]   ;;  %s1677_s4 = inlined_call_operand.vmem [shape: f32[32,32], index: 4, kind: input, shape index: {}]   ;;  %s1678_s5 = inlined_call_operand.vmem [shape: f32[32,32], index: 5, kind: input, shape index: {}]   ;;  %s1679_s6 = inlined_call_operand.vmem [shape: f32[32,32], index: 6, kind: input, shape index: {}]   ;;  %s1680_s7 = inlined_call_operand.vmem [shape: f32[32,32], index: 7, kind: input, shape index: {}]   ;;  %s1681_s8 = inlined_call_operand.vmem [shape: f32[1,32], index: 8, kind: input, shape index: {}]   ;;  %s1682_s9 = inlined_call_operand.vmem [shape: f32[2,4,16,32], index: 9, kind: output, shape index: {}]  }
   0x1   :  { %s1462_s11 = smov 0   ;;  %s1464_s12 = smov 0  }
   0x2   :  { %s1466_s13 = smov 0  }
   0x3 LB: > { %s34_s14 = sadd.s32 1, %s1394_s11  ;;  %s38_s15 = sadd.s32 1, %s1398_s12  ;;  %s1402_s13 = sphi %s1466_s13, %s19_s13   ;;  %s1398_s12 = sphi %s1464_s12, %s1686_s12   ;;  %s1394_s11 = sphi %s1462_s11, %s1685_s11   ;;  %s1390_s10 = sphi %s1460_s10, %s1684_s10   ;;  %s1386_s30 = sphi %s1458_s30, %s1683_s30  }
   0x4   : > { %p36_p0 = scmp.ge.s32.totalorder %s34_s14, 4  ;;  %p1183_p1 = scmp.ge.s32.totalorder %s1402_s13, 1 }
   0x5   : > { %p340_p2 = scmp.lt.s32.totalorder %s1402_s13, 9 }
   0x6   : > { %s1688_s14 = smov (%p36_p0, %s34_s14), 0  ;;  %s1690_s15 = smov (!%p36_p0, %s38_s15), %s1398_s12 }
   0x7   : > { %p341_p3 = pnand %p1183_p1, %p340_p2  ;;  %p40_p4 = scmp.ge.s32.totalorder %s1690_s15, 2 }
   0x8   : > { %p397_p5 = scmp.lt.s32.totalorder (!%p341_p3), %s1390_s10, 1  ;;  %p399_p6 = scmp.lt.s32.totalorder (!%p341_p3), %s1386_s30, 3 }
   0x9   : > { %s1692_s15 = smov (%p40_p4, %s1690_s15), 0  ;;  %344 = sbr.rel (%p341_p3) target bundleno = 1698 (0x6a2), region = 56 }
   0xa   : > { %s1406_s27 = smov (!%p341_p3), 112   ;;  %s1407_s23 = smov (!%p341_p3), 16  }
   0xe   : > { %s1694_s10 = smov (!%p397_p5, %s1390_s10), 1  ;;  %s1696_s30 = smov (!%p399_p6, %s1386_s30), 3  ;;  %vm439_vm0 = vcmask 261120   ;;  %v487_v24 = vld [vmem:[%s1678_s5 + $0x10] sm:$0xff]  ;;  %v488_v25 = vld [vmem:[%s1678_s5 + $0x18] sm:$0xff]  ;;  %v1404_v29 = vmov 0.0   ;;  %v469_v46 = vlaneseq }
   0xf   : > { %s1185_s16 = sshll.u32 %s1694_s10, 3  ;;  %s1184_s17 = sshll.u32 %s1696_s30, 1  ;;  %v548_v26 = vld [vmem:[%s1679_s6 + $0x10] sm:$0xff]  ;;  %v490_v27 = vpack.c.bf16 %v488_v25, %v487_v24  ;;  %v549_v28 = vld [vmem:[%s1679_s6 + $0x18] sm:$0xff]  ;;  %1233 = vmatprep.subr.bf16.mxu0 %v1404_v29  ;;  %1241 = vmatprep.subr.bf16.mxu1 %v1404_v29  ;;  %v485_v31 = vld [vmem:[%s1678_s5] sm:$0xff]  ;;  %vm1405_vm1 = vmmov 0  }
  0x10   : > { %s1491_s18 = sadd.s32 %s1185_s16, %s1184_s17  ;;  %v551_v30 = vpack.c.bf16 %v549_v28, %v548_v26  ;;  %v486_v32 = vld [vmem:[%s1678_s5 + $0x8] sm:$0xff]  ;;  %v546_v33 = vld [vmem:[%s1679_s6] sm:$0xff]  ;;  %1237 = vmatprep.mubr.msk.bf16.mxu0 %vm1405_vm1, %v1404_v29  ;;  %1245 = vmatprep.mubr.msk.bf16.mxu1 %vm1405_vm1, %v1404_v29  ;;  %s411_s28 = scalar_lea.vmem %s1675_s2, %s1694_s10  ;;  %v470_v50 = vshrl.u32 %v469_v46, 7  ;;  %v655_v63 = vld [vmem:[%s1677_s4 + $0x10] sm:$0xff]  ;;  %vm543_vm2 = vcmask 257024   ;;  %vm715_vm3 = vcmask 130048  }
  0x11   : > { %s1186_s19 = sshll.u32 %s1491_s18, 3  ;;  %1234 = vmatpush3.bf16.msra.mxu0 %v490_v27  ;;  %v489_v34 = vpack.c.bf16 %v486_v32, %v485_v31  ;;  %v547_v35 = vld [vmem:[%s1679_s6 + $0x8] sm:$0xff]  ;;  %v431_v51 = vld [vmem:[%s411_s28] sm:$0x1]  ;;  %s408_s16 = scalar_lea.vmem %s1674_s1, %s1694_s10 }
  0x12   : > { %s405_s22 = scalar_lea.vmem %s1673_s0, %s1186_s19  ;;  %1242 = vmatpush3.bf16.msra.mxu1 %v551_v30  ;;  %1235 = vmatprep.subr.bf16.mxu0 %v1404_v29  ;;  %v550_v36 = vpack.c.bf16 %v547_v35, %v546_v33  ;;  %v467_v52 = vadd.f32 1.0, %v431_v51  ;;  %v471_v53 = vsub.s32 0, %v470_v50  ;;  %v1212_v61 = vld [vmem:[%s408_s16] ss:$0 sm:$0xff]  ;;  %s414_s26 = scalar_lea.vmem %s1676_s3, %s1694_s10 }
  0x13   : > { %v1499_v0 = vld [vmem:[%s405_s22] sm:$0xff]  ;;  %v1501_v1 = vld [vmem:[%s405_s22 + $0x8] sm:$0xff]  ;;  %1243 = vmatprep.subr.bf16.mxu1 %v1404_v29  ;;  %s427_s16 = scalar_lea.vmem %s1682_s9, %s1186_s19 }
  0x14   : > { %v440_v2 = vsel %vm439_vm0, %v1499_v0, 0.0  ;;  %v443_v3 = vsel %vm439_vm0, %v1501_v1, 0.0  ;;  %v472_v56 = vrot.slane %v467_v52, %v471_v53 }
  0x15   : > { %441 = vadd.xlane.f32.xlu0 %v440_v2  ;;  %609 = vadd.xlane.f32.xlu1 %v440_v2  ;;  %v656_v2 = vld [vmem:[%s1677_s4 + $0x18] sm:$0xff] }
  0x16   : > { %1236 = vmatpush3.bf16.msra.mxu0 %v489_v34  ;;  %1244 = vmatpush3.bf16.msra.mxu1 %v550_v36 }
  0x17   : > { %1249 = vmatprep.subr.bf16.mxu0 %v1404_v29  ;;  %1257 = vmatprep.subr.bf16.mxu1 %v1404_v29 }
  0x19   : > { %444 = vadd.xlane.f32.xlu0 %v443_v3  ;;  %612 = vadd.xlane.f32.xlu1 %v443_v3 }
  0x9e   : > { %v442_v4 = vpop.xlane.xlu0 %441  ;;  %v610_v5 = vpop.xlane.xlu1 %609 }
  0x9f   : > { %v447_v6 = vmul.f32 0.03125, %v442_v4  ;;  %v615_v7 = vmul.f32 0.03125, %v610_v5 }
  0xa1   : > { %v1508_v8 = vsub.f32 %v1499_v0, %v447_v6  ;;  %v1511_v9 = vsub.f32 %v1499_v0, %v615_v7 }
  0xa2   : > { %v445_v10 = vpop.xlane.xlu0 %444  ;;  %v613_v11 = vpop.xlane.xlu1 %612 }
  0xa3   : > { %v448_v12 = vmul.f32 0.03125, %v445_v10  ;;  %v616_v13 = vmul.f32 0.03125, %v613_v11  ;;  %v451_v14 = vmul.f32 %v1508_v8, %v1508_v8  ;;  %v619_v15 = vmul.f32 %v1511_v9, %v1511_v9  ;;  %v653_v11 = vld [vmem:[%s1677_s4] sm:$0xff] }
  0xa5   : > { %v1518_v16 = vsub.f32 %v1501_v1, %v448_v12  ;;  %v1521_v17 = vsub.f32 %v1501_v1, %v616_v13  ;;  %v453_v18 = vsel %vm439_vm0, %v451_v14, 0.0  ;;  %v621_v19 = vsel %vm439_vm0, %v619_v15, 0.0  ;;  %v654_v12 = vld [vmem:[%s1677_s4 + $0x8] sm:$0xff] }
  0xa6   : > { %454 = vadd.xlane.f32.xlu0 %v453_v18  ;;  %v657_v14 = vpack.c.bf16 %v654_v12, %v653_v11 }
  0xa7   : > { %v452_v20 = vmul.f32 %v1518_v16, %v1518_v16  ;;  %v620_v21 = vmul.f32 %v1521_v17, %v1521_v17 }
  0xa9   : > { %v456_v22 = vsel %vm439_vm0, %v452_v20, 0.0  ;;  %v624_v23 = vsel %vm439_vm0, %v620_v21, 0.0 }
  0xaa   : > { %622 = vadd.xlane.f32.xlu0 %v621_v19  ;;  %457 = vadd.xlane.f32.xlu1 %v456_v22 }
  0xae   : > { %625 = vadd.xlane.f32.xlu1 %v624_v23 }
 0x12f   : > { %v455_v37 = vpop.xlane.xlu0 %454 }
 0x130   : > { %v459_v38 = vmul.f32 0.03125, %v455_v37 }
 0x132   : > { %v461_v39 = vadd.f32 1e-05, %v459_v38 }
 0x133   : > { %v458_v40 = vpop.xlane.xlu1 %457  ;;  %v623_v41 = vpop.xlane.xlu0 %622 }
 0x134   : > { %1340 = vrsqrt.f32 %v461_v39  ;;  %v460_v42 = vmul.f32 0.03125, %v458_v40  ;;  %v627_v43 = vmul.f32 0.03125, %v623_v41 }
 0x136   : > { %v462_v44 = vadd.f32 1e-05, %v460_v42  ;;  %v629_v45 = vadd.f32 1e-05, %v627_v43 }
 0x137   : > { %v626_v47 = vpop.xlane.xlu1 %625 }
 0x138   : > { %1342 = vrsqrt.f32 %v462_v44  ;;  %v628_v48 = vmul.f32 0.03125, %v626_v47 }
 0x139   : > { %1344 = vrsqrt.f32 %v629_v45 }
 0x13a   : > { %v630_v49 = vadd.f32 1e-05, %v628_v48 }
 0x13c   : > { %1346 = vrsqrt.f32 %v630_v49 }
 0x141   : > { %v1341_v54 = vpop.eup %1340 }
 0x142   : > { %v465_v55 = vmul.f32 %v1341_v54, %v1508_v8  ;;  %v658_v8 = vpack.c.bf16 %v656_v2, %v655_v63 }
 0x144   : > { %v474_v59 = vmul.f32 %v472_v56, %v465_v55 }
 0x145   : > { %v1343_v57 = vpop.eup %1342 }
 0x146   : > { %v466_v58 = vmul.f32 %v1343_v57, %v1518_v16  ;;  %v1345_v60 = vpop.eup %1344  ;;  %v482_v6 = vadd.f32 %v1212_v61, %v474_v59 }
 0x147   : > { %v633_v4 = vmul.f32 %v1345_v60, %v1511_v9 }
 0x148   : > { %v475_v62 = vmul.f32 %v472_v56, %v466_v58 }
 0x149   : > { %v1347_v3 = vpop.eup %1346  ;;  %v642_v9 = vmul.f32 %v633_v4, %v472_v56 }
 0x14a   : > { %v634_v5 = vmul.f32 %v1347_v3, %v1521_v17  ;;  %v483_v7 = vadd.f32 %v1212_v61, %v475_v62 }
 0x14b   : > { %v650_v16 = vadd.f32 %v1212_v61, %v642_v9 }
 0x14c   : > { %v484_v10 = vpack.c.bf16 %v483_v7, %v482_v6  ;;  %v643_v13 = vmul.f32 %v634_v5, %v472_v56 }
 0x14e   : > { %1238 = vmatmul.mubr.msk.bf16.vlgmr.msra.gmra.mxu0 %vm439_vm0, %v484_v10  ;;  %1246 = vmatmul.mubr.msk.bf16.vlgmr.msra.gmra.mxu1 %vm439_vm0, %v484_v10  ;;  %v651_v15 = vadd.f32 %v1212_v61, %v643_v13 }
 0x14f   : > { %1250 = vmatpush3.bf16.msra.mxu0 %v658_v8  ;;  %1253 = vmatprep.mubr.msk.bf16.mxu0 %vm1405_vm1, %v1404_v29 }
 0x150   : > { %1251 = vmatprep.subr.bf16.mxu0 %v1404_v29  ;;  %1259 = vmatprep.mubr.msk.bf16.mxu1 %vm1405_vm1, %v1404_v29  ;;  %v652_v17 = vpack.c.bf16 %v651_v15, %v650_v16 }
 0x153   : > { %1252 = vmatpush3.bf16.msra.mxu0 %v657_v14 }
 0x154   : > { %1263 = vmatprep.subr.bf16.mxu0 %v1404_v29 }
 0x156   : > { %1254 = vmatmul.mubr.msk.bf16.vlgmr.msra.gmra.mxu0 %vm439_vm0, %v652_v17 }
 0x157   : > { %1265 = vmatprep.mubr.msk.bf16.mxu0 %vm1405_vm1, %v1404_v29 }
 0x20e   : > { %v528_v18 = vpop.f32.mrf.mxu0  ;;  %v586_v19 = vpop.f32.mrf.mxu1 }
 0x20f   : > { %v1208_v20 = vpack.c.bf16 %v528_v18, %v528_v18  ;;  %v1210_v21 = vpack.c.bf16 %v586_v19, %v586_v19 }
 0x210   : > { %v1239_v22 = vpop.f32.mrf.mxu0  ;;  %v1247_v23 = vpop.f32.mrf.mxu1 }
 0x211   : > { %544 = vst.msk [vmem:[#allocation2] sm:$0xf] %vm543_vm2, %v1208_v20  ;;  %601 = vst.msk [vmem:[#allocation3] sm:$0xf] %vm543_vm2, %v1210_v21 }
 0x212   : > { %v531_v24 = vpop.f32.mrf.mxu0  ;;  %v589_v25 = vpop.f32.mrf.mxu1 }
 0x213   : > { %v1209_v26 = vpack.c.bf16 %v531_v24, %v531_v24  ;;  %v1211_v27 = vpack.c.bf16 %v589_v25, %v589_v25 }
 0x214   : > { %v1240_v28 = vpop.f32.mrf.mxu0  ;;  %v1248_v30 = vpop.f32.mrf.mxu1 }
 0x215   : > { %545 = vst.msk [vmem:[#allocation2 + $0x4] sm:$0xf] %vm543_vm2, %v1209_v26  ;;  %602 = vst.msk [vmem:[#allocation3 + $0x4] sm:$0xf] %vm543_vm2, %v1211_v27  ;;  %v971_v30 = vld [vmem:[%s1680_s7 + $0x10] sm:$0xff] }
 0x216   : > { %v696_v31 = vpop.f32.mrf.mxu0 }
 0x217   : > { %v703_v34 = vmul.f32 0.25, %v696_v31  ;;  %v972_v31 = vld [vmem:[%s1680_s7 + $0x18] sm:$0xff] }
 0x218   : > { %v1255_v32 = vpop.f32.mrf.mxu0 }
 0x219   : > { %v974_v32 = vpack.c.bf16 %v972_v31, %v971_v30 }
 0x21a   : > { %v699_v33 = vpop.f32.mrf.mxu0 }
 0x21b   : > { %v704_v35 = vmul.f32 0.25, %v699_v33 }
 0x21c   : > { %v1256_v36 = vpop.f32.mrf.mxu0  ;;  %v1338_v37 = vld [vmem:[#allocation2] sm:$0xff]   ;;  %v1339_v39 = vld [vmem:[#allocation3] sm:$0xff]  }
 0x21d   : > { %v705_v38 = vpack.c.bf16 %v704_v35, %v703_v34  ;;  %839 = vrot.lane.b32.xlu0 %v1338_v37, %s1406_s27  ;;  %v720_v40 = vsel %vm715_vm3, %v1338_v37, 0  ;;  %1264 = vmatpush3.bf16.msra.mxu0 %v1339_v39  ;;  %v969_v37 = vld [vmem:[%s1680_s7] sm:$0xff] }
 0x21e   : > { %1258 = vmatpush3.bf16.xpose.msra.mxu1 %v720_v40  ;;  %1275 = vmatprep.subr.bf16.mxu0 %v1404_v29 }
 0x21f   : > { %837 = vrot.lane.b32.xlu1 %v705_v38, %s1406_s27  ;;  %1269 = vmatprep.subr.bf16.mxu1 %v1404_v29 }
 0x225   : > { %1260 = vmatmul.mubr.msk.bf16.vlgmr.msra.gmra.mxu1 %vm715_vm3, %v705_v38  ;;  %v970_v38 = vld [vmem:[%s1680_s7 + $0x8] sm:$0xff] }
 0x226   : > { %1271 = vmatprep.mubr.msk.bf16.mxu1 %vm1405_vm1, %v1404_v29 }
 0x28f   : > { %v840_v41 = vpop.permute.xlu0 %839 }
 0x290   : > { %v845_v42 = vsel %vm715_vm3, %v840_v41, 0 }
 0x291   : > { %1270 = vmatpush3.bf16.xpose.msra.mxu1 %v845_v42  ;;  %v838_v43 = vpop.permute.xlu1 %837 }
 0x292   : > { %1281 = vmatprep.subr.bf16.mxu1 %v1404_v29 }
 0x298   : > { %1272 = vmatmul.mubr.msk.bf16.vlgmr.msra.gmra.mxu1 %vm715_vm3, %v838_v43 }
 0x299   : > { %1285 = vmatprep.mubr.msk.bf16.mxu1 %vm1405_vm1, %v1404_v29  ;;  %1282 = vmatpush3.bf16.msra.mxu1 %v974_v32 }
 0x29a   : > { %1283 = vmatprep.subr.bf16.mxu1 %v1404_v29 }
 0x2e5   : > { %v756_v44 = vpop.f32.mrf.mxu1 }
 0x2e6   : > { %v763_v45 = vsel %vm715_vm3, %v756_v44, -inf }
 0x2e7   : > { %764 = vmax.xlane.f32.xlu1 %v763_v45  ;;  %v1261_v46 = vpop.f32.mrf.mxu1 }
 0x2e9   : > { %v759_v47 = vpop.f32.mrf.mxu1 }
 0x2ea   : > { %v766_v48 = vsel %vm715_vm3, %v759_v47, -inf }
 0x2eb   : > { %767 = vmax.xlane.f32.xlu0 %v766_v48  ;;  %v1262_v49 = vpop.f32.mrf.mxu1 }
 0x358   : > { %v881_v50 = vpop.f32.mrf.mxu1 }
 0x359   : > { %v888_v51 = vsel %vm715_vm3, %v881_v50, -inf }
 0x35a   : > { %889 = vmax.xlane.f32.xlu0 %v888_v51  ;;  %v1273_v52 = vpop.f32.mrf.mxu1  ;;  %v1205_v51 = vld [vmem:[%s414_s26] ss:$0 sm:$0xff] }
 0x35c   : > { %v884_v53 = vpop.f32.mrf.mxu1 }
 0x35d   : > { %v891_v54 = vsel %vm715_vm3, %v884_v53, -inf }
 0x35e   : > { %892 = vmax.xlane.f32.xlu1 %v891_v54  ;;  %v1274_v55 = vpop.f32.mrf.mxu1 }
 0x370   : > { %v765_v56 = vpop.xlane.xlu1 %764 }
 0x371   : > { %v769_v57 = vsub.f32 %v756_v44, %v765_v56 }
 0x373   : > { %v771_v58 = vmul.f32 1.442695, %v769_v57 }
 0x374   : > { %v768_v59 = vpop.xlane.xlu0 %767 }
 0x375   : > { %1348 = vpow2.f32 %v771_v58  ;;  %v770_v60 = vsub.f32 %v759_v47, %v768_v59 }
 0x377   : > { %v773_v61 = vmul.f32 1.442695, %v770_v60 }
 0x379   : > { %1350 = vpow2.f32 %v773_v61 }
 0x382   : > { %v1349_v62 = vpop.eup %1348 }
 0x383   : > { %v775_v63 = vsel %vm715_vm3, %v1349_v62, 0.0 }
 0x384   : > { %776 = vadd.xlane.f32.xlu0 %v775_v63 }
 0x386   : > { %v1351_v2 = vpop.eup %1350 }
 0x387   : > { %v778_v3 = vsel %vm715_vm3, %v1351_v2, 0.0 }
 0x388   : > { %779 = vadd.xlane.f32.xlu1 %v778_v3 }
 0x3e3   : > { %v890_v4 = vpop.xlane.xlu0 %889 }
 0x3e4   : > { %v894_v5 = vsub.f32 %v881_v50, %v890_v4  ;;  %v1203_v50 = vld [vmem:[%s1681_s8] ss:$0 sm:$0xff] }
 0x3e6   : > { %v896_v6 = vmul.f32 1.442695, %v894_v5 }
 0x3e7   : > { %v893_v7 = vpop.xlane.xlu1 %892 }
 0x3e8   : > { %1352 = vpow2.f32 %v896_v6  ;;  %v895_v8 = vsub.f32 %v884_v53, %v893_v7 }
 0x3ea   : > { %v898_v10 = vmul.f32 1.442695, %v895_v8 }
 0x3ec   : > { %1354 = vpow2.f32 %v898_v10 }
 0x3f5   : > { %v1353_v11 = vpop.eup %1352 }
 0x3f6   : > { %v900_v12 = vsel %vm715_vm3, %v1353_v11, 0.0 }
 0x3f7   : > { %901 = vadd.xlane.f32.xlu0 %v900_v12 }
 0x3f9   : > { %v1355_v13 = vpop.eup %1354 }
 0x3fa   : > { %v903_v9 = vsel %vm715_vm3, %v1355_v13, 0.0 }
 0x3fb   : > { %904 = vadd.xlane.f32.xlu1 %v903_v9 }
 0x40d   : > { %911 = vrot.lane.b32.xlu0 %v1339_v39, %s1406_s27  ;;  %v777_v14 = vpop.xlane.xlu0 %776  ;;  %v973_v39 = vpack.c.bf16 %v970_v38, %v969_v37 }
 0x40e   : > { %1356 = vrcp.f32 %v777_v14 }
 0x40f   : > { %1284 = vmatpush3.bf16.msra.mxu1 %v973_v39 }
 0x411   : > { %v780_v15 = vpop.xlane.xlu1 %779 }
 0x412   : > { %1358 = vrcp.f32 %v780_v15 }
 0x41b   : > { %v1357_v16 = vpop.eup %1356 }
 0x41c   : > { %v783_v18 = vmul.f32 %v1357_v16, %v1349_v62 }
 0x41f   : > { %v1359_v17 = vpop.eup %1358 }
 0x420   : > { %v784_v19 = vmul.f32 %v1359_v17, %v1351_v2 }
 0x422   : > { %v785_v20 = vpack.c.bf16 %v784_v19, %v783_v18 }
 0x424   : > { %1266 = vmatmul.mubr.msk.bf16.vlgmr.msra.gmra.mxu0 %vm715_vm3, %v785_v20 }
 0x425   : > { %1277 = vmatprep.mubr.msk.bf16.mxu0 %vm1405_vm1, %v1404_v29 }
 0x480   : > { %v902_v21 = vpop.xlane.xlu0 %901 }
 0x481   : > { %1360 = vrcp.f32 %v902_v21 }
 0x484   : > { %v905_v22 = vpop.xlane.xlu1 %904  ;;  %v912_v23 = vpop.permute.xlu0 %911 }
 0x485   : > { %1362 = vrcp.f32 %v905_v22  ;;  %1276 = vmatpush3.bf16.msra.mxu0 %v912_v23 }
 0x48e   : > { %v1361_v24 = vpop.eup %1360 }
 0x48f   : > { %v908_v26 = vmul.f32 %v1361_v24, %v1353_v11 }
 0x492   : > { %v1363_v25 = vpop.eup %1362 }
 0x493   : > { %v909_v27 = vmul.f32 %v1363_v25, %v1355_v13 }
 0x495   : > { %v910_v28 = vpack.c.bf16 %v909_v27, %v908_v26 }
 0x497   : > { %1278 = vmatmul.mubr.msk.bf16.vlgmr.msra.gmra.mxu0 %vm715_vm3, %v910_v28 }
 0x4e4   : > { %v829_v33 = vpop.f32.mrf.mxu0 }
 0x4e6   : > { %v1267_v34 = vpop.f32.mrf.mxu0 }
 0x4e8   : > { %v832_v35 = vpop.f32.mrf.mxu0 }
 0x4ea   : > { %v1268_v36 = vpop.f32.mrf.mxu0 }
 0x557   : > { %v951_v40 = vpop.f32.mrf.mxu0 }
 0x559   : > { %v1279_v41 = vpop.f32.mrf.mxu0 }
 0x55b   : > { %v954_v42 = vpop.f32.mrf.mxu0 }
 0x55c   : > { %v1333_v43 = vpack.i.bf16 %v954_v42, %v951_v40 }
 0x55d   : > { %v1280_v29 = vpop.f32.mrf.mxu0 }
 0x55e   : > { %1334 = vrot.lane.b32.xlu1 %v1333_v43, %s1407_s23 }
 0x5d0   : > { %v1335_v44 = vpop.permute.xlu1 %1334 }
 0x5d1   : > { %v1337_v45 = vunpack.i.h.bf16 %v1335_v44  ;;  %v1336_v46 = vunpack.i.l.bf16 %v1335_v44 }
 0x5d3   : > { %v967_v47 = vsel %vm715_vm3, %v832_v35, %v1337_v45  ;;  %v966_v48 = vsel %vm715_vm3, %v829_v33, %v1336_v46 }
 0x5d4   : > { %v968_v49 = vpack.c.bf16 %v967_v47, %v966_v48 }
 0x5d6   : > { %1286 = vmatmul.mubr.msk.bf16.vlgmr.msra.gmra.mxu1 %vm439_vm0, %v968_v49 }
 0x696   : > { %v1019_v52 = vpop.f32.mrf.mxu1 }
 0x697   : > { %v1020_v53 = vadd.f32 %v1203_v50, %v1019_v52 }
 0x698   : > { %v1287_v54 = vpop.f32.mrf.mxu1 }
 0x699   : > { %v1032_v55 = vmul.f32 %v1205_v51, %v1020_v53 }
 0x69a   : > { %v1022_v56 = vpop.f32.mrf.mxu1 }
 0x69b   : > { %v1034_v57 = vadd.f32 %v1032_v55, %v1499_v0  ;;  %v1023_v58 = vadd.f32 %v1203_v50, %v1022_v56 }
 0x69c   : > { %v1288_v59 = vpop.f32.mrf.mxu1 }
 0x69d   : > { %1036 = vst.msk [vmem:[%s427_s16] sm:$0xff] %vm439_vm0, %v1034_v57  ;;  %v1033_v60 = vmul.f32 %v1205_v51, %v1023_v58 }
 0x69f   : > { %v1035_v61 = vadd.f32 %v1033_v60, %v1501_v1 }
 0x6a1   : > { %1037 = vst.msk [vmem:[%s427_s16 + $0x8] sm:$0xff] %vm439_vm0, %v1035_v61 }
 0x6a2 PF: > { %s19_s13 = sadd.s32 1, %s1402_s13   ;;  %s1683_s30 = smov %s1394_s11 }
 0x6a3   : > { %p16_p7 = scmp.ge.s32.totalorder %s19_s13, 10   ;;  %s1684_s10 = smov %s1398_s12 }
 0x6a4   : > { %s1685_s11 = smov %s1688_s14  ;;  %s1686_s12 = smov %s1692_s15 }
 0x6a5   :  { %18 = sbr.rel (!%p16_p7) target bundleno = 3 (0x3), region = 100 }

// kernel: st_basic_transformer_block.5
= control target key start
LH: loop header
LB: loop body
LE: loop exit
PB: predicated region body
PF: predicated region fallthrough
CT: control target
= control target key end

     0   :  { %s1413_s21 = smov 0   ;;  %s1415_s22 = smov 0   ;;  %s1758_s0 = inlined_call_operand.vmem [shape: f32[2,64,32], index: 0, kind: input, shape index: {}, may-alias: {0,12}]   ;;  %s1759_s1 = inlined_call_operand.vmem [shape: f32[1,32], index: 1, kind: input, shape index: {}]   ;;  %s1760_s2 = inlined_call_operand.vmem [shape: f32[1,32], index: 2, kind: input, shape index: {}]   ;;  %s1761_s3 = inlined_call_operand.vmem [shape: f32[2,1,32], index: 3, kind: input, shape index: {}]   ;;  %s1762_s4 = inlined_call_operand.vmem [shape: f32[2,1,32], index: 4, kind: input, shape index: {}]   ;;  %s1763_s5 = inlined_call_operand.vmem [shape: f32[2,1,32], index: 5, kind: input, shape index: {}]   ;;  %s1764_s6 = inlined_call_operand.vmem [shape: f32[32,128], index: 6, kind: input, shape index: {}]   ;;  %s1765_s7 = inlined_call_operand.vmem [shape: f32[1,128], index: 7, kind: input, shape index: {}]   ;;  %s1766_s8 = inlined_call_operand.vmem [shape: f32[32,128], index: 8, kind: input, shape index: {}]   ;;  %s1767_s9 = inlined_call_operand.vmem [shape: f32[1,128], index: 9, kind: input, shape index: {}]   ;;  %s1768_s10 = inlined_call_operand.vmem [shape: f32[128,32], index: 10, kind: input, shape index: {}]   ;;  %s1769_s11 = inlined_call_operand.vmem [shape: f32[1,32], index: 11, kind: input, shape index: {}]   ;;  %s1770_s12 = inlined_call_operand.vmem [shape: f32[2,64,32], index: 12, kind: output, shape index: {}, may-alias: {0,12}]  }
   0x1   :  { %s1417_s23 = smov 0  }
   0x2 LB: > { %s34_s24 = sadd.s32 1, %s1342_s22  ;;  %p1172_p0 = scmp.ge.s32.totalorder %s1346_s23, 1  ;;  %s1346_s23 = sphi %s1417_s23, %s22_s23   ;;  %s1342_s22 = sphi %s1415_s22, %s1772_s22   ;;  %s1338_s21 = sphi %s1413_s21, %s1771_s21  }
   0x3   : > { %p36_p1 = scmp.ge.s32.totalorder %s34_s24, 2  ;;  %p407_p2 = scmp.lt.s32.totalorder %s1346_s23, 3 }
   0x5   : > { %s1774_s24 = smov (%p36_p1, %s34_s24), 0  ;;  %p408_p3 = pnand %p1172_p0, %p407_p2 }
   0x6   : > { %p467_p4 = scmp.lt.s32.totalorder (!%p408_p3), %s1338_s21, 1 }
   0x7   : > { %411 = sbr.rel (%p408_p3) target bundleno = 804 (0x324), region = 68 }
   0xc   : > { %s1776_s21 = smov (!%p467_p4, %s1338_s21), 1  ;;  %vm504_vm0 = vcmask 261120   ;;  %v677_v56 = vld [vmem:[%s1764_s6 + $0x10] sm:$0xff]  ;;  %v678_v57 = vld [vmem:[%s1764_s6 + $0x18] sm:$0xff]  ;;  %v675_v59 = vld [vmem:[%s1764_s6] sm:$0xff] }
   0xd   : > { %s1194_s25 = sshll.u32 %s1776_s21, 6  ;;  %v680_v58 = vpack.c.bf16 %v678_v57, %v677_v56  ;;  %v676_v60 = vld [vmem:[%s1764_s6 + $0x8] sm:$0xff]  ;;  %v767_v62 = vld [vmem:[%s1766_s8 + $0x10] sm:$0xff]  ;;  %v768_v63 = vld [vmem:[%s1766_s8 + $0x18] sm:$0xff]  ;;  %s481_s30 = scalar_lea.vmem %s1762_s4, %s1776_s21 }
   0xe   : > { %s474_s28 = scalar_lea.vmem %s1758_s0, %s1194_s25  ;;  %v679_v61 = vpack.c.bf16 %v676_v60, %v675_v59  ;;  %s478_s19 = scalar_lea.vmem %s1761_s3, %s1776_s21 }
   0xf   : > { %v1439_v0 = vld [vmem:[%s474_s28] sm:$0xff]  ;;  %v1441_v1 = vld [vmem:[%s474_s28 + $0x10] sm:$0xff]  ;;  %v1443_v2 = vld [vmem:[%s474_s28 + $0x8] sm:$0xff]  ;;  %1220 = vmatprep.subr.bf16.mxu1 %v680_v58  ;;  %s1723_s15 = scalar_lea.vmem %s1770_s12, %s1194_s25 }
  0x10   : > { %v505_v3 = vsel %vm504_vm0, %v1439_v0, 0.0  ;;  %v511_v4 = vsel %vm504_vm0, %v1441_v1, 0.0  ;;  %v1449_v5 = vld [vmem:[%s474_s28 + $0x18] sm:$0xff]  ;;  %v508_v6 = vsel %vm504_vm0, %v1443_v2, 0.0  ;;  %v1455_v8 = vld [vmem:[%s474_s28 + $0x20] sm:$0xff]  ;;  %v1457_v9 = vld [vmem:[%s474_s28 + $0x28] sm:$0xff]  ;;  %1221 = vmatpush3.bf16.msra.mxu1 %v680_v58 }
  0x11   : > { %506 = vadd.xlane.f32.xlu0 %v505_v3  ;;  %512 = vadd.xlane.f32.xlu1 %v511_v4  ;;  %v514_v7 = vsel %vm504_vm0, %v1449_v5, 0.0  ;;  %v517_v10 = vsel %vm504_vm0, %v1455_v8, 0.0  ;;  %v520_v11 = vsel %vm504_vm0, %v1457_v9, 0.0  ;;  %v1463_v12 = vld [vmem:[%s474_s28 + $0x30] sm:$0xff]  ;;  %v1465_v13 = vld [vmem:[%s474_s28 + $0x38] sm:$0xff]  ;;  %v1537_v3 = vpack.c.bf16 %v768_v63, %v767_v62  ;;  %s484_s28 = scalar_lea.vmem %s1763_s5, %s1776_s21 }
  0x12   : > { %v523_v14 = vsel %vm504_vm0, %v1463_v12, 0.0  ;;  %v526_v15 = vsel %vm504_vm0, %v1465_v13, 0.0  ;;  %1222 = vmatprep.subr.bf16.mxu1 %v679_v61 }
  0x14   : > { %1223 = vmatpush3.bf16.msra.mxu1 %v679_v61 }
  0x15   : > { %509 = vadd.xlane.f32.xlu0 %v508_v6  ;;  %515 = vadd.xlane.f32.xlu1 %v514_v7 }
  0x16   : > { %1232 = vmatprep.subr.bf16.mxu1 %v1537_v3 }
  0x19   : > { %518 = vadd.xlane.f32.xlu0 %v517_v10  ;;  %521 = vadd.xlane.f32.xlu1 %v520_v11 }
  0x1d   : > { %524 = vadd.xlane.f32.xlu0 %v523_v14  ;;  %527 = vadd.xlane.f32.xlu1 %v526_v15 }
  0x9a   : > { %v507_v16 = vpop.xlane.xlu0 %506  ;;  %v513_v17 = vpop.xlane.xlu1 %512 }
  0x9b   : > { %v530_v18 = vmul.f32 0.03125, %v507_v16  ;;  %v532_v19 = vmul.f32 0.03125, %v513_v17 }
  0x9d   : > { %v1472_v20 = vsub.f32 %v1439_v0, %v530_v18  ;;  %v1475_v21 = vsub.f32 %v1441_v1, %v532_v19 }
  0x9e   : > { %v510_v22 = vpop.xlane.xlu0 %509  ;;  %v516_v23 = vpop.xlane.xlu1 %515 }
  0x9f   : > { %v531_v24 = vmul.f32 0.03125, %v510_v22  ;;  %v533_v25 = vmul.f32 0.03125, %v516_v23  ;;  %v546_v26 = vmul.f32 %v1472_v20, %v1472_v20  ;;  %v548_v27 = vmul.f32 %v1475_v21, %v1475_v21 }
  0xa1   : > { %v1482_v28 = vsub.f32 %v1443_v2, %v531_v24  ;;  %v1485_v29 = vsub.f32 %v1449_v5, %v533_v25  ;;  %v554_v30 = vsel %vm504_vm0, %v546_v26, 0.0  ;;  %v560_v33 = vsel %vm504_vm0, %v548_v27, 0.0 }
  0xa2   : > { %555 = vadd.xlane.f32.xlu0 %v554_v30  ;;  %v519_v31 = vpop.xlane.xlu0 %518  ;;  %v522_v32 = vpop.xlane.xlu1 %521  ;;  %v643_v26 = vlaneseq }
  0xa3   : > { %v534_v34 = vmul.f32 0.03125, %v519_v31  ;;  %v535_v35 = vmul.f32 0.03125, %v522_v32  ;;  %v547_v36 = vmul.f32 %v1482_v28, %v1482_v28  ;;  %v549_v37 = vmul.f32 %v1485_v29, %v1485_v29 }
  0xa5   : > { %v1494_v38 = vsub.f32 %v1455_v8, %v534_v34  ;;  %v1497_v39 = vsub.f32 %v1457_v9, %v535_v35  ;;  %v557_v40 = vsel %vm504_vm0, %v547_v36, 0.0  ;;  %v563_v43 = vsel %vm504_vm0, %v549_v37, 0.0  ;;  %v640_v37 = vld [vmem:[%s481_s30] sm:$0x1] }
  0xa6   : > { %561 = vadd.xlane.f32.xlu0 %v560_v33  ;;  %558 = vadd.xlane.f32.xlu1 %v557_v40  ;;  %v525_v41 = vpop.xlane.xlu0 %524  ;;  %v528_v42 = vpop.xlane.xlu1 %527  ;;  %v644_v35 = vshrl.u32 %v643_v26, 7  ;;  %v765_v26 = vld [vmem:[%s1766_s8] sm:$0xff] }
  0xa7   : > { %v536_v44 = vmul.f32 0.03125, %v525_v41  ;;  %v537_v45 = vmul.f32 0.03125, %v528_v42  ;;  %v550_v46 = vmul.f32 %v1494_v38, %v1494_v38  ;;  %v551_v47 = vmul.f32 %v1497_v39, %v1497_v39  ;;  %v1177_v42 = vld [vmem:[%s1759_s1] ss:$0 sm:$0xff] }
  0xa9   : > { %v1506_v48 = vsub.f32 %v1463_v12, %v536_v44  ;;  %v1509_v49 = vsub.f32 %v1465_v13, %v537_v45  ;;  %v566_v50 = vsel %vm504_vm0, %v550_v46, 0.0  ;;  %v569_v51 = vsel %vm504_vm0, %v551_v47, 0.0  ;;  %v1178_v47 = vld [vmem:[%s1760_s2] ss:$0 sm:$0xff] }
  0xaa   : > { %564 = vadd.xlane.f32.xlu1 %v563_v43  ;;  %567 = vadd.xlane.f32.xlu0 %v566_v50  ;;  %v641_v45 = vadd.f32 1.0, %v640_v37  ;;  %v645_v46 = vsub.s32 0, %v644_v35 }
  0xab   : > { %v552_v52 = vmul.f32 %v1506_v48, %v1506_v48  ;;  %v553_v53 = vmul.f32 %v1509_v49, %v1509_v49 }
  0xad   : > { %v572_v54 = vsel %vm504_vm0, %v552_v52, 0.0  ;;  %v575_v55 = vsel %vm504_vm0, %v553_v53, 0.0 }
  0xae   : > { %570 = vadd.xlane.f32.xlu1 %v569_v51  ;;  %573 = vadd.xlane.f32.xlu0 %v572_v54 }
  0xb2   : > { %576 = vadd.xlane.f32.xlu1 %v575_v55  ;;  %v646_v55 = vrot.slane %v641_v45, %v645_v46 }
 0x12b   : > { %v556_v4 = vpop.xlane.xlu0 %555 }
 0x12c   : > { %v578_v6 = vmul.f32 0.03125, %v556_v4  ;;  %v1179_v4 = vld [vmem:[%s478_s19] ss:$0 sm:$0xff] }
 0x12e   : > { %v586_v7 = vadd.f32 1e-05, %v578_v6 }
 0x12f   : > { %v559_v10 = vpop.xlane.xlu1 %558  ;;  %v562_v11 = vpop.xlane.xlu0 %561 }
 0x130   : > { %1292 = vrsqrt.f32 %v586_v7  ;;  %v579_v14 = vmul.f32 0.03125, %v559_v10  ;;  %v580_v15 = vmul.f32 0.03125, %v562_v11 }
 0x132   : > { %v587_v16 = vadd.f32 1e-05, %v579_v14  ;;  %v588_v17 = vadd.f32 1e-05, %v580_v15 }
 0x133   : > { %v565_v18 = vpop.xlane.xlu1 %564  ;;  %v568_v19 = vpop.xlane.xlu0 %567 }
 0x134   : > { %1294 = vrsqrt.f32 %v587_v16  ;;  %v581_v22 = vmul.f32 0.03125, %v565_v18  ;;  %v582_v23 = vmul.f32 0.03125, %v568_v19 }
 0x135   : > { %1296 = vrsqrt.f32 %v588_v17 }
 0x136   : > { %v589_v24 = vadd.f32 1e-05, %v581_v22  ;;  %v590_v25 = vadd.f32 1e-05, %v582_v23 }
 0x137   : > { %v571_v27 = vpop.xlane.xlu1 %570  ;;  %v574_v30 = vpop.xlane.xlu0 %573 }
 0x138   : > { %1298 = vrsqrt.f32 %v589_v24  ;;  %v583_v31 = vmul.f32 0.03125, %v571_v27  ;;  %v584_v32 = vmul.f32 0.03125, %v574_v30  ;;  %v766_v27 = vld [vmem:[%s1766_s8 + $0x8] sm:$0xff] }
 0x139   : > { %1300 = vrsqrt.f32 %v590_v25 }
 0x13a   : > { %v591_v33 = vadd.f32 1e-05, %v583_v31  ;;  %v592_v34 = vadd.f32 1e-05, %v584_v32 }
 0x13b   : > { %v577_v36 = vpop.xlane.xlu1 %576 }
 0x13c   : > { %1302 = vrsqrt.f32 %v591_v33  ;;  %v585_v40 = vmul.f32 0.03125, %v577_v36  ;;  %v769_v36 = vpack.c.bf16 %v766_v27, %v765_v26 }
 0x13d   : > { %v1293_v41 = vpop.eup %1292  ;;  %1304 = vrsqrt.f32 %v592_v34 }
 0x13e   : > { %v593_v43 = vadd.f32 1e-05, %v585_v40  ;;  %v602_v44 = vmul.f32 %v1293_v41, %v1472_v20 }
 0x140   : > { %1306 = vrsqrt.f32 %v593_v43  ;;  %v617_v50 = vmul.f32 %v1177_v42, %v602_v44 }
 0x141   : > { %v1295_v51 = vpop.eup %1294 }
 0x142   : > { %v1297_v52 = vpop.eup %1296  ;;  %v603_v53 = vmul.f32 %v1295_v51, %v1482_v28  ;;  %v632_v54 = vadd.f32 %v1178_v47, %v617_v50 }
 0x143   : > { %v604_v56 = vmul.f32 %v1297_v52, %v1475_v21  ;;  %v939_v52 = vld [vmem:[%s1768_s10 + $0x60] sm:$0xff] }
 0x144   : > { %v618_v20 = vmul.f32 %v1177_v42, %v603_v53  ;;  %v648_v62 = vmul.f32 %v646_v55, %v632_v54  ;;  %v940_v53 = vld [vmem:[%s1768_s10 + $0x68] sm:$0xff] }
 0x145   : > { %v1299_v57 = vpop.eup %1298  ;;  %v619_v58 = vmul.f32 %v1177_v42, %v604_v56  ;;  %v949_v54 = vpack.c.bf16 %v940_v53, %v939_v52  ;;  %v938_v56 = vld [vmem:[%s1768_s10 + $0x58] sm:$0xff] }
 0x146   : > { %v1301_v59 = vpop.eup %1300  ;;  %v605_v60 = vmul.f32 %v1299_v57, %v1485_v29  ;;  %v633_v61 = vadd.f32 %v1178_v47, %v618_v20  ;;  %v663_v16 = vadd.f32 %v1179_v4, %v648_v62  ;;  %v935_v57 = vld [vmem:[%s1768_s10 + $0x40] sm:$0xff] }
 0x147   : > { %v606_v63 = vmul.f32 %v1301_v59, %v1494_v38  ;;  %v634_v28 = vadd.f32 %v1178_v47, %v619_v58  ;;  %v936_v58 = vld [vmem:[%s1768_s10 + $0x48] sm:$0xff] }
 0x148   : > { %v649_v6 = vmul.f32 %v646_v55, %v633_v61  ;;  %v620_v7 = vmul.f32 %v1177_v42, %v605_v60  ;;  %v947_v59 = vpack.c.bf16 %v936_v58, %v935_v57  ;;  %v933_v60 = vld [vmem:[%s1768_s10 + $0x30] sm:$0xff]  ;;  %v934_v61 = vld [vmem:[%s1768_s10 + $0x38] sm:$0xff] }
 0x149   : > { %v1303_v10 = vpop.eup %1302  ;;  %v650_v21 = vmul.f32 %v646_v55, %v634_v28  ;;  %v621_v11 = vmul.f32 %v1177_v42, %v606_v63  ;;  %v946_v62 = vpack.c.bf16 %v934_v61, %v933_v60  ;;  %v931_v63 = vld [vmem:[%s1768_s10 + $0x20] sm:$0xff] }
 0x14a   : > { %v1305_v14 = vpop.eup %1304  ;;  %v607_v15 = vmul.f32 %v1303_v10, %v1497_v39  ;;  %v664_v17 = vadd.f32 %v1179_v4, %v649_v6  ;;  %v635_v18 = vadd.f32 %v1178_v47, %v620_v7  ;;  %v929_v6 = vld [vmem:[%s1768_s10 + $0x10] sm:$0xff]  ;;  %v930_v7 = vld [vmem:[%s1768_s10 + $0x18] sm:$0xff] }
 0x14b   : > { %v608_v19 = vmul.f32 %v1305_v14, %v1506_v48  ;;  %v636_v29 = vadd.f32 %v1178_v47, %v621_v11  ;;  %v665_v25 = vadd.f32 %v1179_v4, %v650_v21  ;;  %v944_v10 = vpack.c.bf16 %v930_v7, %v929_v6  ;;  %v927_v21 = vld [vmem:[%s1768_s10] sm:$0xff]  ;;  %v928_v11 = vld [vmem:[%s1768_s10 + $0x8] sm:$0xff] }
 0x14c   : > { %v671_v22 = vpack.c.bf16 %v664_v17, %v663_v16  ;;  %v651_v23 = vmul.f32 %v646_v55, %v635_v18  ;;  %v622_v24 = vmul.f32 %v1177_v42, %v607_v15  ;;  %v943_v14 = vpack.c.bf16 %v928_v11, %v927_v21 }
 0x14d   : > { %v1307_v38 = vpop.eup %1306  ;;  %v623_v39 = vmul.f32 %v1177_v42, %v608_v19  ;;  %v652_v32 = vmul.f32 %v646_v55, %v636_v29 }
 0x14e   : > { %v609_v30 = vmul.f32 %v1307_v38, %v1509_v49  ;;  %1224 = vmatprep.mubr.msk.bf16.mxu1 %vm504_vm0, %v671_v22  ;;  %v666_v48 = vadd.f32 %v1179_v4, %v651_v23  ;;  %v637_v31 = vadd.f32 %v1178_v47, %v622_v24  ;;  %v1185_v24 = vld [vmem:[%s1767_s9] ss:$0 sm:$0xff] }
 0x14f   : > { %v638_v33 = vadd.f32 %v1178_v47, %v623_v39  ;;  %v667_v40 = vadd.f32 %v1179_v4, %v652_v32 }
 0x150   : > { %v672_v34 = vpack.c.bf16 %v666_v48, %v665_v25  ;;  %v653_v35 = vmul.f32 %v646_v55, %v637_v31  ;;  %v624_v37 = vmul.f32 %v1177_v42, %v609_v30  ;;  %v942_v42 = vld [vmem:[%s1768_s10 + $0x78] sm:$0xff] }
 0x151   : > { %v654_v44 = vmul.f32 %v646_v55, %v638_v33 }
 0x152   : > { %1225 = vmatmul.mubr.msk.bf16.vlgmr.msra.gmra.mxu1 %vm504_vm0, %v672_v34  ;;  %v668_v41 = vadd.f32 %v1179_v4, %v653_v35  ;;  %v639_v43 = vadd.f32 %v1178_v47, %v624_v37 }
 0x153   : > { %1233 = vmatpush3.bf16.msra.mxu1 %v1537_v3  ;;  %v669_v46 = vadd.f32 %v1179_v4, %v654_v44  ;;  %v941_v3 = vld [vmem:[%s1768_s10 + $0x70] sm:$0xff] }
 0x154   : > { %v673_v45 = vpack.c.bf16 %v668_v41, %v667_v40  ;;  %1234 = vmatprep.subr.bf16.mxu1 %v769_v36  ;;  %v655_v49 = vmul.f32 %v646_v55, %v639_v43  ;;  %v950_v47 = vpack.c.bf16 %v942_v42, %v941_v3  ;;  %v937_v55 = vld [vmem:[%s1768_s10 + $0x50] sm:$0xff] }
 0x155   : > { %v948_v20 = vpack.c.bf16 %v938_v56, %v937_v55 }
 0x156   : > { %1228 = vmatprep.mubr.msk.bf16.mxu1 %vm504_vm0, %v673_v45  ;;  %v670_v50 = vadd.f32 %v1179_v4, %v655_v49  ;;  %1244 = vmatprep.subr.bf16.mxu0 %v950_v47  ;;  %v932_v4 = vld [vmem:[%s1768_s10 + $0x28] sm:$0xff] }
 0x157   : > { %1235 = vmatpush3.bf16.msra.mxu1 %v769_v36  ;;  %1245 = vmatpush3.bf16.msra.mxu0 %v950_v47  ;;  %v945_v28 = vpack.c.bf16 %v932_v4, %v931_v63 }
 0x158   : > { %v674_v51 = vpack.c.bf16 %v670_v50, %v669_v46  ;;  %1246 = vmatprep.subr.bf16.mxu0 %v949_v54 }
 0x15a   : > { %1229 = vmatmul.mubr.msk.bf16.gmra.mxu1 %vm504_vm0, %v674_v51 }
 0x15b   : > { %1236 = vmatprep.mubr.msk.bf16.mxu1 %vm504_vm0, %v671_v22  ;;  %1247 = vmatpush3.bf16.msra.mxu0 %v949_v54 }
 0x15c   : > { %1248 = vmatprep.subr.bf16.mxu0 %v948_v20 }
 0x15f   : > { %1249 = vmatpush3.bf16.msra.mxu0 %v948_v20 }
 0x160   : > { %1250 = vmatprep.subr.bf16.mxu0 %v947_v59 }
 0x162   : > { %1237 = vmatmul.mubr.msk.bf16.vlgmr.msra.gmra.mxu1 %vm504_vm0, %v672_v34 }
 0x163   : > { %1240 = vmatprep.mubr.msk.bf16.mxu1 %vm504_vm0, %v673_v45  ;;  %1251 = vmatpush3.bf16.msra.mxu0 %v947_v59 }
 0x164   : > { %1252 = vmatprep.subr.bf16.mxu0 %v946_v62 }
 0x167   : > { %1253 = vmatpush3.bf16.msra.mxu0 %v946_v62 }
 0x168   : > { %1254 = vmatprep.subr.bf16.mxu0 %v945_v28 }
 0x16a   : > { %1241 = vmatmul.mubr.msk.bf16.gmra.mxu1 %vm504_vm0, %v674_v51 }
 0x16b   : > { %1255 = vmatpush3.bf16.msra.mxu0 %v945_v28 }
 0x16c   : > { %1256 = vmatprep.subr.bf16.mxu0 %v944_v10 }
 0x16f   : > { %1257 = vmatpush3.bf16.msra.mxu0 %v944_v10 }
 0x170   : > { %1258 = vmatprep.subr.bf16.mxu0 %v943_v14 }
 0x173   : > { %1259 = vmatpush3.bf16.msra.mxu0 %v943_v14 }
 0x212   : > { %v1625_v15 = vpop.f32.mrf.mxu1 }
 0x214   : > { %v1627_v16 = vpop.f32.mrf.mxu1 }
 0x216   : > { %v1629_v17 = vpop.f32.mrf.mxu1 }
 0x218   : > { %v1631_v18 = vpop.f32.mrf.mxu1 }
 0x21a   : > { %v1633_v19 = vpop.f32.mrf.mxu1 }
 0x21c   : > { %v1635_v29 = vpop.f32.mrf.mxu1 }
 0x21e   : > { %v1637_v22 = vpop.f32.mrf.mxu1 }
 0x220   : > { %v1639_v23 = vpop.f32.mrf.mxu1 }
 0x222   : > { %v1238_v38 = vpop.f32.mrf.mxu1 }
 0x223   : > { %v1644_v25 = vadd.f32 %v1238_v38, %v1185_v24 }
 0x224   : > { %v812_v26 = vpop.f32.mrf.mxu1 }
 0x225   : > { %v845_v27 = vmul.f32 %v1644_v25, %v1644_v25  ;;  %v1648_v39 = vadd.f32 %v1185_v24, %v812_v26 }
 0x226   : > { %v1239_v30 = vpop.f32.mrf.mxu1 }
 0x227   : > { %v853_v48 = vmul.f32 %v845_v27, %v1644_v25  ;;  %v843_v31 = vmul.f32 %v1648_v39, %v1648_v39  ;;  %v1653_v32 = vadd.f32 %v1239_v30, %v1185_v24 }
 0x228   : > { %v815_v33 = vpop.f32.mrf.mxu1 }
 0x229   : > { %v861_v34 = vmul.f32 0.044715, %v853_v48  ;;  %v851_v35 = vmul.f32 %v843_v31, %v1648_v39  ;;  %v846_v36 = vmul.f32 %v1653_v32, %v1653_v32  ;;  %v1658_v37 = vadd.f32 %v1185_v24, %v815_v33 }
 0x22a   : > { %v1242_v40 = vpop.f32.mrf.mxu1 }
 0x22b   : > { %v869_v41 = vadd.f32 %v861_v34, %v1644_v25  ;;  %v859_v43 = vmul.f32 0.044715, %v851_v35  ;;  %v854_v44 = vmul.f32 %v846_v36, %v1653_v32  ;;  %v844_v45 = vmul.f32 %v1658_v37, %v1658_v37 }
 0x22c   : > { %v1664_v49 = vadd.f32 %v1242_v40, %v1185_v24  ;;  %v828_v46 = vpop.f32.mrf.mxu1 }
 0x22d   : > { %v877_v50 = vmul.f32 0.7978846, %v869_v41  ;;  %v867_v51 = vadd.f32 %v859_v43, %v1648_v39  ;;  %v862_v3 = vmul.f32 0.044715, %v854_v44  ;;  %v852_v42 = vmul.f32 %v844_v45, %v1658_v37 }
 0x22e   : > { %v849_v47 = vmul.f32 %v1664_v49, %v1664_v49  ;;  %v1670_v52 = vadd.f32 %v1185_v24, %v828_v46  ;;  %v1243_v53 = vpop.f32.mrf.mxu1 }
 0x22f   : > { %1308 = vtanh.f32 %v877_v50  ;;  %v875_v54 = vmul.f32 0.7978846, %v867_v51  ;;  %v870_v55 = vadd.f32 %v862_v3, %v1653_v32  ;;  %v860_v56 = vmul.f32 0.044715, %v852_v42 }
 0x230   : > { %v857_v20 = vmul.f32 %v849_v47, %v1664_v49  ;;  %v847_v57 = vmul.f32 %v1670_v52, %v1670_v52  ;;  %v1676_v58 = vadd.f32 %v1243_v53, %v1185_v24  ;;  %v831_v59 = vpop.f32.mrf.mxu1  ;;  %v1180_v47 = vld [vmem:[%s1765_s7] ss:$0 sm:$0xff] }
 0x231   : > { %1310 = vtanh.f32 %v875_v54  ;;  %v878_v60 = vmul.f32 0.7978846, %v870_v55  ;;  %v868_v61 = vadd.f32 %v860_v56, %v1658_v37  ;;  %v1679_v62 = vadd.f32 %v1185_v24, %v831_v59 }
 0x232   : > { %v865_v63 = vmul.f32 0.044715, %v857_v20  ;;  %v855_v4 = vmul.f32 %v847_v57, %v1670_v52  ;;  %v850_v28 = vmul.f32 %v1676_v58, %v1676_v58  ;;  %v746_v56 = vadd.f32 %v1629_v17, %v1180_v47 }
 0x233   : > { %1312 = vtanh.f32 %v878_v60  ;;  %v876_v6 = vmul.f32 0.7978846, %v868_v61  ;;  %v848_v7 = vmul.f32 %v1679_v62, %v1679_v62  ;;  %v735_v60 = vadd.f32 %v1180_v47, %v1627_v16 }
 0x234   : > { %v873_v10 = vadd.f32 %v865_v63, %v1664_v49  ;;  %v863_v21 = vmul.f32 0.044715, %v855_v4  ;;  %v858_v11 = vmul.f32 %v850_v28, %v1676_v58  ;;  %v738_v61 = vadd.f32 %v1180_v47, %v1631_v18 }
 0x235   : > { %1314 = vtanh.f32 %v876_v6  ;;  %v856_v14 = vmul.f32 %v848_v7, %v1679_v62  ;;  %v743_v4 = vadd.f32 %v1625_v15, %v1180_v47  ;;  %v762_v15 = vadd.f32 %v1637_v22, %v1180_v47 }
 0x236   : > { %v881_v24 = vmul.f32 0.7978846, %v873_v10  ;;  %v871_v38 = vadd.f32 %v863_v21, %v1670_v52  ;;  %v866_v26 = vmul.f32 0.044715, %v858_v11 }
 0x237   : > { %v864_v27 = vmul.f32 0.044715, %v856_v14 }
 0x238   : > { %1316 = vtanh.f32 %v881_v24  ;;  %v879_v30 = vmul.f32 0.7978846, %v871_v38  ;;  %v874_v48 = vadd.f32 %v866_v26, %v1676_v58 }
 0x239   : > { %v872_v31 = vadd.f32 %v864_v27, %v1679_v62 }
 0x23a   : > { %1318 = vtanh.f32 %v879_v30  ;;  %v882_v33 = vmul.f32 0.7978846, %v874_v48  ;;  %v751_v30 = vadd.f32 %v1180_v47, %v1635_v29  ;;  %v754_v48 = vadd.f32 %v1180_v47, %v1639_v23  ;;  %v1190_v29 = vld [vmem:[%s1769_s11] ss:$0 sm:$0xff] }
 0x23b   : > { %v880_v34 = vmul.f32 0.7978846, %v872_v31 }
 0x23c   : > { %v1309_v35 = vpop.eup %1308  ;;  %1320 = vtanh.f32 %v882_v33  ;;  %v759_v33 = vadd.f32 %v1633_v19, %v1180_v47 }
 0x23d   : > { %1322 = vtanh.f32 %v880_v34  ;;  %v893_v40 = vadd.f32 1.0, %v1309_v35 }
 0x23e   : > { %v1311_v36 = vpop.eup %1310 }
 0x23f   : > { %v891_v41 = vadd.f32 1.0, %v1311_v36  ;;  %v901_v50 = vmul.f32 0.5, %v893_v40 }
 0x240   : > { %v1313_v43 = vpop.eup %1312 }
 0x241   : > { %v899_v44 = vmul.f32 0.5, %v891_v41  ;;  %v894_v45 = vadd.f32 1.0, %v1313_v43  ;;  %v909_v20 = vmul.f32 %v901_v50, %v1644_v25 }
 0x242   : > { %v1315_v46 = vpop.eup %1314 }
 0x243   : > { %v892_v51 = vadd.f32 1.0, %v1315_v46  ;;  %v902_v3 = vmul.f32 0.5, %v894_v45  ;;  %v907_v54 = vmul.f32 %v899_v44, %v1648_v39  ;;  %v917_v21 = vmul.f32 %v909_v20, %v743_v4 }
 0x245   : > { %v1317_v42 = vpop.eup %1316  ;;  %v900_v53 = vmul.f32 0.5, %v892_v51  ;;  %v910_v55 = vmul.f32 %v902_v3, %v1653_v32  ;;  %v915_v39 = vmul.f32 %v907_v54, %v735_v60 }
 0x246   : > { %v897_v57 = vadd.f32 1.0, %v1317_v42 }
 0x247   : > { %v1319_v59 = vpop.eup %1318  ;;  %v908_v63 = vmul.f32 %v900_v53, %v1658_v37  ;;  %v918_v28 = vmul.f32 %v910_v55, %v746_v56 }
 0x248   : > { %v895_v6 = vadd.f32 1.0, %v1319_v59  ;;  %v905_v25 = vmul.f32 0.5, %v897_v57 }
 0x249   : > { %v1321_v7 = vpop.eup %1320  ;;  %v916_v10 = vmul.f32 %v908_v63, %v738_v61  ;;  %v924_v38 = vpack.c.bf16 %v918_v28, %v917_v21 }
 0x24a   : > { %v1323_v32 = vpop.eup %1322  ;;  %v903_v17 = vmul.f32 0.5, %v895_v6  ;;  %v898_v11 = vadd.f32 1.0, %v1321_v7  ;;  %v913_v26 = vmul.f32 %v905_v25, %v1664_v49  ;;  %v1191_v49 = vld [vmem:[%s484_s28] ss:$0 sm:$0xff] }
 0x24b   : > { %v923_v14 = vpack.c.bf16 %v916_v10, %v915_v39  ;;  %v896_v24 = vadd.f32 1.0, %v1323_v32 }
 0x24c   : > { %v906_v16 = vmul.f32 0.5, %v898_v11  ;;  %v911_v37 = vmul.f32 %v903_v17, %v1670_v52  ;;  %v921_v36 = vmul.f32 %v913_v26, %v759_v33 }
 0x24d   : > { %1260 = vmatprep.mubr.bf16.mxu0 %v923_v14  ;;  %v904_v18 = vmul.f32 0.5, %v896_v24 }
 0x24e   : > { %1261 = vmatmul.mubr.bf16.vlgmr.msra.gmra.mxu0 %v924_v38  ;;  %v914_v27 = vmul.f32 %v906_v16, %v1676_v58  ;;  %v919_v35 = vmul.f32 %v911_v37, %v751_v30 }
 0x24f   : > { %v912_v31 = vmul.f32 %v904_v18, %v1679_v62 }
 0x250   : > { %v922_v34 = vmul.f32 %v914_v27, %v762_v15 }
 0x251   : > { %v920_v52 = vmul.f32 %v912_v31, %v754_v48 }
 0x252   : > { %v926_v40 = vpack.c.bf16 %v922_v34, %v921_v36 }
 0x253   : > { %v925_v22 = vpack.c.bf16 %v920_v52, %v919_v35 }
 0x255   : > { %1264 = vmatprep.mubr.bf16.mxu0 %v925_v22 }
 0x256   : > { %1265 = vmatmul.mubr.bf16.gmra.mxu0 %v926_v40 }
 0x30e   : > { %v1262_v23 = vpop.f32.mrf.mxu0 }
 0x30f   : > { %v1001_v19 = vadd.f32 %v1262_v23, %v1190_v29 }
 0x310   : > { %v992_v58 = vpop.f32.mrf.mxu0 }
 0x311   : > { %v1032_v62 = vmul.f32 %v1191_v49, %v1001_v19  ;;  %v993_v41 = vadd.f32 %v1190_v29, %v992_v58 }
 0x312   : > { %v1263_v43 = vpop.f32.mrf.mxu0 }
 0x313   : > { %v1040_v44 = vadd.f32 %v1032_v62, %v1441_v1  ;;  %v1030_v45 = vmul.f32 %v1191_v49, %v993_v41  ;;  %v1004_v46 = vadd.f32 %v1263_v43, %v1190_v29 }
 0x314   : > { %v995_v50 = vpop.f32.mrf.mxu0 }
 0x315   : > { %1048 = vst.msk [vmem:[%s1723_s15 + $0x10] sm:$0xff] %vm504_vm0, %v1040_v44  ;;  %v1038_v51 = vadd.f32 %v1030_v45, %v1439_v0  ;;  %v1033_v3 = vmul.f32 %v1191_v49, %v1004_v46  ;;  %v996_v42 = vadd.f32 %v1190_v29, %v995_v50 }
 0x316   : > { %v1266_v47 = vpop.f32.mrf.mxu0 }
 0x317   : > { %1046 = vst.msk [vmem:[%s1723_s15] sm:$0xff] %vm504_vm0, %v1038_v51  ;;  %v1041_v53 = vadd.f32 %v1033_v3, %v1449_v5  ;;  %v1031_v54 = vmul.f32 %v1191_v49, %v996_v42  ;;  %v1017_v55 = vadd.f32 %v1266_v47, %v1190_v29 }
 0x318   : > { %v1008_v1 = vpop.f32.mrf.mxu0 }
 0x319   : > { %1049 = vst.msk [vmem:[%s1723_s15 + $0x18] sm:$0xff] %vm504_vm0, %v1041_v53  ;;  %v1039_v56 = vadd.f32 %v1031_v54, %v1443_v2  ;;  %v1036_v20 = vmul.f32 %v1191_v49, %v1017_v55  ;;  %v1009_v57 = vadd.f32 %v1190_v29, %v1008_v1 }
 0x31a   : > { %v1267_v0 = vpop.f32.mrf.mxu0 }
 0x31b   : > { %1047 = vst.msk [vmem:[%s1723_s15 + $0x8] sm:$0xff] %vm504_vm0, %v1039_v56  ;;  %v1044_v59 = vadd.f32 %v1036_v20, %v1463_v12  ;;  %v1034_v60 = vmul.f32 %v1191_v49, %v1009_v57  ;;  %v1020_v61 = vadd.f32 %v1267_v0, %v1190_v29 }
 0x31c   : > { %v1011_v5 = vpop.f32.mrf.mxu0 }
 0x31d   : > { %1052 = vst.msk [vmem:[%s1723_s15 + $0x30] sm:$0xff] %vm504_vm0, %v1044_v59  ;;  %v1042_v63 = vadd.f32 %v1034_v60, %v1455_v8  ;;  %v1037_v4 = vmul.f32 %v1191_v49, %v1020_v61  ;;  %v1012_v28 = vadd.f32 %v1190_v29, %v1011_v5 }
 0x31f   : > { %1050 = vst.msk [vmem:[%s1723_s15 + $0x20] sm:$0xff] %vm504_vm0, %v1042_v63  ;;  %v1045_v2 = vadd.f32 %v1037_v4, %v1465_v13  ;;  %v1035_v6 = vmul.f32 %v1191_v49, %v1012_v28 }
 0x321   : > { %1053 = vst.msk [vmem:[%s1723_s15 + $0x38] sm:$0xff] %vm504_vm0, %v1045_v2  ;;  %v1043_v7 = vadd.f32 %v1035_v6, %v1457_v9 }
 0x323   : > { %1051 = vst.msk [vmem:[%s1723_s15 + $0x28] sm:$0xff] %vm504_vm0, %v1043_v7 }
 0x324 PF: > { %s22_s23 = sadd.s32 1, %s1346_s23   ;;  %s1771_s21 = smov %s1342_s22 }
 0x325   : > { %p19_p5 = scmp.ge.s32.totalorder %s22_s23, 4   ;;  %s1772_s22 = smov %s1774_s24 }
 0x327   :  { %21 = sbr.rel (!%p19_p5) target bundleno = 2 (0x2), region = 107 }

// kernel: st_basic_transformer_block.4
= control target key start
LH: loop header
LB: loop body
LE: loop exit
PB: predicated region body
PF: predicated region fallthrough
CT: control target
= control target key end

     0   :  { %s6567_s30 = smov 0   ;;  %s6569_s10 = smov 0   ;;  %s8286_s0 = inlined_call_operand.vmem [shape: f32[2,16,4,32], index: 0, kind: input, shape index: {}, may-alias: {0,9}]   ;;  %s8287_s1 = inlined_call_operand.vmem [shape: f32[2,1,32], index: 1, kind: input, shape index: {}]   ;;  %s8288_s2 = inlined_call_operand.vmem [shape: f32[2,1,32], index: 2, kind: input, shape index: {}]   ;;  %s8289_s3 = inlined_call_operand.vmem [shape: f32[2,1,32], index: 3, kind: input, shape index: {}]   ;;  %s8290_s4 = inlined_call_operand.vmem [shape: f32[32,32], index: 4, kind: input, shape index: {}]   ;;  %s8291_s5 = inlined_call_operand.vmem [shape: f32[32,32], index: 5, kind: input, shape index: {}]   ;;  %s8292_s6 = inlined_call_operand.vmem [shape: f32[32,32], index: 6, kind: input, shape index: {}]   ;;  %s8293_s7 = inlined_call_operand.vmem [shape: f32[32,32], index: 7, kind: input, shape index: {}]   ;;  %s8294_s8 = inlined_call_operand.vmem [shape: f32[1,32], index: 8, kind: input, shape index: {}]   ;;  %s8295_s9 = inlined_call_operand.vmem [shape: f32[2,16,4,32], index: 9, kind: output, shape index: {}, may-alias: {0,9}]  }
   0x1   :  { %s6571_s11 = smov 0  }
   0x2 LB: > { %s31_s12 = sadd.s32 1, %s6504_s10  ;;  %p5589_p0 = scmp.ge.s32.totalorder %s6508_s11, 1  ;;  %s6508_s11 = sphi %s6571_s11, %s19_s11   ;;  %s6504_s10 = sphi %s6569_s10, %s8441_s10   ;;  %s6500_s30 = sphi %s6567_s30, %s8440_s30  }
   0x3   : > { %p33_p1 = scmp.ge.s32.totalorder %s31_s12, 2  ;;  %p332_p2 = scmp.lt.s32.totalorder %s6508_s11, 3 }
   0x5   : > { %s8443_s12 = smov (%p33_p1, %s31_s12), 0  ;;  %p333_p3 = pnand %p5589_p0, %p332_p2 }
   0x7   : > { %336 = sbr.rel (%p333_p3) target bundleno = 2378 (0x94a), region = 56 }
   0xc   : > { %p386_p4 = scmp.lt.s32.totalorder %s6500_s30, 1  ;;  %vm466_vm0 = vcmask 261120   ;;  %v6510_v32 = vmov 839922192   ;;  %v511_v34 = vlaneseq  ;;  %v6511_v35 = vmov 1985246804  }
   0xd   : > { %v509_v33 = vunpack.c.l.s4 %v6510_v32  ;;  %v516_v36 = vunpack.c.l.s4 %v6511_v35  ;;  %vm6513_vm1 = vmmov 0   ;;  %vm1446_vm2 = vcmask 130048   ;;  %s6515_s17 = smov 112   ;;  %s6516_s22 = smov 16  }
   0xe   : > { %s8445_s30 = smov (!%p386_p4, %s6500_s30), 1  ;;  %v6667_v38 = vshrl.u32 %v511_v34, 7  ;;  %vm2380_vm3 = vcmask 1041408   ;;  %vm2183_vm4 = vcmask 27648   ;;  %vm2376_vm5 = vcmask 31744  }
   0xf   : > { %s5691_s13 = sshll.u32 %s8445_s30, 6  ;;  %v510_v37 = vunpack.c.0.s8 %v509_v33  ;;  %v517_v39 = vunpack.c.0.s8 %v516_v36  ;;  %s400_s20 = scalar_lea.vmem %s8288_s2, %s8445_s30  ;;  %vm5454_vm6 = vcmask 257024  }
  0x10   : > { %s6593_s16 = scalar_lea.vmem %s8286_s0, %s5691_s13  ;;  %s397_s23 = scalar_lea.vmem %s8287_s1, %s8445_s30 }
  0x11   : > { %v6596_v0 = vld [vmem:[%s6593_s16 + $0x20] sm:$0xf]  ;;  %v6599_v1 = vld [vmem:[%s6593_s16 + $0x24] sm:$0xf]  ;;  %v6602_v2 = vld [vmem:[%s6593_s16 + $0x30] sm:$0xf]  ;;  %v6670_v40 = vsub.s32 %v510_v37, %v6667_v38  ;;  %v6673_v41 = vsub.s32 %v517_v39, %v6667_v38  ;;  %s403_s29 = scalar_lea.vmem %s8289_s3, %s8445_s30  ;;  %s8212_s19 = scalar_lea.vmem %s8295_s9, %s5691_s13 }
  0x12   : > { %8333 = vst [vmem:[#allocation2_spill] sm:$0xff] %v6596_v0  ;;  %8334 = vst [vmem:[#allocation3_spill] sm:$0xff] %v6599_v1  ;;  %v454_v3 = vcombine.low %v6596_v0, %v6599_v1  ;;  %v6607_v4 = vld [vmem:[%s6593_s16 + $0x34] sm:$0xf]  ;;  %v6610_v5 = vld [vmem:[%s6593_s16 + $0x28] sm:$0xf] }
  0x13   : > { %8335 = vst [vmem:[#allocation4_spill] sm:$0xff] %v6602_v2  ;;  %8336 = vst [vmem:[#allocation5_spill] sm:$0xff] %v6607_v4  ;;  %v6613_v6 = vld [vmem:[%s6593_s16 + $0x2c] sm:$0xf]  ;;  %v456_v7 = vcombine.low %v6602_v2, %v6607_v4  ;;  %v6620_v9 = vld [vmem:[%s6593_s16 + $0x38] sm:$0xf] }
  0x14   : > { %8337 = vst [vmem:[#allocation6_spill] sm:$0xff] %v6610_v5  ;;  %8338 = vst [vmem:[#allocation7_spill] sm:$0xff] %v6613_v6  ;;  %v455_v8 = vcombine.low %v6610_v5, %v6613_v6  ;;  %v6623_v10 = vld [vmem:[%s6593_s16 + $0x3c] sm:$0xf]  ;;  %v6626_v11 = vld [vmem:[%s6593_s16] sm:$0xf] }
  0x15   : > { %8339 = vst [vmem:[#allocation8_spill] sm:$0xff] %v6620_v9  ;;  %8340 = vst [vmem:[#allocation9_spill] sm:$0xff] %v6623_v10  ;;  %v479_v12 = vsel %vm466_vm0, %v454_v3, 0.0  ;;  %v457_v13 = vcombine.low %v6620_v9, %v6623_v10  ;;  %v6632_v14 = vld [vmem:[%s6593_s16 + $0x4] sm:$0xf]  ;;  %v485_v16 = vsel %vm466_vm0, %v456_v7, 0.0 }
  0x16   : > { %8341 = vst [vmem:[#allocation10_spill] sm:$0xff] %v6626_v11  ;;  %8342 = vst [vmem:[#allocation11_spill] sm:$0xff] %v6632_v14  ;;  %v6635_v15 = vld [vmem:[%s6593_s16 + $0x8] sm:$0xf]  ;;  %480 = vadd.xlane.f32.xlu0 %v479_v12  ;;  %v6639_v17 = vld [vmem:[%s6593_s16 + $0xc] sm:$0xf]  ;;  %486 = vadd.xlane.f32.xlu1 %v485_v16  ;;  %v450_v19 = vcombine.low %v6626_v11, %v6632_v14 }
  0x17   : > { %8343 = vst [vmem:[#allocation12_spill] sm:$0xff] %v6635_v15  ;;  %8344 = vst [vmem:[#allocation13_spill] sm:$0xff] %v6639_v17  ;;  %v482_v18 = vsel %vm466_vm0, %v455_v8, 0.0  ;;  %v488_v20 = vsel %vm466_vm0, %v457_v13, 0.0  ;;  %v451_v21 = vcombine.low %v6635_v15, %v6639_v17  ;;  %v6648_v22 = vld [vmem:[%s6593_s16 + $0x10] sm:$0xf] }
  0x18   : > { %v6651_v23 = vld [vmem:[%s6593_s16 + $0x14] sm:$0xf]  ;;  %v6654_v24 = vld [vmem:[%s6593_s16 + $0x18] sm:$0xf]  ;;  %v6657_v25 = vld [vmem:[%s6593_s16 + $0x1c] sm:$0xf] }
  0x19   : > { %8345 = vst [vmem:[#allocation14_spill] sm:$0xff] %v6654_v24  ;;  %8346 = vst [vmem:[#allocation15_spill] sm:$0xff] %v6657_v25  ;;  %v467_v26 = vsel %vm466_vm0, %v450_v19, 0.0  ;;  %v452_v27 = vcombine.low %v6648_v22, %v6651_v23  ;;  %v470_v28 = vsel %vm466_vm0, %v451_v21, 0.0  ;;  %v453_v29 = vcombine.low %v6654_v24, %v6657_v25 }
  0x1a   : > { %483 = vadd.xlane.f32.xlu0 %v482_v18  ;;  %489 = vadd.xlane.f32.xlu1 %v488_v20 }
  0x1b   : > { %v473_v30 = vsel %vm466_vm0, %v452_v27, 0.0  ;;  %v476_v31 = vsel %vm466_vm0, %v453_v29, 0.0 }
  0x1e   : > { %468 = vadd.xlane.f32.xlu0 %v467_v26  ;;  %471 = vadd.xlane.f32.xlu1 %v470_v28 }
  0x22   : > { %474 = vadd.xlane.f32.xlu0 %v473_v30  ;;  %477 = vadd.xlane.f32.xlu1 %v476_v31 }
  0x9f   : > { %v481_v42 = vpop.xlane.xlu0 %480  ;;  %v487_v44 = vpop.xlane.xlu1 %486 }
  0xa0   : > { %v496_v43 = vmul.f32 0.03125, %v481_v42  ;;  %v498_v45 = vmul.f32 0.03125, %v487_v44 }
  0xa2   : > { %v570_v46 = vrot.slane %v496_v43, %v6670_v40  ;;  %v577_v47 = vrot.slane %v496_v43, %v6673_v41  ;;  %v598_v48 = vrot.slane %v498_v45, %v6670_v40  ;;  %v605_v49 = vrot.slane %v498_v45, %v6673_v41 }
  0xa3   : > { %v484_v50 = vpop.xlane.xlu0 %483  ;;  %v490_v54 = vpop.xlane.xlu1 %489 }
  0xa4   : > { %v6680_v51 = vsub.f32 %v6596_v0, %v570_v46  ;;  %v6683_v52 = vsub.f32 %v6599_v1, %v577_v47  ;;  %v497_v53 = vmul.f32 0.03125, %v484_v50  ;;  %v6686_v55 = vsub.f32 %v6602_v2, %v598_v48 }
  0xa5   : > { %v6689_v56 = vsub.f32 %v6607_v4, %v605_v49  ;;  %v499_v57 = vmul.f32 0.03125, %v490_v54 }
  0xa6   : > { %v584_v58 = vrot.slane %v497_v53, %v6670_v40  ;;  %v591_v59 = vrot.slane %v497_v53, %v6673_v41  ;;  %v660_v60 = vmul.f32 %v6680_v51, %v6680_v51  ;;  %v661_v61 = vmul.f32 %v6683_v52, %v6683_v52 }
  0xa7   : > { %v612_v62 = vrot.slane %v499_v57, %v6670_v40  ;;  %v619_v63 = vrot.slane %v499_v57, %v6673_v41  ;;  %v469_v3 = vpop.xlane.xlu0 %468  ;;  %v664_v7 = vmul.f32 %v6686_v55, %v6686_v55  ;;  %v665_v8 = vmul.f32 %v6689_v56, %v6689_v56  ;;  %v472_v18 = vpop.xlane.xlu1 %471 }
  0xa8   : > { %v6704_v12 = vsub.f32 %v6610_v5, %v584_v58  ;;  %v6707_v13 = vsub.f32 %v6613_v6, %v591_v59  ;;  %v492_v16 = vmul.f32 0.03125, %v469_v3  ;;  %v688_v19 = vcombine.low %v660_v60, %v661_v61 }
  0xa9   : > { %v6710_v20 = vsub.f32 %v6620_v9, %v612_v62  ;;  %v6713_v21 = vsub.f32 %v6623_v10, %v619_v63  ;;  %v493_v26 = vmul.f32 0.03125, %v472_v18  ;;  %v690_v27 = vcombine.low %v664_v7, %v665_v8 }
  0xaa   : > { %v514_v28 = vrot.slane %v492_v16, %v6670_v40  ;;  %v521_v29 = vrot.slane %v492_v16, %v6673_v41  ;;  %v712_v30 = vsel %vm466_vm0, %v688_v19, 0.0  ;;  %v662_v31 = vmul.f32 %v6704_v12, %v6704_v12 }
  0xab   : > { %v528_v32 = vrot.slane %v493_v26, %v6670_v40  ;;  %v535_v33 = vrot.slane %v493_v26, %v6673_v41  ;;  %713 = vadd.xlane.f32.xlu0 %v712_v30  ;;  %v475_v34 = vpop.xlane.xlu0 %474  ;;  %v663_v35 = vmul.f32 %v6707_v13, %v6707_v13  ;;  %v718_v36 = vsel %vm466_vm0, %v690_v27, 0.0  ;;  %v478_v43 = vpop.xlane.xlu1 %477 }
  0xac   : > { %v6726_v37 = vsub.f32 %v6626_v11, %v514_v28  ;;  %v6729_v39 = vsub.f32 %v6632_v14, %v521_v29  ;;  %v494_v42 = vmul.f32 0.03125, %v475_v34  ;;  %v666_v44 = vmul.f32 %v6710_v20, %v6710_v20 }
  0xad   : > { %v6734_v45 = vsub.f32 %v6635_v15, %v528_v32  ;;  %v6737_v46 = vsub.f32 %v6639_v17, %v535_v33  ;;  %v689_v47 = vcombine.low %v662_v31, %v663_v35  ;;  %v495_v48 = vmul.f32 0.03125, %v478_v43  ;;  %v987_v35 = vld [vmem:[%s8290_s4 + $0x10] sm:$0xff]  ;;  %v985_v43 = vld [vmem:[%s8290_s4] sm:$0xff] }
  0xae   : > { %v542_v49 = vrot.slane %v494_v42, %v6670_v40  ;;  %v549_v50 = vrot.slane %v494_v42, %v6673_v41  ;;  %v667_v53 = vmul.f32 %v6713_v21, %v6713_v21  ;;  %v652_v54 = vmul.f32 %v6726_v37, %v6726_v37 }
  0xaf   : > { %v715_v57 = vsel %vm466_vm0, %v689_v47, 0.0  ;;  %v556_v58 = vrot.slane %v495_v48, %v6670_v40  ;;  %v563_v59 = vrot.slane %v495_v48, %v6673_v41  ;;  %719 = vadd.xlane.f32.xlu0 %v718_v36  ;;  %v653_v60 = vmul.f32 %v6729_v39, %v6729_v39  ;;  %v988_v36 = vld [vmem:[%s8290_s4 + $0x18] sm:$0xff]  ;;  %v1070_v48 = vld [vmem:[%s8291_s5 + $0x10] sm:$0xff] }
  0xb0   : > { %v6751_v61 = vsub.f32 %v6648_v22, %v542_v49  ;;  %v6754_v62 = vsub.f32 %v6651_v23, %v549_v50  ;;  %716 = vadd.xlane.f32.xlu1 %v715_v57  ;;  %v691_v63 = vcombine.low %v666_v44, %v667_v53  ;;  %v654_v3 = vmul.f32 %v6734_v45, %v6734_v45  ;;  %v986_v44 = vld [vmem:[%s8290_s4 + $0x8] sm:$0xff]  ;;  %v1071_v49 = vld [vmem:[%s8291_s5 + $0x18] sm:$0xff]  ;;  %v1141_v53 = vld [vmem:[%s8292_s6 + $0x10] sm:$0xff] }
  0xb1   : > { %v6759_v7 = vsub.f32 %v6654_v24, %v556_v58  ;;  %v6762_v8 = vsub.f32 %v6657_v25, %v563_v59  ;;  %v684_v16 = vcombine.low %v652_v54, %v653_v60  ;;  %v655_v18 = vmul.f32 %v6737_v46, %v6737_v46  ;;  %v1142_v54 = vld [vmem:[%s8292_s6 + $0x18] sm:$0xff] }
  0xb2   : > { %v721_v22 = vsel %vm466_vm0, %v691_v63, 0.0  ;;  %v656_v23 = vmul.f32 %v6751_v61, %v6751_v61  ;;  %v657_v19 = vmul.f32 %v6754_v62, %v6754_v62  ;;  %v990_v42 = vpack.c.bf16 %v988_v36, %v987_v35 }
  0xb3   : > { %v700_v26 = vsel %vm466_vm0, %v684_v16, 0.0  ;;  %v685_v27 = vcombine.low %v654_v3, %v655_v18  ;;  %v658_v28 = vmul.f32 %v6759_v7, %v6759_v7  ;;  %v659_v29 = vmul.f32 %v6762_v8, %v6762_v8 }
  0xb4   : > { %722 = vadd.xlane.f32.xlu1 %v721_v22  ;;  %701 = vadd.xlane.f32.xlu0 %v700_v26  ;;  %v686_v30 = vcombine.low %v656_v23, %v657_v19  ;;  %v989_v47 = vpack.c.bf16 %v986_v44, %v985_v43  ;;  %v6797_v50 = vpack.c.bf16 %v1071_v49, %v1070_v48  ;;  %v432_v19 = vld [vmem:[%s400_s20] sm:$0x1]  ;;  %v8361_v10 = vmov 0.0  }
  0xb5   : > { %v703_v31 = vsel %vm466_vm0, %v685_v27, 0.0  ;;  %v687_v32 = vcombine.low %v658_v28, %v659_v29  ;;  %6277 = vmatprep.subr.bf16.mxu1 %v990_v42  ;;  %5845 = vmatprep.subr.bf16.mxu0 %v990_v42  ;;  %v6806_v57 = vpack.c.bf16 %v1142_v54, %v1141_v53  ;;  %v6820_v54 = vld [vmem:[%s397_s23] ss:$0 sm:$0xff] }
  0xb6   : > { %v706_v33 = vsel %vm466_vm0, %v686_v30, 0.0  ;;  %6279 = vmatpush3.bf16.msra.mxu1 %v990_v42  ;;  %5846 = vmatpush3.bf16.msra.mxu0 %v990_v42  ;;  %v900_v30 = vadd.f32 1.0, %v432_v19 }
  0xb7   : > { %v709_v34 = vsel %vm466_vm0, %v687_v32, 0.0  ;;  %6278 = vmatprep.subr.bf16.mxu1 %v989_v47  ;;  %5847 = vmatprep.subr.bf16.mxu0 %v989_v47 }
  0xb8   : > { %704 = vadd.xlane.f32.xlu1 %v703_v31  ;;  %707 = vadd.xlane.f32.xlu0 %v706_v33  ;;  %v904_v31 = vsub.s32 0, %v6667_v38 }
  0xba   : > { %6280 = vmatpush3.bf16.msra.mxu1 %v989_v47  ;;  %5848 = vmatpush3.bf16.msra.mxu0 %v989_v47  ;;  %v6814_v43 = vrot.slane %v900_v30, %v904_v31 }
  0xbb   : > { %5857 = vmatprep.subr.bf16.mxu1 %v6797_v50  ;;  %5869 = vmatprep.subr.bf16.mxu0 %v6806_v57 }
  0xbc   : > { %710 = vadd.xlane.f32.xlu1 %v709_v34 }
 0x134   : > { %v714_v58 = vpop.xlane.xlu0 %713 }
 0x135   : > { %v728_v59 = vmul.f32 0.03125, %v714_v58 }
 0x137   : > { %v736_v60 = vadd.f32 1e-05, %v728_v59 }
 0x138   : > { %v720_v63 = vpop.xlane.xlu0 %719 }
 0x139   : > { %6340 = vrsqrt.f32 %v736_v60  ;;  %v717_v3 = vpop.xlane.xlu1 %716  ;;  %v730_v16 = vmul.f32 0.03125, %v720_v63  ;;  %v6826_v60 = vcombine.high %v6814_v43, %v6814_v43 }
 0x13a   : > { %v729_v18 = vmul.f32 0.03125, %v717_v3 }
 0x13b   : > { %v738_v22 = vadd.f32 1e-05, %v730_v16 }
 0x13c   : > { %v737_v23 = vadd.f32 1e-05, %v729_v18 }
 0x13d   : > { %6342 = vrsqrt.f32 %v738_v22  ;;  %v723_v26 = vpop.xlane.xlu1 %722  ;;  %v702_v27 = vpop.xlane.xlu0 %701  ;;  %v6832_v22 = vcombine.high %v6820_v54, %v6820_v54 }
 0x13e   : > { %6344 = vrsqrt.f32 %v737_v23  ;;  %v731_v28 = vmul.f32 0.03125, %v723_v26  ;;  %v724_v29 = vmul.f32 0.03125, %v702_v27 }
 0x140   : > { %v739_v32 = vadd.f32 1e-05, %v731_v28  ;;  %v732_v33 = vadd.f32 1e-05, %v724_v29 }
 0x141   : > { %v705_v34 = vpop.xlane.xlu1 %704  ;;  %v708_v35 = vpop.xlane.xlu0 %707 }
 0x142   : > { %6346 = vrsqrt.f32 %v739_v32  ;;  %v725_v36 = vmul.f32 0.03125, %v705_v34  ;;  %v726_v42 = vmul.f32 0.03125, %v708_v35 }
 0x143   : > { %6348 = vrsqrt.f32 %v732_v33 }
 0x144   : > { %v733_v44 = vadd.f32 1e-05, %v725_v36  ;;  %v734_v47 = vadd.f32 1e-05, %v726_v42 }
 0x145   : > { %v711_v48 = vpop.xlane.xlu1 %710 }
 0x146   : > { %v6341_v49 = vpop.eup %6340  ;;  %6350 = vrsqrt.f32 %v733_v44  ;;  %v727_v53 = vmul.f32 0.03125, %v711_v48 }
 0x147   : > { %6352 = vrsqrt.f32 %v734_v47  ;;  %v818_v58 = vrot.slane %v6341_v49, %v6670_v40  ;;  %v825_v59 = vrot.slane %v6341_v49, %v6673_v41 }
 0x148   : > { %v735_v63 = vadd.f32 1e-05, %v727_v53 }
 0x149   : > { %v892_v3 = vmul.f32 %v818_v58, %v6680_v51  ;;  %v893_v16 = vmul.f32 %v825_v59, %v6683_v52  ;;  %v1068_v51 = vld [vmem:[%s8291_s5] sm:$0xff]  ;;  %v1069_v52 = vld [vmem:[%s8291_s5 + $0x8] sm:$0xff] }
 0x14a   : > { %v6343_v18 = vpop.eup %6342  ;;  %6354 = vrsqrt.f32 %v735_v63  ;;  %v6850_v35 = vpack.c.bf16 %v1069_v52, %v1068_v51 }
 0x14b   : > { %v6345_v23 = vpop.eup %6344  ;;  %v846_v19 = vrot.slane %v6343_v18, %v6670_v40  ;;  %v853_v26 = vrot.slane %v6343_v18, %v6673_v41  ;;  %v917_v27 = vmul.f32 %v6814_v43, %v892_v3  ;;  %v918_v28 = vmul.f32 %v6826_v60, %v893_v16 }
 0x14c   : > { %v832_v29 = vrot.slane %v6345_v23, %v6670_v40  ;;  %v839_v30 = vrot.slane %v6345_v23, %v6673_v41 }
 0x14d   : > { %v896_v31 = vmul.f32 %v846_v19, %v6686_v55  ;;  %v897_v32 = vmul.f32 %v853_v26, %v6689_v56  ;;  %v941_v42 = vadd.f32 %v6820_v54, %v917_v27  ;;  %v942_v44 = vadd.f32 %v6832_v22, %v918_v28 }
 0x14e   : > { %v894_v33 = vmul.f32 %v832_v29, %v6704_v12  ;;  %v895_v34 = vmul.f32 %v839_v30, %v6707_v13 }
 0x14f   : > { %v6347_v36 = vpop.eup %6346  ;;  %v921_v47 = vmul.f32 %v6814_v43, %v896_v31  ;;  %v922_v48 = vmul.f32 %v6826_v60, %v897_v32  ;;  %v969_v26 = vcombine.low %v941_v42, %v942_v44 }
 0x150   : > { %v6349_v49 = vpop.eup %6348  ;;  %v860_v55 = vrot.slane %v6347_v36, %v6670_v40  ;;  %v867_v56 = vrot.slane %v6347_v36, %v6673_v41  ;;  %v919_v12 = vmul.f32 %v6814_v43, %v894_v33  ;;  %v920_v13 = vmul.f32 %v6826_v60, %v895_v34 }
 0x151   : > { %v945_v53 = vadd.f32 %v6820_v54, %v921_v47  ;;  %v946_v58 = vadd.f32 %v6832_v22, %v922_v48  ;;  %v762_v59 = vrot.slane %v6349_v49, %v6670_v40  ;;  %v769_v63 = vrot.slane %v6349_v49, %v6673_v41 }
 0x152   : > { %v943_v3 = vadd.f32 %v6820_v54, %v919_v12  ;;  %v944_v16 = vadd.f32 %v6832_v22, %v920_v13  ;;  %v898_v18 = vmul.f32 %v860_v55, %v6710_v20  ;;  %v899_v23 = vmul.f32 %v867_v56, %v6713_v21 }
 0x153   : > { %v6351_v19 = vpop.eup %6350  ;;  %v971_v27 = vcombine.low %v945_v53, %v946_v58  ;;  %v884_v28 = vmul.f32 %v762_v59, %v6726_v37  ;;  %v885_v51 = vmul.f32 %v769_v63, %v6729_v39 }
 0x154   : > { %v6353_v52 = vpop.eup %6352  ;;  %v970_v29 = vcombine.low %v943_v3, %v944_v16  ;;  %v923_v30 = vmul.f32 %v6814_v43, %v898_v18  ;;  %v924_v31 = vmul.f32 %v6826_v60, %v899_v23  ;;  %v776_v32 = vrot.slane %v6351_v19, %v6670_v40 }
 0x155   : > { %v790_v33 = vrot.slane %v6353_v52, %v6670_v40  ;;  %v797_v20 = vrot.slane %v6353_v52, %v6673_v41  ;;  %v783_v21 = vrot.slane %v6351_v19, %v6673_v41  ;;  %v909_v34 = vmul.f32 %v6814_v43, %v884_v28 }
 0x156   : > { %v983_v36 = vpack.c.bf16 %v970_v29, %v969_v26  ;;  %v947_v37 = vadd.f32 %v6820_v54, %v923_v30  ;;  %v948_v39 = vadd.f32 %v6832_v22, %v924_v31  ;;  %v886_v42 = vmul.f32 %v776_v32, %v6734_v45 }
 0x157   : > { %v6355_v44 = vpop.eup %6354  ;;  %v887_v47 = vmul.f32 %v783_v21, %v6737_v46  ;;  %v910_v48 = vmul.f32 %v6826_v60, %v885_v51  ;;  %v933_v49 = vadd.f32 %v6820_v54, %v909_v34  ;;  %v888_v55 = vmul.f32 %v790_v33, %v6751_v61 }
 0x158   : > { %v804_v56 = vrot.slane %v6355_v44, %v6670_v40  ;;  %v811_v12 = vrot.slane %v6355_v44, %v6673_v41  ;;  %5853 = vmatprep.mubr.msk.bf16.mxu1 %vm466_vm0, %v983_v36  ;;  %v972_v13 = vcombine.low %v947_v37, %v948_v39  ;;  %v911_v53 = vmul.f32 %v6814_v43, %v886_v42 }
 0x159   : > { %v912_v45 = vmul.f32 %v6826_v60, %v887_v47  ;;  %v934_v58 = vadd.f32 %v6832_v22, %v910_v48  ;;  %v889_v46 = vmul.f32 %v797_v20, %v6754_v62  ;;  %v913_v59 = vmul.f32 %v6814_v43, %v888_v55 }
 0x15a   : > { %v984_v63 = vpack.c.bf16 %v972_v13, %v971_v27  ;;  %v935_v61 = vadd.f32 %v6820_v54, %v911_v53  ;;  %v890_v40 = vmul.f32 %v804_v56, %v6759_v7  ;;  %v891_v41 = vmul.f32 %v811_v12, %v6762_v8 }
 0x15b   : > { %v936_v3 = vadd.f32 %v6832_v22, %v912_v45  ;;  %v914_v16 = vmul.f32 %v6826_v60, %v889_v46  ;;  %v937_v62 = vadd.f32 %v6820_v54, %v913_v59  ;;  %v965_v19 = vcombine.low %v933_v49, %v934_v58 }
 0x15c   : > { %5854 = vmatmul.mubr.msk.bf16.vlgmr.msra.gmra.mxu1 %vm466_vm0, %v984_v63  ;;  %v915_v18 = vmul.f32 %v6814_v43, %v890_v40  ;;  %v916_v23 = vmul.f32 %v6826_v60, %v891_v41  ;;  %v1139_v43 = vld [vmem:[%s8292_s6] sm:$0xff] }
 0x15d   : > { %5858 = vmatpush3.bf16.msra.mxu1 %v6797_v50  ;;  %v966_v26 = vcombine.low %v935_v61, %v936_v3  ;;  %v938_v7 = vadd.f32 %v6832_v22, %v914_v16  ;;  %v1140_v50 = vld [vmem:[%s8292_s6 + $0x8] sm:$0xff] }
 0x15e   : > { %5859 = vmatprep.subr.bf16.mxu1 %v6850_v35  ;;  %v939_v8 = vadd.f32 %v6820_v54, %v915_v18  ;;  %v940_v27 = vadd.f32 %v6832_v22, %v916_v23  ;;  %v1143_v60 = vpack.c.bf16 %v1140_v50, %v1139_v43  ;;  %v8296_v22 = vmov 0.0  }
 0x15f   : > { %v981_v28 = vpack.c.bf16 %v966_v26, %v965_v19  ;;  %v967_v51 = vcombine.low %v937_v62, %v938_v7 }
 0x160   : > { %v968_v52 = vcombine.low %v939_v8, %v940_v27 }
 0x161   : > { %5849 = vmatprep.mubr.msk.bf16.mxu0 %vm466_vm0, %v981_v28  ;;  %5861 = vmatprep.mubr.msk.bf16.mxu1 %vm466_vm0, %v981_v28 }
 0x162   : > { %5860 = vmatpush3.bf16.msra.mxu1 %v6850_v35  ;;  %v982_v54 = vpack.c.bf16 %v968_v52, %v967_v51 }
 0x163   : > { %5881 = vmatprep.subr.bf16.mxu1 %v8296_v22 }
 0x164   : > { %5850 = vmatmul.mubr.msk.bf16.vlgmr.msra.gmra.mxu0 %vm466_vm0, %v982_v54 }
 0x165   : > { %5862 = vmatmul.mubr.msk.bf16.vlgmr.msra.gmra.mxu1 %vm466_vm0, %v982_v54  ;;  %5870 = vmatpush3.bf16.msra.mxu0 %v6806_v57  ;;  %v6514_v57 = vmov 1983009808  }
 0x166   : > { %5865 = vmatprep.mubr.msk.bf16.mxu1 %vm466_vm0, %v983_v36  ;;  %5873 = vmatprep.mubr.msk.bf16.mxu0 %vm466_vm0, %v981_v28  ;;  %v1228_v35 = vunpack.c.l.s4 %v6514_v57 }
 0x167   : > { %5871 = vmatprep.subr.bf16.mxu0 %v1143_v60 }
 0x168   : > { %v1229_v30 = vunpack.c.0.s8 %v1228_v35 }
 0x169   : > { %5872 = vmatpush3.bf16.msra.mxu0 %v1143_v60 }
 0x16a   : > { %5893 = vmatprep.subr.bf16.mxu0 %v8296_v22  ;;  %v6931_v33 = vsub.s32 %v1229_v30, %v6667_v38 }
 0x16c   : > { %5874 = vmatmul.mubr.msk.bf16.vlgmr.msra.gmra.mxu0 %vm466_vm0, %v982_v54 }
 0x16d   : > { %5866 = vmatmul.mubr.msk.bf16.gmra.mxu1 %vm466_vm0, %v984_v63  ;;  %5877 = vmatprep.mubr.msk.bf16.mxu0 %vm466_vm0, %v983_v36 }
 0x16e   : > { %5883 = vmatprep.mubr.msk.bf16.mxu1 %vm6513_vm1, %v8296_v22 }
 0x174   : > { %5878 = vmatmul.mubr.msk.bf16.gmra.mxu0 %vm466_vm0, %v984_v63 }
 0x175   : > { %5895 = vmatprep.mubr.msk.bf16.mxu0 %vm6513_vm1, %v8296_v22 }
 0x21c   : > { %v5855_v29 = vpop.f32.mrf.mxu1 }
 0x21d   : > { %v1216_v20 = vmul.f32 0.25, %v5855_v29 }
 0x21e   : > { %v1053_v31 = vpop.f32.mrf.mxu1 }
 0x21f   : > { %v1214_v36 = vmul.f32 0.25, %v1053_v31 }
 0x220   : > { %v5856_v32 = vpop.f32.mrf.mxu1 }
 0x221   : > { %v1217_v21 = vmul.f32 0.25, %v5856_v32 }
 0x222   : > { %v1056_v34 = vpop.f32.mrf.mxu1 }
 0x223   : > { %v1221_v37 = vpack.c.bf16 %v1217_v21, %v1216_v20  ;;  %v1215_v39 = vmul.f32 0.25, %v1056_v34  ;;  %v5610_v19 = vpack.c.bf16 %v1217_v21, %v1217_v21 }
 0x224   : > { %v5851_v42 = vpop.f32.mrf.mxu0 }
 0x225   : > { %v6934_v44 = vrot.slane %v1221_v37, %v6931_v33  ;;  %v1220_v47 = vpack.c.bf16 %v1215_v39, %v1214_v36  ;;  %v5609_v48 = vpack.c.bf16 %v1215_v39, %v1215_v39  ;;  %v5863_v49 = vpop.f32.mrf.mxu1  ;;  %v1212_v16 = vmul.f32 0.25, %v5851_v42 }
 0x226   : > { %v1037_v55 = vpop.f32.mrf.mxu0  ;;  %v6965_v29 = vrot.slane %v5610_v19, %v6931_v33 }
 0x227   : > { %v6937_v56 = vrot.slane %v1220_v47, %v6931_v33  ;;  %v6940_v38 = vrot.slane %v5609_v48, %v6931_v33  ;;  %v1108_v12 = vpop.f32.mrf.mxu1  ;;  %v1210_v26 = vmul.f32 0.25, %v1037_v55 }
 0x228   : > { %v5852_v13 = vpop.f32.mrf.mxu0 }
 0x229   : > { %v6946_v45 = vcombine.high %v6937_v56, %v6937_v56  ;;  %v5864_v58 = vpop.f32.mrf.mxu1  ;;  %v1213_v59 = vmul.f32 0.25, %v5852_v13 }
 0x22a   : > { %v1040_v63 = vpop.f32.mrf.mxu0  ;;  %v1295_v30 = vpack.c.bf16 %v5864_v58, %v5863_v49  ;;  %v5612_v34 = vpack.c.bf16 %v5864_v58, %v5864_v58  ;;  %v6995_v58 = vcombine.high %v6965_v29, %v6965_v29 }
 0x22b   : > { %8347 = vst [vmem:[#allocation16_spill] sm:$0xff] %v6946_v45  ;;  %v1211_v40 = vmul.f32 0.25, %v1040_v63  ;;  %v1111_v41 = vpop.f32.mrf.mxu1  ;;  %v1219_v8 = vpack.c.bf16 %v1213_v59, %v1212_v16  ;;  %v5608_v52 = vpack.c.bf16 %v1213_v59, %v1213_v59  ;;  %v6999_v59 = vcombine.high %v6940_v38, %v6940_v38 }
 0x22c   : > { %v1294_v18 = vpack.c.bf16 %v1111_v41, %v1108_v12  ;;  %v5611_v23 = vpack.c.bf16 %v1111_v41, %v1111_v41  ;;  %v5875_v62 = vpop.f32.mrf.mxu0  ;;  %8348 = vst [vmem:[#allocation17_spill] sm:$0xff] %v6995_v58  ;;  %v7002_v63 = vrot.slane %v1295_v30, %v6931_v33  ;;  %v7009_v16 = vrot.slane %v5612_v34, %v6931_v33 }
 0x22d   : > { %v5867_v7 = vpop.f32.mrf.mxu1  ;;  %v1218_v43 = vpack.c.bf16 %v1211_v40, %v1210_v26  ;;  %v5607_v54 = vpack.c.bf16 %v1211_v40, %v1211_v40  ;;  %v6968_v21 = vrot.slane %v1219_v8, %v6931_v33  ;;  %v6974_v37 = vrot.slane %v5608_v52, %v6931_v33  ;;  %8349 = vst [vmem:[#allocation18_spill] sm:$0xff] %v6999_v59 }
 0x22e   : > { %v6955_v27 = vrot.slane %v1294_v18, %v6931_v33  ;;  %v6958_v28 = vrot.slane %v5611_v23, %v6931_v33  ;;  %v1179_v51 = vpop.f32.mrf.mxu0  ;;  %v1635_v30 = vsel %vm1446_vm2, %v7002_v63, 0  ;;  %v1727_v61 = vsel %vm1446_vm2, %v7009_v16, 0 }
 0x22f   : > { %v1124_v50 = vpop.f32.mrf.mxu1  ;;  %v6977_v39 = vrot.slane %v1218_v43, %v6931_v33  ;;  %v6987_v49 = vrot.slane %v5607_v54, %v6931_v33  ;;  %v7006_v41 = vcombine.high %v6968_v21, %v6968_v21  ;;  %v7014_v19 = vcombine.high %v6974_v37, %v6974_v37 }
 0x230   : > { %v5876_v60 = vpop.f32.mrf.mxu0  ;;  %v1451_v57 = vsel %vm1446_vm2, %v6955_v27, 0  ;;  %v1543_v35 = vsel %vm1446_vm2, %v6958_v28, 0  ;;  %v6991_v13 = vcombine.high %v6955_v27, %v6955_v27  ;;  %v7022_v8 = vcombine.high %v6958_v28, %v6958_v28 }
 0x231   : > { %v5868_v31 = vpop.f32.mrf.mxu1  ;;  %v1371_v32 = vpack.c.bf16 %v5876_v60, %v5875_v62  ;;  %v5616_v20 = vpack.c.bf16 %v5876_v60, %v5876_v60  ;;  %5882 = vmatpush3.bf16.xpose.msra.mxu1 %v1451_v57  ;;  %5894 = vmatpush3.bf16.xpose.msra.mxu0 %v1543_v35  ;;  %8350 = vst [vmem:[#allocation19_spill] sm:$0xff] %v7014_v19 }
 0x232   : > { %v6970_v36 = vpop.f32.mrf.mxu0  ;;  %5887 = vmatprep.subr.bf16.mxu1 %v8296_v22  ;;  %5905 = vmatprep.subr.bf16.mxu0 %v8296_v22  ;;  %v1297_v55 = vpack.c.bf16 %v5868_v31, %v5867_v7  ;;  %v5614_v40 = vpack.c.bf16 %v5868_v31, %v5868_v31  ;;  %v7018_v26 = vcombine.high %v6977_v39, %v6977_v39  ;;  %v1497_v54 = vsel %vm1446_vm2, %v6991_v13, 0 }
 0x233   : > { %v6980_v42 = vrot.slane %v1371_v32, %v6931_v33  ;;  %v6983_v47 = vrot.slane %v5616_v20, %v6931_v33  ;;  %v1127_v48 = vpop.f32.mrf.mxu1  ;;  %v1370_v23 = vpack.c.bf16 %v6970_v36, %v1179_v51  ;;  %v7026_v52 = vcombine.high %v6987_v49, %v6987_v49 }
 0x234   : > { %v5879_v12 = vpop.f32.mrf.mxu0  ;;  %v1296_v18 = vpack.c.bf16 %v1127_v48, %v1124_v50  ;;  %v5613_v7 = vpack.c.bf16 %v1127_v48, %v1127_v48  ;;  %v7029_v51 = vrot.slane %v1297_v55, %v6931_v33  ;;  %v5615_v43 = vpack.c.bf16 %v6970_v36, %v6970_v36 }
 0x235   : > { %v7038_v60 = vrot.slane %v5614_v40, %v6931_v33  ;;  %v7048_v32 = vrot.slane %v1370_v23, %v6931_v33  ;;  %v7069_v40 = vcombine.high %v7002_v63, %v7002_v63  ;;  %v1589_v46 = vsel %vm1446_vm2, %v7022_v8, 0 }
 0x236   : > { %v1195_v62 = vpop.f32.mrf.mxu0  ;;  %v7045_v31 = vrot.slane %v1296_v18, %v6931_v33  ;;  %v7055_v36 = vrot.slane %v5613_v7, %v6931_v33  ;;  %v7109_v53 = vrot.slane %v5615_v43, %v6931_v33  ;;  %v7146_v3 = vcombine.high %v7029_v51, %v7029_v51 }
 0x237   : > { %v1681_v23 = vsel %vm1446_vm2, %v7069_v40, 0 }
 0x238   : > { %5884 = vmatmul.mubr.msk.bf16.vlgmr.msra.gmra.mxu1 %vm1446_vm2, %v6977_v39  ;;  %v5880_v50 = vpop.f32.mrf.mxu0  ;;  %5896 = vmatmul.mubr.msk.bf16.vlgmr.msra.gmra.mxu0 %vm1446_vm2, %v6987_v49  ;;  %v7125_v43 = vcombine.high %v7045_v31, %v7045_v31  ;;  %8356 = vst [vmem:[#allocation25_spill] sm:$0xff] %v7146_v3  ;;  %v1911_v9 = vsel %vm1446_vm2, %v7055_v36, 0 }
 0x239   : > { %v1373_v57 = vpack.c.bf16 %v5880_v50, %v5879_v12  ;;  %v5618_v35 = vpack.c.bf16 %v5880_v50, %v5880_v50  ;;  %5888 = vmatpush3.bf16.xpose.msra.mxu1 %v1497_v54  ;;  %5906 = vmatpush3.bf16.xpose.msra.mxu0 %v1635_v30  ;;  %v7117_v30 = vcombine.high %v7009_v16, %v7009_v16 }
 0x23a   : > { %v1198_v20 = vpop.f32.mrf.mxu0  ;;  %5889 = vmatprep.mubr.msk.bf16.mxu1 %vm6513_vm1, %v8296_v22  ;;  %5907 = vmatprep.mubr.msk.bf16.mxu0 %vm6513_vm1, %v8296_v22  ;;  %8354 = vst [vmem:[#allocation23_spill] sm:$0xff] %v7125_v43 }
 0x23b   : > { %v7058_v48 = vrot.slane %v1373_v57, %v6931_v33  ;;  %v7061_v55 = vrot.slane %v5618_v35, %v6931_v33  ;;  %v1372_v12 = vpack.c.bf16 %v1198_v20, %v1195_v62  ;;  %5899 = vmatprep.subr.bf16.mxu1 %v8296_v22  ;;  %5917 = vmatprep.subr.bf16.mxu0 %v8296_v22  ;;  %v1773_v5 = vsel %vm1446_vm2, %v7117_v30, 0 }
 0x23c   : > { %v5617_v7 = vpack.c.bf16 %v1198_v20, %v1198_v20  ;;  %8353 = vst [vmem:[#allocation22_spill] sm:$0xff] %v7117_v30  ;;  %v7164_v57 = vcombine.high %v6980_v42, %v6980_v42  ;;  %v7174_v35 = vcombine.high %v6983_v47, %v6983_v47 }
 0x23d   : > { %8351 = vst [vmem:[#allocation20_spill] sm:$0xff] %v7058_v48  ;;  %8352 = vst [vmem:[#allocation21_spill] sm:$0xff] %v7061_v55  ;;  %v7076_v62 = vrot.slane %v1372_v12, %v6931_v33  ;;  %v7160_v12 = vcombine.high %v7109_v53, %v7109_v53  ;;  %v7194_v18 = vcombine.high %v7058_v48, %v7058_v48 }
 0x23e   : > { %v7132_v20 = vrot.slane %v5617_v7, %v6931_v33  ;;  %v7150_v7 = vcombine.high %v7038_v60, %v7038_v60 }
 0x23f   : > { %v7180_v34 = vcombine.high %v7076_v62, %v7076_v62  ;;  %8360 = vst [vmem:[#allocation29_spill] sm:$0xff] %v7194_v18 }
 0x240   : > { %5890 = vmatmul.mubr.msk.bf16.vlgmr.msra.gmra.mxu1 %vm1446_vm2, %v7018_v26  ;;  %5908 = vmatmul.mubr.msk.bf16.vlgmr.msra.gmra.mxu0 %vm1446_vm2, %v6968_v21  ;;  %8357 = vst [vmem:[#allocation26_spill] sm:$0xff] %v7150_v7  ;;  %v7184_v54 = vcombine.high %v7132_v20, %v7132_v20 }
 0x241   : > { %5900 = vmatpush3.bf16.xpose.msra.mxu1 %v1589_v46  ;;  %5918 = vmatpush3.bf16.xpose.msra.mxu0 %v1727_v61  ;;  %v7139_v61 = vcombine.high %v7055_v36, %v7055_v36  ;;  %v7154_v46 = vcombine.high %v7048_v32, %v7048_v32 }
 0x242   : > { %5901 = vmatprep.mubr.msk.bf16.mxu1 %vm6513_vm1, %v8296_v22  ;;  %5919 = vmatprep.mubr.msk.bf16.mxu0 %vm6513_vm1, %v8296_v22  ;;  %8359 = vst [vmem:[#allocation28_spill] sm:$0xff] %v7184_v54 }
 0x243   : > { %5911 = vmatprep.subr.bf16.mxu1 %v8296_v22  ;;  %8355 = vst [vmem:[#allocation24_spill] sm:$0xff] %v7139_v61  ;;  %5929 = vmatprep.subr.bf16.mxu0 %v8296_v22  ;;  %8358 = vst [vmem:[#allocation27_spill] sm:$0xff] %v7154_v46  ;;  %v1819_v22 = vsel %vm1446_vm2, %v7045_v31, 0 }
 0x248   : > { %5902 = vmatmul.mubr.msk.bf16.vlgmr.msra.gmra.mxu1 %vm1446_vm2, %v7026_v52  ;;  %5920 = vmatmul.mubr.msk.bf16.vlgmr.msra.gmra.mxu0 %vm1446_vm2, %v6974_v37 }
 0x249   : > { %5912 = vmatpush3.bf16.xpose.msra.mxu1 %v1681_v23  ;;  %5930 = vmatpush3.bf16.xpose.msra.mxu0 %v1819_v22  ;;  %v7218_v23 = vcombine.high %v7061_v55, %v7061_v55  ;;  %v7298_v22 = vcombine.high %v6934_v44, %v6934_v44 }
 0x24a   : > { %5913 = vmatprep.mubr.msk.bf16.mxu1 %vm6513_vm1, %v8361_v10  ;;  %5931 = vmatprep.mubr.msk.bf16.mxu0 %vm6513_vm1, %v8361_v10 }
 0x24b   : > { %8362 = vst [vmem:[#allocation30_spill] sm:$0xff] %v7218_v23  ;;  %5923 = vmatprep.subr.bf16.mxu1 %v8361_v10  ;;  %5941 = vmatprep.subr.bf16.mxu0 %v8361_v10  ;;  %8363 = vst [vmem:[#allocation31_spill] sm:$0xff] %v7298_v22 }
 0x250   : > { %5914 = vmatmul.mubr.msk.bf16.vlgmr.msra.gmra.mxu1 %vm1446_vm2, %v7006_v41  ;;  %5932 = vmatmul.mubr.msk.bf16.vlgmr.msra.gmra.mxu0 %vm1446_vm2, %v6937_v56 }
 0x251   : > { %5924 = vmatpush3.bf16.xpose.msra.mxu1 %v1773_v5  ;;  %5942 = vmatpush3.bf16.xpose.msra.mxu0 %v1911_v9  ;;  %v1865_v5 = vsel %vm1446_vm2, %v7125_v43, 0  ;;  %v2003_v9 = vsel %vm1446_vm2, %v7029_v51, 0 }
 0x252   : > { %5925 = vmatprep.mubr.msk.bf16.mxu1 %vm6513_vm1, %v8361_v10  ;;  %5943 = vmatprep.mubr.msk.bf16.mxu0 %vm6513_vm1, %v8361_v10 }
 0x253   : > { %5935 = vmatprep.subr.bf16.mxu1 %v8361_v10  ;;  %5953 = vmatprep.subr.bf16.mxu0 %v8361_v10 }
 0x258   : > { %5926 = vmatmul.mubr.msk.bf16.vlgmr.msra.gmra.mxu1 %vm1446_vm2, %v7014_v19  ;;  %5944 = vmatmul.mubr.msk.bf16.vlgmr.msra.gmra.mxu0 %vm1446_vm2, %v6940_v38 }
 0x259   : > { %5936 = vmatpush3.bf16.xpose.msra.mxu1 %v1865_v5  ;;  %5954 = vmatpush3.bf16.xpose.msra.mxu0 %v2003_v9  ;;  %v1957_v5 = vsel %vm1446_vm2, %v7139_v61, 0  ;;  %v2095_v9 = vsel %vm1446_vm2, %v7038_v60, 0 }
 0x25a   : > { %5937 = vmatprep.mubr.msk.bf16.mxu1 %vm6513_vm1, %v8361_v10  ;;  %5955 = vmatprep.mubr.msk.bf16.mxu0 %vm6513_vm1, %v8361_v10 }
 0x25b   : > { %5947 = vmatprep.subr.bf16.mxu1 %v8361_v10  ;;  %5965 = vmatprep.subr.bf16.mxu0 %v8361_v10 }
 0x260   : > { %5938 = vmatmul.mubr.msk.bf16.vlgmr.msra.gmra.mxu1 %vm1446_vm2, %v6946_v45  ;;  %5956 = vmatmul.mubr.msk.bf16.vlgmr.msra.gmra.mxu0 %vm1446_vm2, %v6934_v44 }
 0x261   : > { %5948 = vmatpush3.bf16.xpose.msra.mxu1 %v1957_v5  ;;  %5966 = vmatpush3.bf16.xpose.msra.mxu0 %v2095_v9  ;;  %v2049_v5 = vsel %vm1446_vm2, %v7146_v3, 0  ;;  %v2382_v9 = vsel %vm2380_vm3, %v7048_v32, 0 }
 0x262   : > { %5949 = vmatprep.mubr.msk.bf16.mxu1 %vm6513_vm1, %v8361_v10  ;;  %5967 = vmatprep.mubr.msk.bf16.mxu0 %vm6513_vm1, %v8361_v10 }
 0x263   : > { %5959 = vmatprep.subr.bf16.mxu1 %v8361_v10  ;;  %5977 = vmatprep.subr.bf16.mxu0 %v8361_v10 }
 0x268   : > { %5950 = vmatmul.mubr.msk.bf16.vlgmr.msra.gmra.mxu1 %vm1446_vm2, %v6999_v59  ;;  %5968 = vmatmul.mubr.msk.bf16.vlgmr.msra.gmra.mxu0 %vm1446_vm2, %v6965_v29 }
 0x269   : > { %5960 = vmatpush3.bf16.xpose.msra.mxu1 %v2049_v5  ;;  %5978 = vmatpush3.bf16.msra.mxu0 %v2382_v9  ;;  %v2141_v5 = vsel %vm1446_vm2, %v7150_v7, 0  ;;  %v2428_v9 = vsel %vm2380_vm3, %v7154_v46, 0 }
 0x26a   : > { %5961 = vmatprep.mubr.msk.bf16.mxu1 %vm6513_vm1, %v8361_v10  ;;  %5971 = vmatprep.subr.bf16.mxu1 %v8361_v10 }
 0x26b   : > { %5979 = vmatprep.mubr.msk.bf16.mxu0 %vm6513_vm1, %v8361_v10  ;;  %5989 = vmatprep.subr.bf16.mxu0 %v8361_v10 }
 0x270   : > { %5962 = vmatmul.mubr.msk.bf16.vlgmr.msra.gmra.mxu1 %vm1446_vm2, %v7298_v22 }
 0x271   : > { %5972 = vmatpush3.bf16.xpose.msra.mxu1 %v2141_v5  ;;  %5973 = vmatprep.mubr.msk.bf16.mxu1 %vm6513_vm1, %v8361_v10 }
 0x272   : > { %5983 = vmatprep.subr.bf16.mxu1 %v8361_v10 }
 0x278   : > { %5974 = vmatmul.mubr.msk.bf16.vlgmr.msra.gmra.mxu1 %vm1446_vm2, %v6995_v58 }
 0x279   : > { %5984 = vmatpush3.bf16.msra.mxu1 %v2428_v9  ;;  %5985 = vmatprep.mubr.msk.bf16.mxu1 %vm6513_vm1, %v8361_v10 }
 0x27a   : > { %5995 = vmatprep.subr.bf16.mxu1 %v8361_v10 }
 0x2f8   : > { %v7314_v1 = vpop.f32.mrf.mxu1  ;;  %v7316_v5 = vpop.f32.mrf.mxu0 }
 0x2f9   : > { %v2184_v50 = vsel %vm2183_vm4, %v7314_v1, -inf  ;;  %v2190_v9 = vsel %vm2183_vm4, %v7316_v5, -inf }
 0x2fa   : > { %2185 = vmax.xlane.f32.xlu0 %v2184_v50  ;;  %v5885_v6 = vpop.f32.mrf.mxu1  ;;  %v5897_v0 = vpop.f32.mrf.mxu0 }
 0x2fc   : > { %v1490_v4 = vpop.f32.mrf.mxu1  ;;  %v1582_v2 = vpop.f32.mrf.mxu0 }
 0x2fe   : > { %v5886_v17 = vpop.f32.mrf.mxu1  ;;  %2191 = vmax.xlane.f32.xlu0 %v2190_v9  ;;  %v5898_v25 = vpop.f32.mrf.mxu0 }
 0x300   : > { %v7322_v15 = vpop.f32.mrf.mxu1  ;;  %v7324_v24 = vpop.f32.mrf.mxu0 }
 0x301   : > { %v2187_v14 = vsel %vm2183_vm4, %v7322_v15, -inf  ;;  %v2196_v0 = vsel %vm2183_vm4, %v7324_v24, -inf }
 0x302   : > { %2188 = vmax.xlane.f32.xlu1 %v2187_v14  ;;  %v5891_v11 = vpop.f32.mrf.mxu1  ;;  %2197 = vmax.xlane.f32.xlu0 %v2196_v0  ;;  %v5909_v2 = vpop.f32.mrf.mxu0 }
 0x304   : > { %v1536_v4 = vpop.f32.mrf.mxu1  ;;  %v1674_v6 = vpop.f32.mrf.mxu0 }
 0x306   : > { %v5892_v50 = vpop.f32.mrf.mxu1  ;;  %v5910_v17 = vpop.f32.mrf.mxu0 }
 0x308   : > { %v7330_v9 = vpop.f32.mrf.mxu1  ;;  %v7332_v25 = vpop.f32.mrf.mxu0 }
 0x309   : > { %v2193_v23 = vsel %vm2183_vm4, %v7330_v9, -inf  ;;  %v2202_v11 = vsel %vm2183_vm4, %v7332_v25, -inf }
 0x30a   : > { %2194 = vmax.xlane.f32.xlu1 %v2193_v23  ;;  %v5903_v46 = vpop.f32.mrf.mxu1  ;;  %2203 = vmax.xlane.f32.xlu0 %v2202_v11  ;;  %v5921_v14 = vpop.f32.mrf.mxu0 }
 0x30c   : > { %v1628_v0 = vpop.f32.mrf.mxu1  ;;  %v1766_v2 = vpop.f32.mrf.mxu0 }
 0x30e   : > { %v5904_v4 = vpop.f32.mrf.mxu1  ;;  %v5922_v6 = vpop.f32.mrf.mxu0 }
 0x310   : > { %v7338_v50 = vpop.f32.mrf.mxu1  ;;  %v7340_v17 = vpop.f32.mrf.mxu0 }
 0x311   : > { %v2199_v58 = vsel %vm2183_vm4, %v7338_v50, -inf  ;;  %v2208_v46 = vsel %vm2183_vm4, %v7340_v17, -inf }
 0x312   : > { %2200 = vmax.xlane.f32.xlu1 %v2199_v58  ;;  %v5915_v7 = vpop.f32.mrf.mxu1  ;;  %2209 = vmax.xlane.f32.xlu0 %v2208_v46  ;;  %v5933_v23 = vpop.f32.mrf.mxu0 }
 0x314   : > { %v1720_v11 = vpop.f32.mrf.mxu1  ;;  %v1858_v14 = vpop.f32.mrf.mxu0 }
 0x316   : > { %v5916_v0 = vpop.f32.mrf.mxu1  ;;  %v5934_v2 = vpop.f32.mrf.mxu0 }
 0x318   : > { %v7346_v4 = vpop.f32.mrf.mxu1  ;;  %v7348_v6 = vpop.f32.mrf.mxu0 }
 0x319   : > { %v2205_v22 = vsel %vm2183_vm4, %v7346_v4, -inf  ;;  %v2214_v58 = vsel %vm2183_vm4, %v7348_v6, -inf }
 0x31a   : > { %2206 = vmax.xlane.f32.xlu1 %v2205_v22  ;;  %v5927_v3 = vpop.f32.mrf.mxu1  ;;  %2215 = vmax.xlane.f32.xlu0 %v2214_v58  ;;  %v5945_v7 = vpop.f32.mrf.mxu0 }
 0x31c   : > { %v1812_v46 = vpop.f32.mrf.mxu1  ;;  %v1950_v23 = vpop.f32.mrf.mxu0 }
 0x31e   : > { %v5928_v11 = vpop.f32.mrf.mxu1  ;;  %v5946_v14 = vpop.f32.mrf.mxu0 }
 0x320   : > { %v7354_v0 = vpop.f32.mrf.mxu1  ;;  %v7356_v2 = vpop.f32.mrf.mxu0 }
 0x321   : > { %v2211_v59 = vsel %vm2183_vm4, %v7354_v0, -inf  ;;  %v2220_v3 = vsel %vm2183_vm4, %v7356_v2, -inf }
 0x322   : > { %2212 = vmax.xlane.f32.xlu1 %v2211_v59  ;;  %v5939_v61 = vpop.f32.mrf.mxu1  ;;  %2221 = vmax.xlane.f32.xlu0 %v2220_v3  ;;  %v5957_v22 = vpop.f32.mrf.mxu0 }
 0x324   : > { %v1904_v58 = vpop.f32.mrf.mxu1  ;;  %v2042_v7 = vpop.f32.mrf.mxu0 }
 0x326   : > { %v5940_v46 = vpop.f32.mrf.mxu1  ;;  %v5958_v23 = vpop.f32.mrf.mxu0 }
 0x328   : > { %v7362_v11 = vpop.f32.mrf.mxu1  ;;  %v7364_v14 = vpop.f32.mrf.mxu0 }
 0x329   : > { %v2217_v55 = vsel %vm2183_vm4, %v7362_v11, -inf  ;;  %v2226_v59 = vsel %vm2183_vm4, %v7364_v14, -inf }
 0x32a   : > { %2218 = vmax.xlane.f32.xlu1 %v2217_v55  ;;  %v5951_v18 = vpop.f32.mrf.mxu1  ;;  %2227 = vmax.xlane.f32.xlu0 %v2226_v59  ;;  %v5969_v61 = vpop.f32.mrf.mxu0 }
 0x32c   : > { %v1996_v3 = vpop.f32.mrf.mxu1  ;;  %v2134_v22 = vpop.f32.mrf.mxu0 }
 0x32e   : > { %v5952_v58 = vpop.f32.mrf.mxu1  ;;  %v5970_v7 = vpop.f32.mrf.mxu0 }
 0x330   : > { %v7370_v46 = vpop.f32.mrf.mxu1 }
 0x331   : > { %v2223_v23 = vsel %vm2183_vm4, %v7370_v46, -inf }
 0x332   : > { %2224 = vmax.xlane.f32.xlu1 %v2223_v23  ;;  %v5963_v45 = vpop.f32.mrf.mxu1 }
 0x334   : > { %v2088_v43 = vpop.f32.mrf.mxu1 }
 0x336   : > { %v5964_v48 = vpop.f32.mrf.mxu1 }
 0x338   : > { %v7374_v55 = vpop.f32.mrf.mxu1 }
 0x339   : > { %v2229_v18 = vsel %vm2183_vm4, %v7374_v55, -inf }
 0x33a   : > { %2230 = vmax.xlane.f32.xlu1 %v2229_v18  ;;  %v5975_v59 = vpop.f32.mrf.mxu1 }
 0x33c   : > { %v2180_v61 = vpop.f32.mrf.mxu1 }
 0x33e   : > { %v5976_v3 = vpop.f32.mrf.mxu1 }
 0x383   : > { %v2186_v22 = vpop.xlane.xlu0 %2185 }
 0x384   : > { %v2232_v58 = vsub.f32 %v7314_v1, %v2186_v22 }
 0x386   : > { %v2248_v7 = vmul.f32 1.442695, %v2232_v58 }
 0x387   : > { %v2192_v54 = vpop.xlane.xlu0 %2191 }
 0x388   : > { %6356 = vpow2.f32 %v2248_v7  ;;  %v2234_v23 = vsub.f32 %v7316_v5, %v2192_v54 }
 0x38a   : > { %v2252_v45 = vmul.f32 1.442695, %v2234_v23 }
 0x38b   : > { %v2189_v43 = vpop.xlane.xlu1 %2188  ;;  %v2198_v19 = vpop.xlane.xlu0 %2197 }
 0x38c   : > { %6358 = vpow2.f32 %v2252_v45  ;;  %v2233_v48 = vsub.f32 %v7322_v15, %v2189_v43  ;;  %v2236_v30 = vsub.f32 %v7324_v24, %v2198_v19 }
 0x38e   : > { %v2250_v18 = vmul.f32 1.442695, %v2233_v48  ;;  %v2256_v59 = vmul.f32 1.442695, %v2236_v30 }
 0x390   : > { %6360 = vpow2.f32 %v2250_v18 }
 0x391   : > { %6362 = vpow2.f32 %v2256_v59 }
 0x393   : > { %v2195_v61 = vpop.xlane.xlu1 %2194  ;;  %v2204_v3 = vpop.xlane.xlu0 %2203 }
 0x394   : > { %v2235_v1 = vsub.f32 %v7330_v9, %v2195_v61  ;;  %v2238_v54 = vsub.f32 %v7332_v25, %v2204_v3 }
 0x395   : > { %v7383_v22 = vpop.eup %6356 }
 0x396   : > { %v2254_v5 = vmul.f32 1.442695, %v2235_v1  ;;  %v2280_v58 = vsel %vm2183_vm4, %v7383_v22, 0.0  ;;  %v2260_v15 = vmul.f32 1.442695, %v2238_v54 }
 0x397   : > { %2281 = vadd.xlane.f32.xlu0 %v2280_v58 }
 0x398   : > { %6364 = vpow2.f32 %v2254_v5 }
 0x399   : > { %v7388_v24 = vpop.eup %6358  ;;  %6366 = vpow2.f32 %v2260_v15 }
 0x39a   : > { %v2286_v19 = vsel %vm2183_vm4, %v7388_v24, 0.0 }
 0x39b   : > { %v2201_v30 = vpop.xlane.xlu1 %2200  ;;  %2287 = vadd.xlane.f32.xlu0 %v2286_v19  ;;  %v2210_v7 = vpop.xlane.xlu0 %2209 }
 0x39c   : > { %v2237_v9 = vsub.f32 %v7338_v50, %v2201_v30  ;;  %v2240_v25 = vsub.f32 %v7340_v17, %v2210_v7 }
 0x39d   : > { %v7393_v23 = vpop.eup %6360 }
 0x39e   : > { %v7396_v45 = vpop.eup %6362  ;;  %v2258_v43 = vmul.f32 1.442695, %v2237_v9  ;;  %v2283_v48 = vsel %vm2183_vm4, %v7393_v23, 0.0  ;;  %v2264_v18 = vmul.f32 1.442695, %v2240_v25 }
 0x39f   : > { %2284 = vadd.xlane.f32.xlu1 %v2283_v48  ;;  %v2292_v59 = vsel %vm2183_vm4, %v7396_v45, 0.0 }
 0x3a0   : > { %6368 = vpow2.f32 %v2258_v43  ;;  %2293 = vadd.xlane.f32.xlu0 %v2292_v59 }
 0x3a1   : > { %6370 = vpow2.f32 %v2264_v18 }
 0x3a3   : > { %v2207_v50 = vpop.xlane.xlu1 %2206  ;;  %v2216_v1 = vpop.xlane.xlu0 %2215 }
 0x3a4   : > { %v2239_v61 = vsub.f32 %v7346_v4, %v2207_v50  ;;  %v2242_v17 = vsub.f32 %v7348_v6, %v2216_v1 }
 0x3a5   : > { %v7403_v3 = vpop.eup %6364 }
 0x3a6   : > { %v7406_v54 = vpop.eup %6366  ;;  %v2262_v5 = vmul.f32 1.442695, %v2239_v61  ;;  %v2289_v58 = vsel %vm2183_vm4, %v7403_v3, 0.0  ;;  %v2268_v15 = vmul.f32 1.442695, %v2242_v17 }
 0x3a7   : > { %2290 = vadd.xlane.f32.xlu1 %v2289_v58  ;;  %v2298_v19 = vsel %vm2183_vm4, %v7406_v54, 0.0 }
 0x3a8   : > { %6372 = vpow2.f32 %v2262_v5  ;;  %2299 = vadd.xlane.f32.xlu0 %v2298_v19 }
 0x3a9   : > { %6374 = vpow2.f32 %v2268_v15 }
 0x3ab   : > { %v2213_v4 = vpop.xlane.xlu1 %2212  ;;  %v2222_v9 = vpop.xlane.xlu0 %2221 }
 0x3ac   : > { %v2241_v30 = vsub.f32 %v7354_v0, %v2213_v4  ;;  %v2244_v6 = vsub.f32 %v7356_v2, %v2222_v9 }
 0x3ad   : > { %v7413_v7 = vpop.eup %6368 }
 0x3ae   : > { %v7416_v25 = vpop.eup %6370  ;;  %v2266_v43 = vmul.f32 1.442695, %v2241_v30  ;;  %v2295_v48 = vsel %vm2183_vm4, %v7413_v7, 0.0  ;;  %v2272_v18 = vmul.f32 1.442695, %v2244_v6 }
 0x3af   : > { %2296 = vadd.xlane.f32.xlu1 %v2295_v48  ;;  %v2304_v59 = vsel %vm2183_vm4, %v7416_v25, 0.0 }
 0x3b0   : > { %6376 = vpow2.f32 %v2266_v43  ;;  %2305 = vadd.xlane.f32.xlu0 %v2304_v59  ;;  %v8365_v59 = vrot.slane %v6955_v27, %v6931_v33  ;;  %v8369_v27 = vrot.slane %v6968_v21, %v6931_v33 }
 0x3b1   : > { %6378 = vpow2.f32 %v2272_v18  ;;  %v8364_v18 = vrot.slane %v6991_v13, %v6931_v33 }
 0x3b3   : > { %v2219_v0 = vpop.xlane.xlu1 %2218  ;;  %v2228_v61 = vpop.xlane.xlu0 %2227 }
 0x3b4   : > { %v2243_v50 = vsub.f32 %v7362_v11, %v2219_v0  ;;  %v2246_v2 = vsub.f32 %v7364_v14, %v2228_v61 }
 0x3b5   : > { %v7423_v1 = vpop.eup %6372 }
 0x3b6   : > { %v7426_v17 = vpop.eup %6374  ;;  %v2270_v5 = vmul.f32 1.442695, %v2243_v50  ;;  %v2301_v58 = vsel %vm2183_vm4, %v7423_v1, 0.0  ;;  %v2276_v15 = vmul.f32 1.442695, %v2246_v2  ;;  %v8366_v50 = vrot.slane %v6958_v28, %v6931_v33 }
 0x3b7   : > { %2302 = vadd.xlane.f32.xlu1 %v2301_v58  ;;  %v2310_v19 = vsel %vm2183_vm4, %v7426_v17, 0.0  ;;  %v8367_v2 = vrot.slane %v6987_v49, %v6931_v33  ;;  %v8370_v28 = vrot.slane %v7009_v16, %v6931_v33  ;;  %v8371_v49 = vrot.slane %v6974_v37, %v6931_v33 }
 0x3b8   : > { %6380 = vpow2.f32 %v2270_v5  ;;  %2311 = vadd.xlane.f32.xlu0 %v2310_v19  ;;  %v8368_v5 = vrot.slane %v7002_v63, %v6931_v33  ;;  %v8372_v63 = vrot.slane %v7045_v31, %v6931_v33  ;;  %v8373_v16 = vrot.slane %v6937_v56, %v6931_v33 }
 0x3b9   : > { %6382 = vpow2.f32 %v2276_v15  ;;  %v8374_v37 = vrot.slane %v7055_v36, %v6931_v33  ;;  %v8375_v58 = vrot.slane %v6940_v38, %v6931_v33  ;;  %v8376_v31 = vrot.slane %v7029_v51, %v6931_v33 }
 0x3ba   : > { %v8377_v56 = vrot.slane %v6977_v39, %v6931_v33  ;;  %v8378_v36 = vrot.slane %v6934_v44, %v6931_v33  ;;  %v8379_v38 = vrot.slane %v7038_v60, %v6931_v33  ;;  %v4016_v15 = vrot.slane %v6965_v29, %v6931_v33 }
 0x3bb   : > { %v2225_v0 = vpop.xlane.xlu1 %2224  ;;  %v8380_v39 = vrot.slane %v7048_v32, %v6931_v33  ;;  %v8381_v29 = vrot.slane %v6980_v42, %v6931_v33  ;;  %v8382_v32 = vrot.slane %v6983_v47, %v6931_v33 }
 0x3bc   : > { %v2245_v61 = vsub.f32 %v7370_v46, %v2225_v0 }
 0x3bd   : > { %v7432_v11 = vpop.eup %6376 }
 0x3be   : > { %v7434_v4 = vpop.eup %6378  ;;  %v2307_v14 = vsel %vm2183_vm4, %v7432_v11, 0.0  ;;  %v2274_v13 = vmul.f32 1.442695, %v2245_v61 }
 0x3bf   : > { %2308 = vadd.xlane.f32.xlu1 %v2307_v14  ;;  %v2316_v30 = vsel %vm2183_vm4, %v7434_v4, 0.0  ;;  %v4446_v14 = vrot.slane %v7109_v53, %v6931_v33 }
 0x3c0   : > { %2317 = vadd.xlane.f32.xlu0 %v2316_v30  ;;  %6384 = vpow2.f32 %v2274_v13 }
 0x3c3   : > { %v2231_v51 = vpop.xlane.xlu1 %2230 }
 0x3c4   : > { %v2247_v19 = vsub.f32 %v7374_v55, %v2231_v51  ;;  %v8383_v51 = vrot.slane %v7018_v26, %v6931_v33 }
 0x3c5   : > { %v7440_v9 = vpop.eup %6380 }
 0x3c6   : > { %v7442_v6 = vpop.eup %6382  ;;  %v2313_v43 = vsel %vm2183_vm4, %v7440_v9, 0.0  ;;  %v2278_v44 = vmul.f32 1.442695, %v2247_v19 }
 0x3c7   : > { %2314 = vadd.xlane.f32.xlu1 %v2313_v43  ;;  %v2322_v48 = vsel %vm2183_vm4, %v7442_v6, 0.0 }
 0x3c8   : > { %2323 = vadd.xlane.f32.xlu0 %v2322_v48  ;;  %6386 = vpow2.f32 %v2278_v44 }
 0x3cd   : > { %v7481_v46 = vpop.eup %6384 }
 0x3ce   : > { %v2319_v21 = vsel %vm2183_vm4, %v7481_v46, 0.0 }
 0x3d5   : > { %v7536_v48 = vpop.eup %6386 }
 0x3d8   : > { %3194 = vrot.lane.b32.xlu1 %v8364_v18, %s6515_s17 }
 0x3de   : > { %3130 = vrot.lane.b32.xlu0 %v8365_v59, %s6515_s17 }
 0x3e2   : > { %3258 = vrot.lane.b32.xlu0 %v8366_v50, %s6515_s17  ;;  %v2325_v50 = vsel %vm2183_vm4, %v7536_v48, 0.0 }
 0x3e6   : > { %3249 = vrot.lane.b32.xlu0 %v8367_v2, %s6515_s17 }
 0x3ea   : > { %3386 = vrot.lane.b32.xlu0 %v8368_v5, %s6515_s17  ;;  %v2474_v5 = vsel %vm2380_vm3, %v7109_v53, 0  ;;  %v2520_v53 = vsel %vm2380_vm3, %v7160_v12, 0 }
 0x3ee   : > { %3377 = vrot.lane.b32.xlu0 %v8369_v27, %s6515_s17 }
 0x3f2   : > { %3514 = vrot.lane.b32.xlu0 %v8370_v28, %s6515_s17 }
 0x3f6   : > { %3505 = vrot.lane.b32.xlu0 %v8371_v49, %s6515_s17 }
 0x3fa   : > { %3642 = vrot.lane.b32.xlu0 %v8372_v63, %s6515_s17 }
 0x3fc   : > { %2320 = vadd.xlane.f32.xlu1 %v2319_v21 }
 0x3fe   : > { %3633 = vrot.lane.b32.xlu0 %v8373_v16, %s6515_s17 }
 0x402   : > { %3770 = vrot.lane.b32.xlu0 %v8374_v37, %s6515_s17 }
 0x406   : > { %3761 = vrot.lane.b32.xlu0 %v8375_v58, %s6515_s17  ;;  %v2566_v58 = vsel %vm2380_vm3, %v6980_v42, 0 }
 0x40a   : > { %3898 = vrot.lane.b32.xlu0 %v8376_v31, %s6515_s17 }
 0x40d   : > { %3121 = vrot.lane.b32.xlu1 %v8377_v56, %s6515_s17 }
 0x40e   : > { %3889 = vrot.lane.b32.xlu0 %v8378_v36, %s6515_s17 }
 0x412   : > { %4026 = vrot.lane.b32.xlu0 %v8379_v38, %s6515_s17 }
 0x416   : > { %4017 = vrot.lane.b32.xlu0 %v4016_v15, %s6515_s17 }
 0x41a   : > { %4337 = vrot.lane.b32.xlu0 %v8380_v39, %s6515_s17  ;;  %v8384_v39 = vrot.slane %v7022_v8, %v6931_v33  ;;  %v2704_v8 = vsel %vm2380_vm3, %v7174_v35, 0 }
 0x41e   : > { %4447 = vrot.lane.b32.xlu0 %v4446_v14, %s6515_s17 }
 0x420   : > { %v2282_v60 = vpop.xlane.xlu0 %2281 }
 0x421   : > { %6388 = vrcp.f32 %v2282_v60 }
 0x422   : > { %4557 = vrot.lane.b32.xlu0 %v8381_v29, %s6515_s17 }
 0x424   : > { %v2288_v55 = vpop.xlane.xlu0 %2287 }
 0x425   : > { %6390 = vrcp.f32 %v2288_v55 }
 0x426   : > { %4667 = vrot.lane.b32.xlu0 %v8382_v32, %s6515_s17 }
 0x428   : > { %v2285_v30 = vpop.xlane.xlu1 %2284 }
 0x429   : > { %6392 = vrcp.f32 %v2285_v30  ;;  %v2294_v43 = vpop.xlane.xlu0 %2293  ;;  %v8386_v30 = vrot.slane %v7069_v40, %v6931_v33  ;;  %v2796_v40 = vsel %vm2380_vm3, %v7180_v34, 0 }
 0x42a   : > { %6394 = vrcp.f32 %v2294_v43 }
 0x42e   : > { %v6389_v18 = vpop.eup %6388 }
 0x42f   : > { %v2344_v59 = vmul.f32 %v6389_v18, %v7383_v22 }
 0x430   : > { %v2291_v0 = vpop.xlane.xlu1 %2290 }
 0x431   : > { %6396 = vrcp.f32 %v2291_v0  ;;  %2326 = vadd.xlane.f32.xlu1 %v2325_v50  ;;  %v2360_v61 = vpack.c.bf16 %v2344_v59, %v2344_v59  ;;  %v2300_v13 = vpop.xlane.xlu0 %2299 }
 0x432   : > { %v6391_v2 = vpop.eup %6390  ;;  %6398 = vrcp.f32 %v2300_v13  ;;  %v8388_v13 = vld [vmem:[#allocation22_spill] sm:$0xff] }
 0x433   : > { %5980 = vmatmul.mubr.msk.bf16.vlgmr.msra.gmra.mxu0 %vm2376_vm5, %v2360_v61  ;;  %v2346_v22 = vmul.f32 %v6391_v2, %v7388_v24 }
 0x434   : > { %5990 = vmatpush3.bf16.msra.mxu0 %v2474_v5  ;;  %5991 = vmatprep.mubr.msk.bf16.mxu0 %vm6513_vm1, %v8361_v10  ;;  %v8389_v5 = vrot.slane %v8388_v13, %v6931_v33 }
 0x435   : > { %6001 = vmatprep.subr.bf16.mxu0 %v8361_v10  ;;  %v2362_v21 = vpack.c.bf16 %v2346_v22, %v2346_v22 }
 0x436   : > { %v6393_v27 = vpop.eup %6392 }
 0x437   : > { %v2345_v28 = vmul.f32 %v6393_v27, %v7393_v23  ;;  %v6395_v16 = vpop.eup %6394 }
 0x438   : > { %v2297_v49 = vpop.xlane.xlu1 %2296  ;;  %v2348_v24 = vmul.f32 %v6395_v16, %v7396_v45  ;;  %v2612_v45 = vsel %vm2380_vm3, %v7164_v57, 0 }
 0x439   : > { %6400 = vrcp.f32 %v2297_v49  ;;  %v2361_v63 = vpack.c.bf16 %v2345_v28, %v2345_v28  ;;  %v2306_v37 = vpop.xlane.xlu0 %2305 }
 0x43a   : > { %6402 = vrcp.f32 %v2306_v37  ;;  %v2364_v36 = vpack.c.bf16 %v2348_v24, %v2348_v24  ;;  %v8393_v37 = vld [vmem:[#allocation20_spill] sm:$0xff]  ;;  %v8394_v24 = vld [vmem:[#allocation23_spill] sm:$0xff] }
 0x43b   : > { %5986 = vmatmul.mubr.msk.bf16.vlgmr.msra.gmra.mxu1 %vm2376_vm5, %v2361_v63  ;;  %5992 = vmatmul.mubr.msk.bf16.vlgmr.msra.gmra.mxu0 %vm2376_vm5, %v2362_v21  ;;  %v8390_v63 = vld [vmem:[#allocation19_spill] sm:$0xff] }
 0x43c   : > { %5996 = vmatpush3.bf16.msra.mxu1 %v2520_v53  ;;  %6002 = vmatpush3.bf16.msra.mxu0 %v2566_v58  ;;  %v8391_v21 = vrot.slane %v8390_v63, %v6931_v33  ;;  %v2934_v53 = vsel %vm2380_vm3, %v8393_v37, 0  ;;  %v8416_v63 = vld [vmem:[#allocation30_spill] sm:$0xff] }
 0x43d   : > { %5997 = vmatprep.mubr.msk.bf16.mxu1 %vm6513_vm1, %v8361_v10  ;;  %6003 = vmatprep.mubr.msk.bf16.mxu0 %vm6513_vm1, %v8361_v10 }
 0x43e   : > { %v6397_v23 = vpop.eup %6396  ;;  %6007 = vmatprep.subr.bf16.mxu1 %v8361_v10  ;;  %6013 = vmatprep.subr.bf16.mxu0 %v8361_v10 }
 0x43f   : > { %v2347_v31 = vmul.f32 %v6397_v23, %v7403_v3  ;;  %v6399_v38 = vpop.eup %6398  ;;  %v2658_v3 = vsel %vm2380_vm3, %v6983_v47, 0  ;;  %v8395_v23 = vrot.slane %v8394_v24, %v6931_v33 }
 0x440   : > { %v2303_v56 = vpop.xlane.xlu1 %2302  ;;  %v2350_v26 = vmul.f32 %v6399_v38, %v7406_v54  ;;  %v8385_v54 = vrot.slane %v7026_v52, %v6931_v33  ;;  %v8396_v38 = vld [vmem:[#allocation16_spill] sm:$0xff] }
 0x441   : > { %6404 = vrcp.f32 %v2303_v56  ;;  %v2363_v42 = vpack.c.bf16 %v2347_v31, %v2347_v31  ;;  %v2312_v15 = vpop.xlane.xlu0 %2311 }
 0x442   : > { %3185 = vrot.lane.b32.xlu1 %v8383_v51, %s6515_s17  ;;  %6406 = vrcp.f32 %v2312_v15  ;;  %v2366_v60 = vpack.c.bf16 %v2350_v26, %v2350_v26  ;;  %v8397_v15 = vrot.slane %v8396_v38, %v6931_v33 }
 0x443   : > { %5998 = vmatmul.mubr.msk.bf16.vlgmr.msra.gmra.mxu1 %vm2376_vm5, %v2363_v42  ;;  %6004 = vmatmul.mubr.msk.bf16.vlgmr.msra.gmra.mxu0 %vm2376_vm5, %v2364_v36 }
 0x444   : > { %6008 = vmatpush3.bf16.msra.mxu1 %v2612_v45  ;;  %6014 = vmatpush3.bf16.msra.mxu0 %v2658_v3  ;;  %v8399_v45 = vld [vmem:[#allocation21_spill] sm:$0xff] }
 0x445   : > { %6009 = vmatprep.mubr.msk.bf16.mxu1 %vm6513_vm1, %v8361_v10  ;;  %6015 = vmatprep.mubr.msk.bf16.mxu0 %vm6513_vm1, %v8361_v10  ;;  %v3026_v3 = vsel %vm2380_vm3, %v8399_v45, 0 }
 0x446   : > { %v6401_v19 = vpop.eup %6400  ;;  %3322 = vrot.lane.b32.xlu1 %v8384_v39, %s6515_s17  ;;  %6019 = vmatprep.subr.bf16.mxu1 %v8361_v10 }
 0x447   : > { %6025 = vmatprep.subr.bf16.mxu0 %v8361_v10  ;;  %v2349_v47 = vmul.f32 %v6401_v19, %v7413_v7  ;;  %v6403_v29 = vpop.eup %6402  ;;  %v2750_v7 = vsel %vm2380_vm3, %v7076_v62, 0  ;;  %v8400_v19 = vld [vmem:[#allocation24_spill] sm:$0xff] }
 0x448   : > { %v2309_v44 = vpop.xlane.xlu1 %2308  ;;  %v2352_v52 = vmul.f32 %v6403_v29, %v7416_v25  ;;  %v8387_v25 = vrot.slane %v7006_v41, %v6931_v33  ;;  %v8401_v39 = vrot.slane %v8400_v19, %v6931_v33 }
 0x449   : > { %6408 = vrcp.f32 %v2309_v44  ;;  %v2365_v14 = vpack.c.bf16 %v2349_v47, %v2349_v47  ;;  %v2318_v55 = vpop.xlane.xlu0 %2317  ;;  %v8402_v44 = vld [vmem:[#allocation18_spill] sm:$0xff] }
 0x44a   : > { %3313 = vrot.lane.b32.xlu1 %v8385_v54, %s6515_s17  ;;  %6410 = vrcp.f32 %v2318_v55  ;;  %v2368_v0 = vpack.c.bf16 %v2352_v52, %v2352_v52  ;;  %v8406_v54 = vld [vmem:[#allocation31_spill] sm:$0xff]  ;;  %v8407_v52 = vld [vmem:[#allocation26_spill] sm:$0xff] }
 0x44b   : > { %6010 = vmatmul.mubr.msk.bf16.vlgmr.msra.gmra.mxu1 %vm2376_vm5, %v2365_v14  ;;  %6016 = vmatmul.mubr.msk.bf16.vlgmr.msra.gmra.mxu0 %vm2376_vm5, %v2366_v60  ;;  %v8403_v14 = vrot.slane %v8402_v44, %v6931_v33 }
 0x44c   : > { %6020 = vmatpush3.bf16.msra.mxu1 %v2704_v8  ;;  %6026 = vmatpush3.bf16.msra.mxu0 %v2750_v7  ;;  %v3952_v8 = vrot.slane %v8406_v54, %v6931_v33 }
 0x44d   : > { %6021 = vmatprep.mubr.msk.bf16.mxu1 %vm6513_vm1, %v8361_v10  ;;  %6027 = vmatprep.mubr.msk.bf16.mxu0 %vm6513_vm1, %v8361_v10 }
 0x44e   : > { %v6405_v32 = vpop.eup %6404  ;;  %3450 = vrot.lane.b32.xlu1 %v8386_v30, %s6515_s17  ;;  %6031 = vmatprep.subr.bf16.mxu1 %v8361_v10 }
 0x44f   : > { %6037 = vmatprep.subr.bf16.mxu0 %v8361_v10  ;;  %v2351_v43 = vmul.f32 %v6405_v32, %v7423_v1  ;;  %v6407_v50 = vpop.eup %6406  ;;  %v2842_v1 = vsel %vm2380_vm3, %v7132_v20, 0  ;;  %v8408_v32 = vrot.slane %v8407_v52, %v6931_v33 }
 0x450   : > { %v2315_v18 = vpop.xlane.xlu1 %2314  ;;  %v2354_v41 = vmul.f32 %v6407_v50, %v7426_v17  ;;  %v8392_v17 = vld [vmem:[#allocation28_spill] sm:$0xff] }
 0x451   : > { %6412 = vrcp.f32 %v2315_v18  ;;  %v2367_v59 = vpack.c.bf16 %v2351_v43, %v2351_v43  ;;  %v2324_v61 = vpop.xlane.xlu0 %2323  ;;  %v2888_v16 = vsel %vm2380_vm3, %v8392_v17, 0  ;;  %v8409_v43 = vld [vmem:[#allocation17_spill] sm:$0xff] }
 0x452   : > { %3441 = vrot.lane.b32.xlu1 %v8387_v25, %s6515_s17  ;;  %6414 = vrcp.f32 %v2324_v61  ;;  %v2370_v28 = vpack.c.bf16 %v2354_v41, %v2354_v41  ;;  %v8410_v18 = vrot.slane %v8409_v43, %v6931_v33  ;;  %v8413_v25 = vrot.slane %v7160_v12, %v6931_v33 }
 0x453   : > { %6022 = vmatmul.mubr.msk.bf16.vlgmr.msra.gmra.mxu1 %vm2376_vm5, %v2367_v59  ;;  %6028 = vmatmul.mubr.msk.bf16.vlgmr.msra.gmra.mxu0 %vm2376_vm5, %v2368_v0  ;;  %v8411_v0 = vld [vmem:[#allocation27_spill] sm:$0xff]  ;;  %v8414_v41 = vrot.slane %v7164_v57, %v6931_v33 }
 0x454   : > { %6032 = vmatpush3.bf16.msra.mxu1 %v2796_v40  ;;  %6038 = vmatpush3.bf16.msra.mxu0 %v2842_v1  ;;  %v8412_v50 = vrot.slane %v8411_v0, %v6931_v33  ;;  %v7700_v61 = vpop.permute.xlu1 %3194 }
 0x455   : > { %6033 = vmatprep.mubr.msk.bf16.mxu1 %vm6513_vm1, %v8361_v10  ;;  %6039 = vmatprep.mubr.msk.bf16.mxu0 %vm6513_vm1, %v8361_v10 }
 0x456   : > { %v6409_v2 = vpop.eup %6408  ;;  %3578 = vrot.lane.b32.xlu1 %v8389_v5, %s6515_s17  ;;  %6043 = vmatprep.subr.bf16.mxu1 %v8361_v10 }
 0x457   : > { %6049 = vmatprep.subr.bf16.mxu0 %v8361_v10  ;;  %v2353_v22 = vmul.f32 %v6409_v2, %v7432_v11  ;;  %v6411_v49 = vpop.eup %6410 }
 0x458   : > { %v2356_v11 = vmul.f32 %v6411_v49, %v7434_v4  ;;  %v8398_v4 = vld [vmem:[#allocation29_spill] sm:$0xff] }
 0x459   : > { %v2369_v27 = vpack.c.bf16 %v2353_v22, %v2353_v22  ;;  %v2980_v51 = vsel %vm2380_vm3, %v8398_v4, 0  ;;  %v8415_v22 = vrot.slane %v7174_v35, %v6931_v33 }
 0x45a   : > { %3569 = vrot.lane.b32.xlu1 %v8391_v21, %s6515_s17  ;;  %v2372_v42 = vpack.c.bf16 %v2356_v11, %v2356_v11  ;;  %v3072_v21 = vsel %vm2380_vm3, %v8416_v63, 0 }
 0x45b   : > { %6034 = vmatmul.mubr.msk.bf16.vlgmr.msra.gmra.mxu1 %vm2376_vm5, %v2369_v27  ;;  %6040 = vmatmul.mubr.msk.bf16.vlgmr.msra.gmra.mxu0 %vm2376_vm5, %v2370_v28 }
 0x45c   : > { %6044 = vmatpush3.bf16.msra.mxu1 %v2888_v16  ;;  %6050 = vmatpush3.bf16.msra.mxu0 %v2934_v53 }
 0x45d   : > { %6045 = vmatprep.mubr.msk.bf16.mxu1 %vm6513_vm1, %v8361_v10  ;;  %6051 = vmatprep.mubr.msk.bf16.mxu0 %vm6513_vm1, %v8361_v10 }
 0x45e   : > { %v6413_v58 = vpop.eup %6412  ;;  %3706 = vrot.lane.b32.xlu1 %v8395_v23, %s6515_s17  ;;  %6055 = vmatprep.subr.bf16.mxu1 %v8361_v10 }
 0x45f   : > { %6061 = vmatprep.subr.bf16.mxu0 %v8361_v10  ;;  %v2355_v31 = vmul.f32 %v6413_v58, %v7440_v9  ;;  %v6415_v36 = vpop.eup %6414  ;;  %v3131_v9 = vpop.permute.xlu0 %3130 }
 0x460   : > { %v2358_v26 = vmul.f32 %v6415_v36, %v7442_v6  ;;  %v3136_v60 = vsel %vm1446_vm2, %v3131_v9, 0  ;;  %v8404_v6 = vld [vmem:[#allocation25_spill] sm:$0xff] }
 0x461   : > { %v2371_v56 = vpack.c.bf16 %v2355_v31, %v2355_v31  ;;  %v8405_v55 = vrot.slane %v8404_v6, %v6931_v33 }
 0x462   : > { %3697 = vrot.lane.b32.xlu1 %v8397_v15, %s6515_s17  ;;  %v2374_v47 = vpack.c.bf16 %v2358_v26, %v2358_v26 }
 0x463   : > { %6046 = vmatmul.mubr.msk.bf16.vlgmr.msra.gmra.mxu1 %vm2376_vm5, %v2371_v56  ;;  %6052 = vmatmul.mubr.msk.bf16.vlgmr.msra.gmra.mxu0 %vm2376_vm5, %v2372_v42  ;;  %v3259_v29 = vpop.permute.xlu0 %3258 }
 0x464   : > { %6056 = vmatpush3.bf16.msra.mxu1 %v2980_v51  ;;  %6062 = vmatpush3.bf16.msra.mxu0 %v3026_v3  ;;  %v3264_v5 = vsel %vm1446_vm2, %v3259_v29, 0 }
 0x465   : > { %6063 = vmatprep.mubr.msk.bf16.mxu0 %vm6513_vm1, %v8361_v10  ;;  %6073 = vmatprep.subr.bf16.mxu0 %v8361_v10 }
 0x466   : > { %3834 = vrot.lane.b32.xlu1 %v8401_v39, %s6515_s17  ;;  %6057 = vmatprep.mubr.msk.bf16.mxu1 %vm6513_vm1, %v8361_v10 }
 0x467   : > { %6067 = vmatprep.subr.bf16.mxu1 %v8361_v10  ;;  %v3250_v7 = vpop.permute.xlu0 %3249 }
 0x46a   : > { %3825 = vrot.lane.b32.xlu1 %v8403_v14, %s6515_s17  ;;  %v3200_v14 = vsel %vm1446_vm2, %v7700_v61, 0 }
 0x46b   : > { %6064 = vmatmul.mubr.msk.bf16.vlgmr.msra.gmra.mxu0 %vm2376_vm5, %v2374_v47  ;;  %v3387_v30 = vpop.permute.xlu0 %3386 }
 0x46c   : > { %6074 = vmatpush3.bf16.xpose.msra.mxu0 %v3136_v60  ;;  %6075 = vmatprep.mubr.msk.bf16.mxu0 %vm6513_vm1, %v8361_v10  ;;  %v3392_v57 = vsel %vm1446_vm2, %v3387_v30, 0 }
 0x46d   : > { %6085 = vmatprep.subr.bf16.mxu0 %v8361_v10 }
 0x46e   : > { %3962 = vrot.lane.b32.xlu1 %v8405_v55, %s6515_s17 }
 0x46f   : > { %v3378_v59 = vpop.permute.xlu0 %3377 }
 0x472   : > { %3953 = vrot.lane.b32.xlu1 %v3952_v8, %s6515_s17 }
 0x473   : > { %v3515_v40 = vpop.permute.xlu0 %3514 }
 0x474   : > { %v3520_v16 = vsel %vm1446_vm2, %v3515_v40, 0 }
 0x476   : > { %4090 = vrot.lane.b32.xlu1 %v8408_v32, %s6515_s17 }
 0x477   : > { %v3506_v2 = vpop.permute.xlu0 %3505 }
 0x47a   : > { %4081 = vrot.lane.b32.xlu1 %v8410_v18, %s6515_s17 }
 0x47b   : > { %v3643_v12 = vpop.permute.xlu0 %3642 }
 0x47c   : > { %v3648_v11 = vsel %vm1446_vm2, %v3643_v12, 0 }
 0x47e   : > { %4392 = vrot.lane.b32.xlu1 %v8412_v50, %s6515_s17 }
 0x47f   : > { %v3634_v28 = vpop.permute.xlu0 %3633 }
 0x482   : > { %4502 = vrot.lane.b32.xlu1 %v8413_v25, %s6515_s17 }
 0x485   : > { %v2321_v1 = vpop.xlane.xlu1 %2320 }
 0x486   : > { %6416 = vrcp.f32 %v2321_v1  ;;  %4612 = vrot.lane.b32.xlu1 %v8414_v41, %s6515_s17 }
 0x489   : > { %v3122_v13 = vpop.permute.xlu1 %3121 }
 0x48a   : > { %4722 = vrot.lane.b32.xlu1 %v8415_v22, %s6515_s17  ;;  %6076 = vmatmul.mubr.msk.bf16.vlgmr.msra.gmra.mxu0 %vm1446_vm2, %v3122_v13 }
 0x48b   : > { %6086 = vmatpush3.bf16.xpose.msra.mxu0 %v3264_v5  ;;  %6087 = vmatprep.mubr.msk.bf16.mxu0 %vm6513_vm1, %v8361_v10 }
 0x48c   : > { %6097 = vmatprep.subr.bf16.mxu0 %v8361_v10 }
 0x492   : > { %6088 = vmatmul.mubr.msk.bf16.vlgmr.msra.gmra.mxu0 %vm1446_vm2, %v3250_v7 }
 0x493   : > { %v6417_v27 = vpop.eup %6416  ;;  %6098 = vmatpush3.bf16.xpose.msra.mxu0 %v3392_v57  ;;  %6099 = vmatprep.mubr.msk.bf16.mxu0 %vm6513_vm1, %v8361_v10 }
 0x494   : > { %v2357_v35 = vmul.f32 %v6417_v27, %v7481_v46  ;;  %6109 = vmatprep.subr.bf16.mxu0 %v8361_v10  ;;  %v3771_v46 = vpop.permute.xlu0 %3770 }
 0x495   : > { %v3776_v24 = vsel %vm1446_vm2, %v3771_v46, 0 }
 0x496   : > { %v2373_v49 = vpack.c.bf16 %v2357_v35, %v2357_v35 }
 0x498   : > { %6058 = vmatmul.mubr.msk.bf16.vlgmr.msra.gmra.mxu1 %vm2376_vm5, %v2373_v49  ;;  %v3762_v53 = vpop.permute.xlu0 %3761 }
 0x499   : > { %6068 = vmatpush3.bf16.msra.mxu1 %v3072_v21  ;;  %6069 = vmatprep.mubr.msk.bf16.mxu1 %vm6513_vm1, %v8361_v10 }
 0x49a   : > { %6100 = vmatmul.mubr.msk.bf16.vlgmr.msra.gmra.mxu0 %vm1446_vm2, %v3378_v59  ;;  %6079 = vmatprep.subr.bf16.mxu1 %v8361_v10 }
 0x49b   : > { %6110 = vmatpush3.bf16.xpose.msra.mxu0 %v3520_v16  ;;  %6111 = vmatprep.mubr.msk.bf16.mxu0 %vm6513_vm1, %v8361_v10 }
 0x49c   : > { %6121 = vmatprep.subr.bf16.mxu0 %v8361_v10  ;;  %v3899_v58 = vpop.permute.xlu0 %3898 }
 0x49d   : > { %v3904_v31 = vsel %vm1446_vm2, %v3899_v58, 0 }
 0x4a0   : > { %v3890_v23 = vpop.permute.xlu0 %3889 }
 0x4a2   : > { %6112 = vmatmul.mubr.msk.bf16.vlgmr.msra.gmra.mxu0 %vm1446_vm2, %v3506_v2 }
 0x4a3   : > { %6122 = vmatpush3.bf16.xpose.msra.mxu0 %v3648_v11  ;;  %6123 = vmatprep.mubr.msk.bf16.mxu0 %vm6513_vm1, %v8361_v10 }
 0x4a4   : > { %6133 = vmatprep.subr.bf16.mxu0 %v8361_v10  ;;  %v4027_v56 = vpop.permute.xlu0 %4026 }
 0x4a5   : > { %v4032_v36 = vsel %vm1446_vm2, %v4027_v56, 0 }
 0x4a8   : > { %v4018_v42 = vpop.permute.xlu0 %4017 }
 0x4aa   : > { %6124 = vmatmul.mubr.msk.bf16.vlgmr.msra.gmra.mxu0 %vm1446_vm2, %v3634_v28 }
 0x4ab   : > { %6134 = vmatpush3.bf16.xpose.msra.mxu0 %v3776_v24  ;;  %6135 = vmatprep.mubr.msk.bf16.mxu0 %vm6513_vm1, %v8361_v10 }
 0x4ac   : > { %6145 = vmatprep.subr.bf16.mxu0 %v8361_v10  ;;  %v4338_v51 = vpop.permute.xlu0 %4337 }
 0x4ad   : > { %v4343_v3 = vsel %vm2380_vm3, %v4338_v51, 0 }
 0x4b2   : > { %6136 = vmatmul.mubr.msk.bf16.vlgmr.msra.gmra.mxu0 %vm1446_vm2, %v3762_v53 }
 0x4b3   : > { %6146 = vmatpush3.bf16.xpose.msra.mxu0 %v3904_v31  ;;  %6147 = vmatprep.mubr.msk.bf16.mxu0 %vm6513_vm1, %v8361_v10 }
 0x4b4   : > { %6157 = vmatprep.subr.bf16.mxu0 %v8361_v10 }
 0x4ba   : > { %v2327_v38 = vpop.xlane.xlu1 %2326  ;;  %6148 = vmatmul.mubr.msk.bf16.vlgmr.msra.gmra.mxu0 %vm1446_vm2, %v3890_v23 }
 0x4bb   : > { %6418 = vrcp.f32 %v2327_v38  ;;  %6158 = vmatpush3.bf16.xpose.msra.mxu0 %v4032_v36  ;;  %6159 = vmatprep.mubr.msk.bf16.mxu0 %vm6513_vm1, %v8361_v10 }
 0x4bc   : > { %6169 = vmatprep.subr.bf16.mxu0 %v8361_v10 }
 0x4be   : > { %v3186_v15 = vpop.permute.xlu1 %3185 }
 0x4c2   : > { %v3323_v9 = vpop.permute.xlu1 %3322  ;;  %6160 = vmatmul.mubr.msk.bf16.vlgmr.msra.gmra.mxu0 %vm1446_vm2, %v4018_v42 }
 0x4c3   : > { %6170 = vmatpush3.bf16.msra.mxu0 %v4343_v3  ;;  %6171 = vmatprep.mubr.msk.bf16.mxu0 %vm6513_vm1, %v8361_v10  ;;  %v3328_v6 = vsel %vm1446_vm2, %v3323_v9, 0 }
 0x4c4   : > { %6181 = vmatprep.subr.bf16.mxu0 %v8361_v10 }
 0x4c6   : > { %v3314_v26 = vpop.permute.xlu1 %3313 }
 0x4c8   : > { %v6419_v19 = vpop.eup %6418 }
 0x4c9   : > { %v2359_v39 = vmul.f32 %v6419_v19, %v7536_v48 }
 0x4ca   : > { %v3451_v47 = vpop.permute.xlu1 %3450 }
 0x4cb   : > { %v2375_v44 = vpack.c.bf16 %v2359_v39, %v2359_v39  ;;  %v3456_v54 = vsel %vm1446_vm2, %v3451_v47, 0 }
 0x4cd   : > { %6070 = vmatmul.mubr.msk.bf16.vlgmr.msra.gmra.mxu1 %vm2376_vm5, %v2375_v44 }
 0x4ce   : > { %6080 = vmatpush3.bf16.xpose.msra.mxu1 %v3200_v14  ;;  %v3442_v60 = vpop.permute.xlu1 %3441  ;;  %6081 = vmatprep.mubr.msk.bf16.mxu1 %vm6513_vm1, %v8361_v10 }
 0x4cf   : > { %6091 = vmatprep.subr.bf16.mxu1 %v8361_v10 }
 0x4d2   : > { %v3579_v29 = vpop.permute.xlu1 %3578 }
 0x4d3   : > { %v3584_v7 = vsel %vm1446_vm2, %v3579_v29, 0 }
 0x4d5   : > { %6082 = vmatmul.mubr.msk.bf16.vlgmr.msra.gmra.mxu1 %vm1446_vm2, %v3186_v15 }
 0x4d6   : > { %6092 = vmatpush3.bf16.xpose.msra.mxu1 %v3328_v6  ;;  %v3570_v48 = vpop.permute.xlu1 %3569  ;;  %6093 = vmatprep.mubr.msk.bf16.mxu1 %vm6513_vm1, %v8361_v10 }
 0x4d7   : > { %6103 = vmatprep.subr.bf16.mxu1 %v8361_v10 }
 0x4da   : > { %v3707_v55 = vpop.permute.xlu1 %3706 }
 0x4db   : > { %v3712_v30 = vsel %vm1446_vm2, %v3707_v55, 0 }
 0x4dd   : > { %6094 = vmatmul.mubr.msk.bf16.vlgmr.msra.gmra.mxu1 %vm1446_vm2, %v3314_v26 }
 0x4de   : > { %6104 = vmatpush3.bf16.xpose.msra.mxu1 %v3456_v54  ;;  %6105 = vmatprep.mubr.msk.bf16.mxu1 %vm6513_vm1, %v8361_v10  ;;  %v3698_v8 = vpop.permute.xlu1 %3697 }
 0x4df   : > { %6115 = vmatprep.subr.bf16.mxu1 %v8361_v10 }
 0x4e2   : > { %v3835_v52 = vpop.permute.xlu1 %3834 }
 0x4e3   : > { %v3840_v59 = vsel %vm1446_vm2, %v3835_v52, 0 }
 0x4e5   : > { %6106 = vmatmul.mubr.msk.bf16.vlgmr.msra.gmra.mxu1 %vm1446_vm2, %v3442_v60 }
 0x4e6   : > { %6116 = vmatpush3.bf16.xpose.msra.mxu1 %v3584_v7  ;;  %6117 = vmatprep.mubr.msk.bf16.mxu1 %vm6513_vm1, %v8361_v10  ;;  %v3826_v32 = vpop.permute.xlu1 %3825 }
 0x4e7   : > { %6127 = vmatprep.subr.bf16.mxu1 %v8361_v10 }
 0x4ea   : > { %v3963_v43 = vpop.permute.xlu1 %3962 }
 0x4eb   : > { %v3968_v2 = vsel %vm1446_vm2, %v3963_v43, 0 }
 0x4ed   : > { %6118 = vmatmul.mubr.msk.bf16.vlgmr.msra.gmra.mxu1 %vm1446_vm2, %v3570_v48 }
 0x4ee   : > { %6128 = vmatpush3.bf16.xpose.msra.mxu1 %v3712_v30  ;;  %6129 = vmatprep.mubr.msk.bf16.mxu1 %vm6513_vm1, %v8361_v10  ;;  %v3954_v61 = vpop.permute.xlu1 %3953 }
 0x4ef   : > { %6139 = vmatprep.subr.bf16.mxu1 %v8361_v10 }
 0x4f2   : > { %v4091_v22 = vpop.permute.xlu1 %4090 }
 0x4f3   : > { %v7788_v18 = vpop.f32.mrf.mxu0  ;;  %v4096_v46 = vsel %vm1446_vm2, %v4091_v22, 0 }
 0x4f5   : > { %v5981_v0 = vpop.f32.mrf.mxu0  ;;  %6130 = vmatmul.mubr.msk.bf16.vlgmr.msra.gmra.mxu1 %vm1446_vm2, %v3698_v8 }
 0x4f6   : > { %6140 = vmatpush3.bf16.xpose.msra.mxu1 %v3840_v59  ;;  %6141 = vmatprep.mubr.msk.bf16.mxu1 %vm6513_vm1, %v8361_v10  ;;  %v4082_v21 = vpop.permute.xlu1 %4081 }
 0x4f7   : > { %v2421_v50 = vpop.f32.mrf.mxu0  ;;  %6151 = vmatprep.subr.bf16.mxu1 %v8361_v10 }
 0x4f9   : > { %v5982_v25 = vpop.f32.mrf.mxu0 }
 0x4fa   : > { %v4393_v56 = vpop.permute.xlu1 %4392 }
 0x4fb   : > { %v7795_v40 = vpop.f32.mrf.mxu1  ;;  %v7797_v1 = vpop.f32.mrf.mxu0  ;;  %v4398_v15 = vsel %vm2380_vm3, %v4393_v56, 0 }
 0x4fc   : > { %v5226_v41 = vcombine.low %v7788_v18, %v7795_v40 }
 0x4fd   : > { %v5987_v13 = vpop.f32.mrf.mxu1  ;;  %v5993_v5 = vpop.f32.mrf.mxu0  ;;  %6142 = vmatmul.mubr.msk.bf16.vlgmr.msra.gmra.mxu1 %vm1446_vm2, %v3826_v32 }
 0x4fe   : > { %6152 = vmatpush3.bf16.xpose.msra.mxu1 %v3968_v2  ;;  %6153 = vmatprep.mubr.msk.bf16.mxu1 %vm6513_vm1, %v8361_v10 }
 0x4ff   : > { %v2467_v12 = vpop.f32.mrf.mxu1  ;;  %v2513_v57 = vpop.f32.mrf.mxu0  ;;  %6163 = vmatprep.subr.bf16.mxu1 %v8361_v10 }
 0x501   : > { %v5988_v27 = vpop.f32.mrf.mxu1  ;;  %v5994_v35 = vpop.f32.mrf.mxu0 }
 0x503   : > { %v7806_v28 = vpop.f32.mrf.mxu1  ;;  %v7808_v49 = vpop.f32.mrf.mxu0 }
 0x504   : > { %v5227_v16 = vcombine.low %v7797_v1, %v7806_v28 }
 0x505   : > { %v5999_v53 = vpop.f32.mrf.mxu1  ;;  %v6005_v11 = vpop.f32.mrf.mxu0  ;;  %6154 = vmatmul.mubr.msk.bf16.vlgmr.msra.gmra.mxu1 %vm1446_vm2, %v3954_v61 }
 0x506   : > { %6164 = vmatpush3.bf16.xpose.msra.mxu1 %v4096_v46  ;;  %6165 = vmatprep.mubr.msk.bf16.mxu1 %vm6513_vm1, %v8361_v10 }
 0x507   : > { %v2559_v58 = vpop.f32.mrf.mxu1  ;;  %v2605_v24 = vpop.f32.mrf.mxu0  ;;  %6175 = vmatprep.subr.bf16.mxu1 %v8361_v10 }
 0x509   : > { %v6000_v23 = vpop.f32.mrf.mxu1  ;;  %v6006_v31 = vpop.f32.mrf.mxu0 }
 0x50b   : > { %v7817_v42 = vpop.f32.mrf.mxu1  ;;  %v7819_v36 = vpop.f32.mrf.mxu0 }
 0x50c   : > { %v5228_v38 = vcombine.low %v7808_v49, %v7817_v42 }
 0x50d   : > { %v6011_v51 = vpop.f32.mrf.mxu1  ;;  %v6017_v3 = vpop.f32.mrf.mxu0  ;;  %6166 = vmatmul.mubr.msk.bf16.vlgmr.msra.gmra.mxu1 %vm1446_vm2, %v4082_v21 }
 0x50e   : > { %6176 = vmatpush3.bf16.msra.mxu1 %v4398_v15  ;;  %6177 = vmatprep.mubr.msk.bf16.mxu1 %vm6513_vm1, %v8361_v10 }
 0x50f   : > { %v2651_v9 = vpop.f32.mrf.mxu1  ;;  %v2697_v26 = vpop.f32.mrf.mxu0  ;;  %6187 = vmatprep.subr.bf16.mxu1 %v8361_v10 }
 0x511   : > { %v6012_v19 = vpop.f32.mrf.mxu1  ;;  %v6018_v39 = vpop.f32.mrf.mxu0 }
 0x513   : > { %v7828_v47 = vpop.f32.mrf.mxu1  ;;  %v7830_v44 = vpop.f32.mrf.mxu0 }
 0x514   : > { %v5229_v14 = vcombine.low %v7819_v36, %v7828_v47 }
 0x515   : > { %v6023_v60 = vpop.f32.mrf.mxu1  ;;  %v6029_v29 = vpop.f32.mrf.mxu0 }
 0x517   : > { %v2743_v6 = vpop.f32.mrf.mxu1  ;;  %v2789_v48 = vpop.f32.mrf.mxu0 }
 0x519   : > { %v6024_v55 = vpop.f32.mrf.mxu1  ;;  %v6030_v54 = vpop.f32.mrf.mxu0 }
 0x51b   : > { %v7834_v8 = vpop.f32.mrf.mxu1  ;;  %v7836_v7 = vpop.f32.mrf.mxu0 }
 0x51c   : > { %v5230_v52 = vcombine.low %v7830_v44, %v7834_v8  ;;  %v5683_v8 = vld [vmem:[%s8294_s8] ss:$0 sm:$0xff] }
 0x51d   : > { %v6035_v32 = vpop.f32.mrf.mxu1  ;;  %v6041_v30 = vpop.f32.mrf.mxu0 }
 0x51f   : > { %v2835_v43 = vpop.f32.mrf.mxu1  ;;  %v2881_v59 = vpop.f32.mrf.mxu0 }
 0x521   : > { %v6036_v0 = vpop.f32.mrf.mxu1  ;;  %v6042_v50 = vpop.f32.mrf.mxu0 }
 0x523   : > { %v7840_v61 = vpop.f32.mrf.mxu1  ;;  %v7842_v25 = vpop.f32.mrf.mxu0 }
 0x524   : > { %v5231_v2 = vcombine.low %v7836_v7, %v7840_v61 }
 0x525   : > { %v6047_v13 = vpop.f32.mrf.mxu1  ;;  %v6053_v5 = vpop.f32.mrf.mxu0 }
 0x527   : > { %v2927_v22 = vpop.f32.mrf.mxu1  ;;  %v2973_v12 = vpop.f32.mrf.mxu0 }
 0x529   : > { %v6048_v57 = vpop.f32.mrf.mxu1  ;;  %v6054_v27 = vpop.f32.mrf.mxu0 }
 0x52b   : > { %v7846_v35 = vpop.f32.mrf.mxu0 }
 0x52d   : > { %v6065_v21 = vpop.f32.mrf.mxu0 }
 0x52f   : > { %v3065_v46 = vpop.f32.mrf.mxu0 }
 0x531   : > { %v6066_v53 = vpop.f32.mrf.mxu0 }
 0x54a   : > { %v7848_v11 = vpop.f32.mrf.mxu0 }
 0x54b   : > { %v4138_v58 = vsel %vm2183_vm4, %v7848_v11, -inf }
 0x54c   : > { %4139 = vmax.xlane.f32.xlu0 %v4138_v58  ;;  %v6077_v24 = vpop.f32.mrf.mxu0 }
 0x54e   : > { %v3175_v23 = vpop.f32.mrf.mxu0 }
 0x550   : > { %v6078_v31 = vpop.f32.mrf.mxu0 }
 0x552   : > { %v7852_v56 = vpop.f32.mrf.mxu0 }
 0x553   : > { %v4144_v15 = vsel %vm2183_vm4, %v7852_v56, -inf }
 0x554   : > { %4145 = vmax.xlane.f32.xlu0 %v4144_v15  ;;  %v6089_v51 = vpop.f32.mrf.mxu0 }
 0x556   : > { %v3303_v3 = vpop.f32.mrf.mxu0 }
 0x558   : > { %v7856_v9 = vpop.f32.mrf.mxu1  ;;  %v6090_v26 = vpop.f32.mrf.mxu0 }
 0x559   : > { %v8425_v7 = vcombine.low %v7842_v25, %v7856_v9 }
 0x55a   : > { %v6059_v39 = vpop.f32.mrf.mxu1  ;;  %v7860_v60 = vpop.f32.mrf.mxu0 }
 0x55c   : > { %v3019_v29 = vpop.f32.mrf.mxu1  ;;  %v6101_v6 = vpop.f32.mrf.mxu0 }
 0x55e   : > { %v6060_v48 = vpop.f32.mrf.mxu1  ;;  %v3431_v55 = vpop.f32.mrf.mxu0 }
 0x560   : > { %v6102_v54 = vpop.f32.mrf.mxu0 }
 0x562   : > { %v7862_v32 = vpop.f32.mrf.mxu0 }
 0x564   : > { %v6113_v30 = vpop.f32.mrf.mxu0 }
 0x566   : > { %v3559_v43 = vpop.f32.mrf.mxu0 }
 0x568   : > { %v6114_v59 = vpop.f32.mrf.mxu0 }
 0x56a   : > { %v7864_v0 = vpop.f32.mrf.mxu0 }
 0x56c   : > { %v6125_v50 = vpop.f32.mrf.mxu0 }
 0x56e   : > { %v3687_v13 = vpop.f32.mrf.mxu0 }
 0x56f   : > { %v4150_v13 = vsel %vm2183_vm4, %v7860_v60, -inf }
 0x570   : > { %v6126_v5 = vpop.f32.mrf.mxu0 }
 0x572   : > { %v7866_v22 = vpop.f32.mrf.mxu0 }
 0x574   : > { %v6137_v12 = vpop.f32.mrf.mxu0 }
 0x576   : > { %v3815_v57 = vpop.f32.mrf.mxu0 }
 0x577   : > { %v4156_v57 = vsel %vm2183_vm4, %v7862_v32, -inf }
 0x578   : > { %v6138_v27 = vpop.f32.mrf.mxu0 }
 0x57a   : > { %v7868_v21 = vpop.f32.mrf.mxu0 }
 0x57c   : > { %v6149_v46 = vpop.f32.mrf.mxu0 }
 0x57e   : > { %v3943_v53 = vpop.f32.mrf.mxu0 }
 0x580   : > { %v6150_v58 = vpop.f32.mrf.mxu0 }
 0x581   : > { %v4162_v58 = vsel %vm2183_vm4, %v7864_v0, -inf }
 0x582   : > { %v7870_v24 = vpop.f32.mrf.mxu0 }
 0x584   : > { %v6161_v23 = vpop.f32.mrf.mxu0 }
 0x586   : > { %v4071_v31 = vpop.f32.mrf.mxu0 }
 0x588   : > { %v6162_v15 = vpop.f32.mrf.mxu0 }
 0x589   : > { %v4168_v15 = vsel %vm2183_vm4, %v7866_v22, -inf }
 0x58d   : > { %v7872_v51 = vpop.f32.mrf.mxu1 }
 0x58f   : > { %v6071_v3 = vpop.f32.mrf.mxu1 }
 0x591   : > { %v3111_v26 = vpop.f32.mrf.mxu1 }
 0x593   : > { %v6072_v39 = vpop.f32.mrf.mxu1 }
 0x595   : > { %v7874_v29 = vpop.f32.mrf.mxu1 }
 0x596   : > { %v4141_v6 = vsel %vm2183_vm4, %v7874_v29, -inf }
 0x597   : > { %4142 = vmax.xlane.f32.xlu1 %v4141_v6  ;;  %v6083_v48 = vpop.f32.mrf.mxu1  ;;  %v4174_v6 = vsel %vm2183_vm4, %v7868_v21, -inf }
 0x599   : > { %v3239_v55 = vpop.f32.mrf.mxu1 }
 0x59b   : > { %v6084_v54 = vpop.f32.mrf.mxu1 }
 0x59c   : > { %v4180_v54 = vsel %vm2183_vm4, %v7870_v24, -inf }
 0x59d   : > { %v7878_v30 = vpop.f32.mrf.mxu1 }
 0x59e   : > { %v4147_v43 = vsel %vm2183_vm4, %v7878_v30, -inf }
 0x59f   : > { %4148 = vmax.xlane.f32.xlu0 %v4147_v43  ;;  %v6095_v59 = vpop.f32.mrf.mxu1 }
 0x5a1   : > { %v3367_v50 = vpop.f32.mrf.mxu1 }
 0x5a3   : > { %4151 = vmax.xlane.f32.xlu0 %v4150_v13  ;;  %v6096_v5 = vpop.f32.mrf.mxu1 }
 0x5a5   : > { %v7884_v12 = vpop.f32.mrf.mxu1 }
 0x5a6   : > { %v4153_v27 = vsel %vm2183_vm4, %v7884_v12, -inf }
 0x5a7   : > { %4157 = vmax.xlane.f32.xlu0 %v4156_v57  ;;  %4154 = vmax.xlane.f32.xlu1 %v4153_v27  ;;  %v6107_v46 = vpop.f32.mrf.mxu1 }
 0x5a9   : > { %v3495_v53 = vpop.f32.mrf.mxu1 }
 0x5ab   : > { %4163 = vmax.xlane.f32.xlu0 %v4162_v58  ;;  %v6108_v23 = vpop.f32.mrf.mxu1  ;;  %v7910_v58 = vpop.permute.xlu0 %4447 }
 0x5ad   : > { %v7892_v31 = vpop.f32.mrf.mxu1 }
 0x5ae   : > { %v4159_v3 = vsel %vm2183_vm4, %v7892_v31, -inf }
 0x5af   : > { %4169 = vmax.xlane.f32.xlu0 %v4168_v15  ;;  %4160 = vmax.xlane.f32.xlu1 %v4159_v3  ;;  %v6119_v26 = vpop.f32.mrf.mxu1 }
 0x5b1   : > { %v3623_v39 = vpop.f32.mrf.mxu1 }
 0x5b2   : > { %v7916_v39 = vpop.permute.xlu0 %4557 }
 0x5b3   : > { %4175 = vmax.xlane.f32.xlu0 %v4174_v6  ;;  %v6120_v48 = vpop.f32.mrf.mxu1 }
 0x5b4   : > { %v8417_v48 = vrot.slane %v7076_v62, %v6931_v33  ;;  %v8419_v62 = vrot.slane %v7132_v20, %v6931_v33 }
 0x5b5   : > { %v7900_v55 = vpop.f32.mrf.mxu1 }
 0x5b6   : > { %v4165_v43 = vsel %vm2183_vm4, %v7900_v55, -inf }
 0x5b7   : > { %4181 = vmax.xlane.f32.xlu0 %v4180_v54  ;;  %4166 = vmax.xlane.f32.xlu1 %v4165_v43  ;;  %v6131_v59 = vpop.f32.mrf.mxu1 }
 0x5b8   : > { %v7924_v59 = vpop.permute.xlu0 %4667 }
 0x5b9   : > { %v3751_v50 = vpop.f32.mrf.mxu1 }
 0x5bb   : > { %v6132_v13 = vpop.f32.mrf.mxu1 }
 0x5bd   : > { %v7906_v5 = vpop.f32.mrf.mxu1 }
 0x5be   : > { %v4171_v57 = vsel %vm2183_vm4, %v7906_v5, -inf }
 0x5bf   : > { %4172 = vmax.xlane.f32.xlu1 %v4171_v57  ;;  %v6143_v27 = vpop.f32.mrf.mxu1 }
 0x5c1   : > { %v3879_v46 = vpop.f32.mrf.mxu1 }
 0x5c3   : > { %v6144_v53 = vpop.f32.mrf.mxu1 }
 0x5c4   : > { %v8418_v53 = vrot.slane %v7180_v34, %v6931_v33 }
 0x5c5   : > { %v7912_v23 = vpop.f32.mrf.mxu1 }
 0x5c6   : > { %v4177_v15 = vsel %vm2183_vm4, %v7912_v23, -inf }
 0x5c7   : > { %4178 = vmax.xlane.f32.xlu1 %v4177_v15  ;;  %v6155_v3 = vpop.f32.mrf.mxu1 }
 0x5c9   : > { %v4007_v26 = vpop.f32.mrf.mxu1 }
 0x5cb   : > { %v6156_v6 = vpop.f32.mrf.mxu1 }
 0x5cd   : > { %4777 = vrot.lane.b32.xlu0 %v8417_v48, %s6515_s17  ;;  %v7922_v54 = vpop.f32.mrf.mxu1 }
 0x5cf   : > { %v6167_v43 = vpop.f32.mrf.mxu1 }
 0x5d0   : > { %v7950_v43 = vpop.permute.xlu1 %4502 }
 0x5d1   : > { %v4135_v50 = vpop.f32.mrf.mxu1 }
 0x5d3   : > { %v6168_v13 = vpop.f32.mrf.mxu1 }
 0x5d5   : > { %v4140_v57 = vpop.xlane.xlu0 %4139 }
 0x5d6   : > { %v4186_v27 = vsub.f32 %v7848_v11, %v4140_v57  ;;  %v8420_v11 = vrot.slane %v8392_v17, %v6931_v33  ;;  %v7952_v17 = vpop.permute.xlu1 %4612 }
 0x5d8   : > { %v4202_v46 = vmul.f32 1.442695, %v4186_v27  ;;  %4832 = vrot.lane.b32.xlu1 %v8418_v53, %s6515_s17 }
 0x5da   : > { %6420 = vpow2.f32 %v4202_v46  ;;  %v7954_v50 = vpop.permute.xlu1 %4722 }
 0x5dc   : > { %4887 = vrot.lane.b32.xlu1 %v8419_v62, %s6515_s17 }
 0x5dd   : > { %v4146_v15 = vpop.xlane.xlu0 %4145 }
 0x5de   : > { %v4188_v3 = vsub.f32 %v7852_v56, %v4146_v15  ;;  %v4183_v56 = vsel %vm2183_vm4, %v7922_v54, -inf }
 0x5e0   : > { %v4206_v26 = vmul.f32 1.442695, %v4188_v3  ;;  %4942 = vrot.lane.b32.xlu1 %v8420_v11, %s6515_s17 }
 0x5e2   : > { %6422 = vpow2.f32 %v4206_v26 }
 0x5e7   : > { %v7940_v6 = vpop.eup %6420 }
 0x5e8   : > { %v4234_v34 = vsel %vm2183_vm4, %v7940_v6, 0.0 }
 0x5ec   : > { %4235 = vadd.xlane.f32.xlu0 %v4234_v34 }
 0x5ef   : > { %v7944_v48 = vpop.eup %6422 }
 0x5f0   : > { %v4240_v20 = vsel %vm2183_vm4, %v7944_v48, 0.0 }
 0x5f1   : > { %4241 = vadd.xlane.f32.xlu0 %v4240_v20 }
 0x604   : > { %4184 = vmax.xlane.f32.xlu1 %v4183_v56 }
 0x620   : > { %v4143_v13 = vpop.xlane.xlu1 %4142 }
 0x621   : > { %v4187_v57 = vsub.f32 %v7874_v29, %v4143_v13 }
 0x623   : > { %v4204_v27 = vmul.f32 1.442695, %v4187_v57 }
 0x625   : > { %6424 = vpow2.f32 %v4204_v27 }
 0x628   : > { %v4149_v46 = vpop.xlane.xlu0 %4148 }
 0x629   : > { %v4189_v53 = vsub.f32 %v7878_v30, %v4149_v46 }
 0x62b   : > { %v4208_v62 = vmul.f32 1.442695, %v4189_v53 }
 0x62c   : > { %v4152_v15 = vpop.xlane.xlu0 %4151 }
 0x62d   : > { %6426 = vpow2.f32 %v4208_v62  ;;  %v4190_v3 = vsub.f32 %v7860_v60, %v4152_v15 }
 0x62f   : > { %v4210_v26 = vmul.f32 1.442695, %v4190_v3 }
 0x630   : > { %v4158_v11 = vpop.xlane.xlu0 %4157  ;;  %v4155_v34 = vpop.xlane.xlu1 %4154 }
 0x631   : > { %6428 = vpow2.f32 %v4210_v26  ;;  %v4192_v20 = vsub.f32 %v7862_v32, %v4158_v11  ;;  %v4191_v56 = vsub.f32 %v7884_v12, %v4155_v34 }
 0x632   : > { %v7961_v19 = vpop.eup %6424 }
 0x633   : > { %v4214_v29 = vmul.f32 1.442695, %v4192_v20  ;;  %v4212_v13 = vmul.f32 1.442695, %v4191_v56  ;;  %v4237_v30 = vsel %vm2183_vm4, %v7961_v19, 0.0 }
 0x634   : > { %v4164_v57 = vpop.xlane.xlu0 %4163  ;;  %4238 = vadd.xlane.f32.xlu1 %v4237_v30 }
 0x635   : > { %6430 = vpow2.f32 %v4214_v29  ;;  %v4194_v60 = vsub.f32 %v7864_v0, %v4164_v57 }
 0x636   : > { %6432 = vpow2.f32 %v4212_v13 }
 0x637   : > { %v4218_v15 = vmul.f32 1.442695, %v4194_v60 }
 0x638   : > { %v4161_v27 = vpop.xlane.xlu1 %4160  ;;  %v4170_v46 = vpop.xlane.xlu0 %4169 }
 0x639   : > { %v4193_v53 = vsub.f32 %v7892_v31, %v4161_v27  ;;  %v4196_v3 = vsub.f32 %v7866_v22, %v4170_v46 }
 0x63a   : > { %v7967_v32 = vpop.eup %6426 }
 0x63b   : > { %v4216_v12 = vmul.f32 1.442695, %v4193_v53  ;;  %v4243_v62 = vsel %vm2183_vm4, %v7967_v32, 0.0  ;;  %v4222_v11 = vmul.f32 1.442695, %v4196_v3 }
 0x63c   : > { %4244 = vadd.xlane.f32.xlu1 %v4243_v62 }
 0x63d   : > { %6434 = vpow2.f32 %v4216_v12 }
 0x63e   : > { %v7972_v26 = vpop.eup %6428  ;;  %6436 = vpow2.f32 %v4218_v15 }
 0x63f   : > { %v4246_v0 = vsel %vm2183_vm4, %v7972_v26, 0.0  ;;  %6438 = vpow2.f32 %v4222_v11  ;;  %v4176_v11 = vpop.xlane.xlu0 %4175 }
 0x640   : > { %4247 = vadd.xlane.f32.xlu0 %v4246_v0  ;;  %v4167_v31 = vpop.xlane.xlu1 %4166 }
 0x641   : > { %v4195_v34 = vsub.f32 %v7900_v55, %v4167_v31  ;;  %v8421_v31 = vrot.slane %v8398_v4, %v6931_v33 }
 0x642   : > { %v7977_v20 = vpop.eup %6430 }
 0x643   : > { %v7979_v56 = vpop.eup %6432  ;;  %v4220_v29 = vmul.f32 1.442695, %v4195_v34  ;;  %v4252_v22 = vsel %vm2183_vm4, %v7977_v20, 0.0  ;;  %v4182_v34 = vpop.xlane.xlu0 %4181 }
 0x644   : > { %4253 = vadd.xlane.f32.xlu0 %v4252_v22  ;;  %v4249_v13 = vsel %vm2183_vm4, %v7979_v56, 0.0 }
 0x645   : > { %4250 = vadd.xlane.f32.xlu1 %v4249_v13  ;;  %6440 = vpow2.f32 %v4220_v29  ;;  %v4198_v29 = vsub.f32 %v7868_v21, %v4176_v11  ;;  %v8422_v13 = vrot.slane %v8393_v37, %v6931_v33 }
 0x647   : > { %v8011_v22 = vpop.permute.xlu0 %4777 }
 0x648   : > { %v4173_v30 = vpop.xlane.xlu1 %4172 }
 0x649   : > { %v4197_v57 = vsub.f32 %v7906_v5, %v4173_v30  ;;  %v4226_v30 = vmul.f32 1.442695, %v4198_v29 }
 0x64a   : > { %v7986_v60 = vpop.eup %6434 }
 0x64b   : > { %v4224_v55 = vmul.f32 1.442695, %v4197_v57  ;;  %v4255_v27 = vsel %vm2183_vm4, %v7986_v60, 0.0  ;;  %v7990_v46 = vpop.eup %6436  ;;  %v4200_v57 = vsub.f32 %v7870_v24, %v4182_v34 }
 0x64c   : > { %4256 = vadd.xlane.f32.xlu1 %v4255_v27  ;;  %v4258_v53 = vsel %vm2183_vm4, %v7990_v46, 0.0  ;;  %v7994_v12 = vpop.eup %6438 }
 0x64d   : > { %6442 = vpow2.f32 %v4224_v55  ;;  %v4264_v15 = vsel %vm2183_vm4, %v7994_v12, 0.0  ;;  %v4230_v4 = vmul.f32 1.442695, %v4200_v57 }
 0x650   : > { %4259 = vadd.xlane.f32.xlu1 %v4258_v53  ;;  %v4179_v55 = vpop.xlane.xlu1 %4178 }
 0x651   : > { %v4199_v53 = vsub.f32 %v7912_v23, %v4179_v55  ;;  %v4453_v23 = vsel %vm2380_vm3, %v7910_v58, 0 }
 0x652   : > { %v7996_v62 = vpop.eup %6440 }
 0x653   : > { %v4261_v5 = vsel %vm2183_vm4, %v7996_v62, 0.0  ;;  %v4228_v21 = vmul.f32 1.442695, %v4199_v53 }
 0x654   : > { %4262 = vadd.xlane.f32.xlu0 %v4261_v5  ;;  %4265 = vadd.xlane.f32.xlu1 %v4264_v15  ;;  %v8019_v15 = vpop.permute.xlu1 %4832 }
 0x658   : > { %v8021_v37 = vpop.permute.xlu1 %4887 }
 0x65a   : > { %v8002_v3 = vpop.eup %6442 }
 0x65b   : > { %v4267_v0 = vsel %vm2183_vm4, %v8002_v3, 0.0 }
 0x65c   : > { %4268 = vadd.xlane.f32.xlu0 %v4267_v0  ;;  %v8029_v29 = vpop.permute.xlu1 %4942 }
 0x665   : > { %5052 = vrot.lane.b32.xlu1 %v8421_v31, %s6515_s17 }
 0x672   : > { %4997 = vrot.lane.b32.xlu0 %v8422_v13, %s6515_s17 }
 0x675   : > { %v4236_v27 = vpop.xlane.xlu0 %4235 }
 0x676   : > { %6444 = vrcp.f32 %v4236_v27 }
 0x677   : > { %6446 = vpow2.f32 %v4226_v30 }
 0x67a   : > { %v4242_v5 = vpop.xlane.xlu0 %4241 }
 0x67b   : > { %6448 = vrcp.f32 %v4242_v5 }
 0x67c   : > { %6450 = vpow2.f32 %v4230_v4  ;;  %v4563_v4 = vsel %vm2380_vm3, %v7916_v39, 0  ;;  %v8423_v39 = vrot.slane %v8416_v63, %v6931_v33 }
 0x67d   : > { %6452 = vpow2.f32 %v4228_v21 }
 0x683   : > { %v6445_v0 = vpop.eup %6444 }
 0x684   : > { %v4298_v11 = vmul.f32 %v6445_v0, %v7940_v6  ;;  %v8024_v24 = vpop.eup %6446  ;;  %v8424_v0 = vrot.slane %v8399_v45, %v6931_v33 }
 0x685   : > { %v4270_v13 = vsel %vm2183_vm4, %v8024_v24, 0.0 }
 0x686   : > { %v4314_v31 = vpack.c.bf16 %v4298_v11, %v4298_v11 }
 0x688   : > { %v6449_v34 = vpop.eup %6448  ;;  %6172 = vmatmul.mubr.msk.bf16.vlgmr.msra.gmra.mxu0 %vm2376_vm5, %v4314_v31 }
 0x689   : > { %6182 = vmatpush3.bf16.msra.mxu0 %v4453_v23  ;;  %6183 = vmatprep.mubr.msk.bf16.mxu0 %vm6513_vm1, %v8361_v10  ;;  %v8035_v30 = vpop.eup %6450  ;;  %v4300_v6 = vmul.f32 %v6449_v34, %v7944_v48 }
 0x68a   : > { %4271 = vadd.xlane.f32.xlu1 %v4270_v13  ;;  %6193 = vmatprep.subr.bf16.mxu0 %v8361_v10  ;;  %v8039_v57 = vpop.eup %6452  ;;  %v4276_v58 = vsel %vm2183_vm4, %v8035_v30, 0.0 }
 0x68b   : > { %v4316_v53 = vpack.c.bf16 %v4300_v6, %v4300_v6  ;;  %v4273_v21 = vsel %vm2183_vm4, %v8039_v57, 0.0 }
 0x68d   : > { %v4185_v55 = vpop.xlane.xlu1 %4184 }
 0x68e   : > { %4277 = vadd.xlane.f32.xlu1 %v4276_v58  ;;  %v4201_v27 = vsub.f32 %v7922_v54, %v4185_v55  ;;  %v4508_v55 = vsel %vm2380_vm3, %v7950_v43, 0 }
 0x690   : > { %v4232_v5 = vmul.f32 1.442695, %v4201_v27  ;;  %6184 = vmatmul.mubr.msk.bf16.vlgmr.msra.gmra.mxu0 %vm2376_vm5, %v4316_v53 }
 0x691   : > { %6194 = vmatpush3.bf16.msra.mxu0 %v4563_v4  ;;  %4274 = vadd.xlane.f32.xlu0 %v4273_v21  ;;  %v4618_v4 = vsel %vm2380_vm3, %v7952_v17, 0 }
 0x692   : > { %6454 = vpow2.f32 %v4232_v5  ;;  %6195 = vmatprep.mubr.msk.bf16.mxu0 %vm6513_vm1, %v8361_v10  ;;  %6205 = vmatprep.subr.bf16.mxu0 %v8361_v10 }
 0x69f   : > { %v8052_v48 = vpop.eup %6454  ;;  %5162 = vrot.lane.b32.xlu1 %v8423_v39, %s6515_s17 }
 0x6a0   : > { %v4279_v54 = vsel %vm2183_vm4, %v8052_v48, 0.0 }
 0x6a1   : > { %4280 = vadd.xlane.f32.xlu0 %v4279_v54  ;;  %v4673_v54 = vsel %vm2380_vm3, %v7924_v59, 0  ;;  %v4728_v59 = vsel %vm2380_vm3, %v7954_v50, 0 }
 0x6b7   : > { %5107 = vrot.lane.b32.xlu0 %v8424_v0, %s6515_s17 }
 0x6bd   : > { %v4239_v11 = vpop.xlane.xlu1 %4238 }
 0x6be   : > { %6456 = vrcp.f32 %v4239_v11 }
 0x6c5   : > { %v4245_v31 = vpop.xlane.xlu1 %4244 }
 0x6c6   : > { %6458 = vrcp.f32 %v4245_v31 }
 0x6c9   : > { %v4248_v34 = vpop.xlane.xlu0 %4247 }
 0x6ca   : > { %6460 = vrcp.f32 %v4248_v34 }
 0x6cb   : > { %v6457_v23 = vpop.eup %6456 }
 0x6cc   : > { %v4299_v13 = vmul.f32 %v6457_v23, %v7961_v19 }
 0x6cd   : > { %v4254_v63 = vpop.xlane.xlu0 %4253 }
 0x6ce   : > { %v4315_v6 = vpack.c.bf16 %v4299_v13, %v4299_v13  ;;  %6462 = vrcp.f32 %v4254_v63  ;;  %v4251_v58 = vpop.xlane.xlu1 %4250 }
 0x6cf   : > { %6464 = vrcp.f32 %v4251_v58 }
 0x6d0   : > { %6178 = vmatmul.mubr.msk.bf16.vlgmr.msra.gmra.mxu1 %vm2376_vm5, %v4315_v6  ;;  %v4838_v6 = vsel %vm2380_vm3, %v8019_v15, 0 }
 0x6d1   : > { %6188 = vmatpush3.bf16.msra.mxu1 %v4508_v55  ;;  %6189 = vmatprep.mubr.msk.bf16.mxu1 %vm6513_vm1, %v8361_v10 }
 0x6d2   : > { %6199 = vmatprep.subr.bf16.mxu1 %v8361_v10 }
 0x6d3   : > { %v6459_v33 = vpop.eup %6458 }
 0x6d4   : > { %v4301_v45 = vmul.f32 %v6459_v33, %v7967_v32  ;;  %v4893_v33 = vsel %vm2380_vm3, %v8021_v37, 0 }
 0x6d5   : > { %v4257_v27 = vpop.xlane.xlu1 %4256 }
 0x6d6   : > { %v4317_v19 = vpack.c.bf16 %v4301_v45, %v4301_v45  ;;  %6466 = vrcp.f32 %v4257_v27 }
 0x6d7   : > { %v6461_v53 = vpop.eup %6460 }
 0x6d8   : > { %v4302_v43 = vmul.f32 %v6461_v53, %v7972_v26  ;;  %6190 = vmatmul.mubr.msk.bf16.vlgmr.msra.gmra.mxu1 %vm2376_vm5, %v4317_v19  ;;  %v4948_v19 = vsel %vm2380_vm3, %v8029_v29, 0 }
 0x6d9   : > { %6200 = vmatpush3.bf16.msra.mxu1 %v4618_v4  ;;  %6201 = vmatprep.mubr.msk.bf16.mxu1 %vm6513_vm1, %v8361_v10  ;;  %v4260_v21 = vpop.xlane.xlu1 %4259 }
 0x6da   : > { %v4318_v5 = vpack.c.bf16 %v4302_v43, %v4302_v43  ;;  %6211 = vmatprep.subr.bf16.mxu1 %v8361_v10  ;;  %6468 = vrcp.f32 %v4260_v21 }
 0x6db   : > { %v6463_v32 = vpop.eup %6462 }
 0x6dc   : > { %v6465_v39 = vpop.eup %6464  ;;  %6196 = vmatmul.mubr.msk.bf16.vlgmr.msra.gmra.mxu0 %vm2376_vm5, %v4318_v5  ;;  %v4304_v26 = vmul.f32 %v6463_v32, %v7977_v20 }
 0x6dd   : > { %v4303_v17 = vmul.f32 %v6465_v39, %v7979_v56  ;;  %6206 = vmatpush3.bf16.msra.mxu0 %v4673_v54  ;;  %6207 = vmatprep.mubr.msk.bf16.mxu0 %vm6513_vm1, %v8361_v10  ;;  %v4263_v0 = vpop.xlane.xlu0 %4262  ;;  %v4266_v11 = vpop.xlane.xlu1 %4265  ;;  %v4783_v56 = vsel %vm2380_vm3, %v8011_v22, 0 }
 0x6de   : > { %6217 = vmatprep.subr.bf16.mxu0 %v8361_v10  ;;  %6470 = vrcp.f32 %v4263_v0  ;;  %v4320_v34 = vpack.c.bf16 %v4304_v26, %v4304_v26 }
 0x6df   : > { %v4319_v31 = vpack.c.bf16 %v4303_v17, %v4303_v17  ;;  %6472 = vrcp.f32 %v4266_v11 }
 0x6e1   : > { %6202 = vmatmul.mubr.msk.bf16.vlgmr.msra.gmra.mxu1 %vm2376_vm5, %v4319_v31  ;;  %v5053_v4 = vpop.permute.xlu1 %5052 }
 0x6e2   : > { %6212 = vmatpush3.bf16.msra.mxu1 %v4728_v59  ;;  %6213 = vmatprep.mubr.msk.bf16.mxu1 %vm6513_vm1, %v8361_v10  ;;  %v5058_v29 = vsel %vm2380_vm3, %v5053_v4, 0 }
 0x6e3   : > { %6223 = vmatprep.subr.bf16.mxu1 %v8361_v10  ;;  %v6467_v20 = vpop.eup %6466 }
 0x6e4   : > { %6208 = vmatmul.mubr.msk.bf16.vlgmr.msra.gmra.mxu0 %vm2376_vm5, %v4320_v34  ;;  %v4305_v23 = vmul.f32 %v6467_v20, %v7986_v60 }
 0x6e5   : > { %6218 = vmatpush3.bf16.msra.mxu0 %v4783_v56  ;;  %v4269_v13 = vpop.xlane.xlu0 %4268  ;;  %6219 = vmatprep.mubr.msk.bf16.mxu0 %vm6513_vm1, %v8361_v10 }
 0x6e6   : > { %6474 = vrcp.f32 %v4269_v13  ;;  %6229 = vmatprep.subr.bf16.mxu0 %v8361_v10  ;;  %v4321_v50 = vpack.c.bf16 %v4305_v23, %v4305_v23 }
 0x6e7   : > { %v6469_v63 = vpop.eup %6468 }
 0x6e8   : > { %v4306_v58 = vmul.f32 %v6469_v63, %v7990_v46 }
 0x6e9   : > { %6214 = vmatmul.mubr.msk.bf16.vlgmr.msra.gmra.mxu1 %vm2376_vm5, %v4321_v50  ;;  %v4998_v27 = vpop.permute.xlu0 %4997 }
 0x6ea   : > { %6224 = vmatpush3.bf16.msra.mxu1 %v4838_v6  ;;  %6225 = vmatprep.mubr.msk.bf16.mxu1 %vm6513_vm1, %v8361_v10  ;;  %v4322_v60 = vpack.c.bf16 %v4306_v58, %v4306_v58 }
 0x6eb   : > { %6235 = vmatprep.subr.bf16.mxu1 %v8361_v10  ;;  %v6471_v22 = vpop.eup %6470 }
 0x6ec   : > { %v6473_v55 = vpop.eup %6472  ;;  %v4307_v45 = vmul.f32 %v6471_v22, %v7996_v62  ;;  %6220 = vmatmul.mubr.msk.bf16.vlgmr.msra.gmra.mxu0 %vm2376_vm5, %v4322_v60 }
 0x6ed   : > { %6230 = vmatpush3.bf16.msra.mxu0 %v4893_v33  ;;  %6231 = vmatprep.mubr.msk.bf16.mxu0 %vm6513_vm1, %v8361_v10  ;;  %v4308_v15 = vmul.f32 %v6473_v55, %v7994_v12  ;;  %v5003_v12 = vsel %vm2380_vm3, %v4998_v27, 0 }
 0x6ee   : > { %v4323_v46 = vpack.c.bf16 %v4307_v45, %v4307_v45  ;;  %6241 = vmatprep.subr.bf16.mxu0 %v8361_v10 }
 0x6ef   : > { %v4324_v37 = vpack.c.bf16 %v4308_v15, %v4308_v15  ;;  %v5304_v15 = vld [vmem:[%s8293_s7 + $0x10] sm:$0xff] }
 0x6f1   : > { %6226 = vmatmul.mubr.msk.bf16.vlgmr.msra.gmra.mxu1 %vm2376_vm5, %v4323_v46 }
 0x6f2   : > { %6236 = vmatpush3.bf16.msra.mxu1 %v4948_v19  ;;  %6237 = vmatprep.mubr.msk.bf16.mxu1 %vm6513_vm1, %v8361_v10 }
 0x6f3   : > { %v6475_v62 = vpop.eup %6474  ;;  %6247 = vmatprep.subr.bf16.mxu1 %v8361_v10 }
 0x6f4   : > { %v4309_v53 = vmul.f32 %v6475_v62, %v8002_v3  ;;  %6232 = vmatmul.mubr.msk.bf16.vlgmr.msra.gmra.mxu0 %vm2376_vm5, %v4324_v37 }
 0x6f5   : > { %6242 = vmatpush3.bf16.msra.mxu0 %v5003_v12  ;;  %6243 = vmatprep.mubr.msk.bf16.mxu0 %vm6513_vm1, %v8361_v10 }
 0x6f6   : > { %v4325_v43 = vpack.c.bf16 %v4309_v53, %v4309_v53  ;;  %6253 = vmatprep.subr.bf16.mxu0 %v8361_v10 }
 0x6f9   : > { %6238 = vmatmul.mubr.msk.bf16.vlgmr.msra.gmra.mxu1 %vm2376_vm5, %v4325_v43 }
 0x6fa   : > { %6248 = vmatpush3.bf16.msra.mxu1 %v5058_v29  ;;  %6249 = vmatprep.mubr.msk.bf16.mxu1 %vm6513_vm1, %v8361_v10 }
 0x6fb   : > { %6259 = vmatprep.subr.bf16.mxu1 %v8361_v10 }
 0x713   : > { %v4272_v3 = vpop.xlane.xlu1 %4271 }
 0x714   : > { %6476 = vrcp.f32 %v4272_v3 }
 0x717   : > { %v4278_v5 = vpop.xlane.xlu1 %4277 }
 0x71a   : > { %v4275_v21 = vpop.xlane.xlu0 %4274 }
 0x71b   : > { %6478 = vrcp.f32 %v4275_v21  ;;  %v5163_v11 = vpop.permute.xlu1 %5162 }
 0x71c   : > { %6480 = vrcp.f32 %v4278_v5  ;;  %v5168_v20 = vsel %vm2380_vm3, %v5163_v11, 0 }
 0x721   : > { %v6477_v32 = vpop.eup %6476 }
 0x722   : > { %v4310_v39 = vmul.f32 %v6477_v32, %v8024_v24 }
 0x724   : > { %v4326_v54 = vpack.c.bf16 %v4310_v39, %v4310_v39 }
 0x726   : > { %6244 = vmatmul.mubr.msk.bf16.vlgmr.msra.gmra.mxu0 %vm2376_vm5, %v4326_v54 }
 0x727   : > { %6255 = vmatprep.mubr.msk.bf16.mxu0 %vm6513_vm1, %v8361_v10 }
 0x728   : > { %v6479_v17 = vpop.eup %6478 }
 0x729   : > { %v4311_v26 = vmul.f32 %v6479_v17, %v8039_v57  ;;  %v6481_v0 = vpop.eup %6480 }
 0x72a   : > { %v4281_v31 = vpop.xlane.xlu0 %4280  ;;  %v4312_v34 = vmul.f32 %v6481_v0, %v8035_v30  ;;  %v5303_v0 = vld [vmem:[%s8293_s7 + $0x8] sm:$0xff] }
 0x72b   : > { %v4327_v59 = vpack.c.bf16 %v4311_v26, %v4311_v26  ;;  %6482 = vrcp.f32 %v4281_v31  ;;  %v5302_v26 = vld [vmem:[%s8293_s7] sm:$0xff] }
 0x72c   : > { %v4328_v57 = vpack.c.bf16 %v4312_v34, %v4312_v34  ;;  %v5306_v31 = vpack.c.bf16 %v5303_v0, %v5302_v26 }
 0x72d   : > { %6250 = vmatmul.mubr.msk.bf16.vlgmr.msra.gmra.mxu1 %vm2376_vm5, %v4327_v59 }
 0x72e   : > { %6260 = vmatpush3.bf16.msra.mxu1 %v5168_v20  ;;  %v5108_v24 = vpop.permute.xlu0 %5107  ;;  %6261 = vmatprep.mubr.msk.bf16.mxu1 %vm6513_vm1, %v8361_v10 }
 0x72f   : > { %v5113_v56 = vsel %vm2380_vm3, %v5108_v24, 0 }
 0x730   : > { %6254 = vmatpush3.bf16.msra.mxu0 %v5113_v56 }
 0x733   : > { %6256 = vmatmul.mubr.msk.bf16.vlgmr.msra.gmra.mxu0 %vm2376_vm5, %v4328_v57 }
 0x738   : > { %v6483_v23 = vpop.eup %6482 }
 0x739   : > { %v4313_v13 = vmul.f32 %v6483_v23, %v8052_v48  ;;  %v5305_v48 = vld [vmem:[%s8293_s7 + $0x18] sm:$0xff] }
 0x73a   : > { %v5307_v27 = vpack.c.bf16 %v5305_v48, %v5304_v15 }
 0x73b   : > { %v4329_v50 = vpack.c.bf16 %v4313_v13, %v4313_v13 }
 0x73c   : > { %6265 = vmatprep.subr.bf16.mxu0 %v5307_v27 }
 0x73d   : > { %6262 = vmatmul.mubr.msk.bf16.vlgmr.msra.gmra.mxu1 %vm2376_vm5, %v4329_v50  ;;  %6266 = vmatpush3.bf16.msra.mxu0 %v5307_v27 }
 0x73e   : > { %6267 = vmatprep.subr.bf16.mxu0 %v5306_v31 }
 0x741   : > { %6268 = vmatpush3.bf16.msra.mxu0 %v5306_v31 }
 0x748   : > { %v4379_v30 = vpop.f32.mrf.mxu0 }
 0x74a   : > { %v6173_v63 = vpop.f32.mrf.mxu0 }
 0x74c   : > { %v4382_v6 = vpop.f32.mrf.mxu0 }
 0x74e   : > { %v6174_v58 = vpop.f32.mrf.mxu0 }
 0x750   : > { %v4489_v60 = vpop.f32.mrf.mxu0 }
 0x752   : > { %v6185_v22 = vpop.f32.mrf.mxu0 }
 0x754   : > { %v4492_v55 = vpop.f32.mrf.mxu0 }
 0x756   : > { %v6186_v10 = vpop.f32.mrf.mxu0 }
 0x790   : > { %v4434_v33 = vpop.f32.mrf.mxu1 }
 0x791   : > { %v5258_v37 = vcombine.low %v4379_v30, %v4434_v33 }
 0x792   : > { %v6179_v45 = vpop.f32.mrf.mxu1 }
 0x794   : > { %v4437_v46 = vpop.f32.mrf.mxu1 }
 0x796   : > { %v6180_v19 = vpop.f32.mrf.mxu1 }
 0x798   : > { %v4544_v62 = vpop.f32.mrf.mxu1 }
 0x799   : > { %v5259_v53 = vcombine.low %v4489_v60, %v4544_v62 }
 0x79a   : > { %v6191_v12 = vpop.f32.mrf.mxu1 }
 0x79b   : > { %v6312_v4 = vpack.i.bf16 %v5259_v53, %v5258_v37 }
 0x79c   : > { %v4547_v43 = vpop.f32.mrf.mxu1  ;;  %v4599_v29 = vpop.f32.mrf.mxu0 }
 0x79d   : > { %6313 = vrot.lane.b32.xlu0 %v6312_v4, %s6516_s22 }
 0x79e   : > { %v6192_v3 = vpop.f32.mrf.mxu1  ;;  %v6197_v5 = vpop.f32.mrf.mxu0 }
 0x7a0   : > { %v4602_v21 = vpop.f32.mrf.mxu0 }
 0x7a1   : > { %v4654_v32 = vpop.f32.mrf.mxu1 }
 0x7a2   : > { %v6198_v39 = vpop.f32.mrf.mxu0  ;;  %v5260_v56 = vcombine.low %v4599_v29, %v4654_v32 }
 0x7a3   : > { %v6203_v54 = vpop.f32.mrf.mxu1 }
 0x7a4   : > { %v4709_v17 = vpop.f32.mrf.mxu0 }
 0x7a5   : > { %v4657_v11 = vpop.f32.mrf.mxu1 }
 0x7a6   : > { %v6209_v59 = vpop.f32.mrf.mxu0 }
 0x7a7   : > { %v6204_v34 = vpop.f32.mrf.mxu1 }
 0x7a8   : > { %v4712_v20 = vpop.f32.mrf.mxu0 }
 0x7a9   : > { %v4764_v24 = vpop.f32.mrf.mxu1 }
 0x7aa   : > { %v5261_v57 = vcombine.low %v4709_v17, %v4764_v24  ;;  %v6210_v23 = vpop.f32.mrf.mxu0 }
 0x7ab   : > { %v6215_v13 = vpop.f32.mrf.mxu1 }
 0x7ac   : > { %v6317_v50 = vpack.i.bf16 %v5261_v57, %v5260_v56  ;;  %v4819_v63 = vpop.f32.mrf.mxu0 }
 0x7ad   : > { %v4767_v30 = vpop.f32.mrf.mxu1 }
 0x7ae   : > { %6318 = vrot.lane.b32.xlu1 %v6317_v50, %s6516_s22  ;;  %v6221_v58 = vpop.f32.mrf.mxu0 }
 0x7af   : > { %v6216_v6 = vpop.f32.mrf.mxu1 }
 0x7b0   : > { %v4822_v60 = vpop.f32.mrf.mxu0 }
 0x7b1   : > { %v4874_v22 = vpop.f32.mrf.mxu1 }
 0x7b2   : > { %v6222_v55 = vpop.f32.mrf.mxu0  ;;  %v5262_v27 = vcombine.low %v4819_v63, %v4874_v22 }
 0x7b3   : > { %v6227_v10 = vpop.f32.mrf.mxu1 }
 0x7b4   : > { %v4929_v45 = vpop.f32.mrf.mxu0 }
 0x7b5   : > { %v4877_v33 = vpop.f32.mrf.mxu1 }
 0x7b6   : > { %v6233_v15 = vpop.f32.mrf.mxu0 }
 0x7b7   : > { %v6228_v46 = vpop.f32.mrf.mxu1 }
 0x7b8   : > { %v4932_v48 = vpop.f32.mrf.mxu0 }
 0x7b9   : > { %v4984_v19 = vpop.f32.mrf.mxu1  ;;  %v6484_v48 = vld [vmem:[%s6593_s16 + $0x10] sm:$0xf] }
 0x7ba   : > { %v5263_v62 = vcombine.low %v4929_v45, %v4984_v19  ;;  %v6234_v37 = vpop.f32.mrf.mxu0 }
 0x7bb   : > { %v6239_v53 = vpop.f32.mrf.mxu1 }
 0x7bc   : > { %v6322_v12 = vpack.i.bf16 %v5263_v62, %v5262_v27 }
 0x7bd   : > { %v4987_v4 = vpop.f32.mrf.mxu1 }
 0x7be   : > { %6323 = vrot.lane.b32.xlu0 %v6322_v12, %s6516_s22  ;;  %v6485_v12 = vld [vmem:[%s6593_s16 + $0x14] sm:$0xf] }
 0x7bf   : > { %v6240_v43 = vpop.f32.mrf.mxu1 }
 0x7e6   : > { %v5039_v29 = vpop.f32.mrf.mxu0 }
 0x7e8   : > { %v6245_v3 = vpop.f32.mrf.mxu0 }
 0x7ea   : > { %v5042_v5 = vpop.f32.mrf.mxu0 }
 0x7ec   : > { %v6246_v21 = vpop.f32.mrf.mxu0 }
 0x7ed   : > { %v5094_v32 = vpop.f32.mrf.mxu1 }
 0x7ee   : > { %v5264_v34 = vcombine.low %v5039_v29, %v5094_v32  ;;  %v8426_v29 = vld [vmem:[#allocation10_spill] sm:$0xff] }
 0x7ef   : > { %v6251_v39 = vpop.f32.mrf.mxu1 }
 0x7f0   : > { %v8427_v39 = vld [vmem:[#allocation11_spill] sm:$0xff] }
 0x7f1   : > { %v5097_v54 = vpop.f32.mrf.mxu1 }
 0x7f3   : > { %v6252_v17 = vpop.f32.mrf.mxu1  ;;  %v5149_v26 = vpop.f32.mrf.mxu0 }
 0x7f5   : > { %v6257_v0 = vpop.f32.mrf.mxu0 }
 0x7f7   : > { %v5152_v11 = vpop.f32.mrf.mxu0 }
 0x7f8   : > { %v8428_v11 = vld [vmem:[#allocation14_spill] sm:$0xff] }
 0x7f9   : > { %v6258_v31 = vpop.f32.mrf.mxu0 }
 0x7fd   : > { %v5204_v59 = vpop.f32.mrf.mxu1 }
 0x7fe   : > { %v5265_v20 = vcombine.low %v5149_v26, %v5204_v59 }
 0x7ff   : > { %v6263_v24 = vpop.f32.mrf.mxu1 }
 0x800   : > { %v6327_v56 = vpack.i.bf16 %v5265_v20, %v5264_v34  ;;  %v8429_v34 = vld [vmem:[#allocation12_spill] sm:$0xff]  ;;  %v8430_v24 = vld [vmem:[#allocation15_spill] sm:$0xff] }
 0x801   : > { %v5207_v57 = vpop.f32.mrf.mxu1 }
 0x802   : > { %6328 = vrot.lane.b32.xlu1 %v6327_v56, %s6516_s22  ;;  %v8431_v57 = vld [vmem:[#allocation13_spill] sm:$0xff] }
 0x803   : > { %v6264_v23 = vpop.f32.mrf.mxu1 }
 0x80f   : > { %v6314_v13 = vpop.permute.xlu0 %6313 }
 0x810   : > { %v6316_v50 = vunpack.i.h.bf16 %v6314_v13  ;;  %v6315_v30 = vunpack.i.l.bf16 %v6314_v13 }
 0x812   : > { %v5291_v63 = vsel %vm1446_vm2, %v5227_v16, %v6316_v50  ;;  %v5290_v6 = vsel %vm1446_vm2, %v5226_v41, %v6315_v30 }
 0x813   : > { %v5298_v58 = vpack.c.bf16 %v5291_v63, %v5290_v6 }
 0x815   : > { %6269 = vmatprep.mubr.msk.bf16.mxu0 %vm466_vm0, %v5298_v58 }
 0x820   : > { %v6319_v60 = vpop.permute.xlu1 %6318 }
 0x821   : > { %v6321_v22 = vunpack.i.h.bf16 %v6319_v60  ;;  %v6320_v55 = vunpack.i.l.bf16 %v6319_v60 }
 0x823   : > { %v5293_v10 = vsel %vm1446_vm2, %v5229_v14, %v6321_v22  ;;  %v5292_v1 = vsel %vm1446_vm2, %v5228_v38, %v6320_v55  ;;  %v5233_v38 = vcombine.low %v7846_v35, %v7872_v51  ;;  %v8432_v55 = vld [vmem:[#allocation4_spill] sm:$0xff] }
 0x824   : > { %v5299_v28 = vpack.c.bf16 %v5293_v10, %v5292_v1 }
 0x826   : > { %6270 = vmatmul.mubr.msk.bf16.vlgmr.msra.gmra.mxu0 %vm466_vm0, %v5299_v28 }
 0x830   : > { %v6324_v18 = vpop.permute.xlu0 %6323 }
 0x831   : > { %v6326_v40 = vunpack.i.h.bf16 %v6324_v18  ;;  %v6325_v41 = vunpack.i.l.bf16 %v6324_v18 }
 0x833   : > { %v5295_v16 = vsel %vm1446_vm2, %v5231_v2, %v6326_v40  ;;  %v5294_v36 = vsel %vm1446_vm2, %v5230_v52, %v6325_v41  ;;  %v8204_v52 = vld [vmem:[%s403_s29] ss:$0 sm:$0xff]  ;;  %v8433_v41 = vld [vmem:[#allocation5_spill] sm:$0xff] }
 0x834   : > { %v5300_v49 = vpack.c.bf16 %v5295_v16, %v5294_v36 }
 0x836   : > { %6273 = vmatprep.mubr.msk.bf16.mxu0 %vm466_vm0, %v5300_v49  ;;  %v8434_v49 = vld [vmem:[#allocation2_spill] sm:$0xff] }
 0x874   : > { %v6329_v42 = vpop.permute.xlu1 %6328 }
 0x875   : > { %v6331_v47 = vunpack.i.h.bf16 %v6329_v42  ;;  %v6330_v14 = vunpack.i.l.bf16 %v6329_v42 }
 0x877   : > { %v5297_v33 = vsel %vm1446_vm2, %v5233_v38, %v6331_v47  ;;  %v5296_v61 = vsel %vm1446_vm2, %v8425_v7, %v6330_v14 }
 0x878   : > { %v5301_v44 = vpack.c.bf16 %v5297_v33, %v5296_v61  ;;  %v8435_v33 = vld [vmem:[#allocation3_spill] sm:$0xff] }
 0x87a   : > { %6274 = vmatmul.mubr.msk.bf16.gmra.mxu0 %vm466_vm0, %v5301_v44 }
 0x8e6   : > { %v6271_v2 = vpop.f32.mrf.mxu0 }
 0x8e7   : > { %v5370_v35 = vadd.f32 %v6271_v2, %v5683_v8 }
 0x8e8   : > { %v5361_v25 = vpop.f32.mrf.mxu0 }
 0x8e9   : > { %v5402_v9 = vcombine.high %v5370_v35, %v5370_v35  ;;  %v5426_v51 = vmul.f32 %v8204_v52, %v5370_v35  ;;  %v5362_v45 = vadd.f32 %v5683_v8, %v5361_v25  ;;  %v8436_v35 = vld [vmem:[#allocation8_spill] sm:$0xff] }
 0x8ea   : > { %v6272_v46 = vpop.f32.mrf.mxu0 }
 0x8eb   : > { %v5427_v15 = vmul.f32 %v8204_v52, %v5402_v9  ;;  %v5442_v19 = vadd.f32 %v6484_v48, %v5426_v51  ;;  %v5400_v27 = vcombine.high %v5362_v45, %v5362_v45  ;;  %v5422_v62 = vmul.f32 %v8204_v52, %v5362_v45  ;;  %v8437_v9 = vld [vmem:[#allocation6_spill] sm:$0xff]  ;;  %v8438_v45 = vld [vmem:[#allocation9_spill] sm:$0xff] }
 0x8ec   : > { %v5373_v37 = vadd.f32 %v6272_v46, %v5683_v8  ;;  %v5364_v53 = vpop.f32.mrf.mxu0 }
 0x8ed   : > { %v5443_v4 = vadd.f32 %v6485_v12, %v5427_v15  ;;  %5459 = vst.msk [vmem:[%s8212_s19 + $0x10] sm:$0xf] %vm5454_vm6, %v5442_v19  ;;  %v5423_v43 = vmul.f32 %v8204_v52, %v5400_v27  ;;  %v5438_v3 = vadd.f32 %v5422_v62, %v8426_v29  ;;  %v5365_v5 = vadd.f32 %v5683_v8, %v5364_v53  ;;  %v8439_v15 = vld [vmem:[#allocation7_spill] sm:$0xff] }
 0x8ee   : > { %v5403_v21 = vcombine.high %v5373_v37, %v5373_v37  ;;  %v5428_v32 = vmul.f32 %v8204_v52, %v5373_v37 }
 0x8ef   : > { %5460 = vst.msk [vmem:[%s8212_s19 + $0x14] sm:$0xf] %vm5454_vm6, %v5443_v4  ;;  %v5439_v54 = vadd.f32 %v5423_v43, %v8427_v39  ;;  %5455 = vst.msk [vmem:[%s8212_s19] sm:$0xf] %vm5454_vm6, %v5438_v3  ;;  %v5401_v17 = vcombine.high %v5365_v5, %v5365_v5  ;;  %v5424_v26 = vmul.f32 %v8204_v52, %v5365_v5 }
 0x8f0   : > { %v5429_v0 = vmul.f32 %v8204_v52, %v5403_v21  ;;  %v5444_v31 = vadd.f32 %v5428_v32, %v8428_v11 }
 0x8f1   : > { %5456 = vst.msk [vmem:[%s8212_s19 + $0x4] sm:$0xf] %vm5454_vm6, %v5439_v54  ;;  %v5425_v59 = vmul.f32 %v8204_v52, %v5401_v17  ;;  %v5440_v20 = vadd.f32 %v5424_v26, %v8429_v34 }
 0x8f2   : > { %v5445_v56 = vadd.f32 %v5429_v0, %v8430_v24  ;;  %5461 = vst.msk [vmem:[%s8212_s19 + $0x18] sm:$0xf] %vm5454_vm6, %v5444_v31 }
 0x8f3   : > { %v5441_v23 = vadd.f32 %v5425_v59, %v8431_v57  ;;  %5457 = vst.msk [vmem:[%s8212_s19 + $0x8] sm:$0xf] %vm5454_vm6, %v5440_v20 }
 0x8f4   : > { %5462 = vst.msk [vmem:[%s8212_s19 + $0x1c] sm:$0xf] %vm5454_vm6, %v5445_v56 }
 0x8f5   : > { %5458 = vst.msk [vmem:[%s8212_s19 + $0xc] sm:$0xf] %vm5454_vm6, %v5441_v23 }
 0x93a   : > { %v6275_v13 = vpop.f32.mrf.mxu0 }
 0x93b   : > { %v5386_v50 = vadd.f32 %v6275_v13, %v5683_v8 }
 0x93c   : > { %v5377_v30 = vpop.f32.mrf.mxu0 }
 0x93d   : > { %v5406_v63 = vcombine.high %v5386_v50, %v5386_v50  ;;  %v5434_v6 = vmul.f32 %v8204_v52, %v5386_v50  ;;  %v5378_v58 = vadd.f32 %v5683_v8, %v5377_v30 }
 0x93e   : > { %v6276_v60 = vpop.f32.mrf.mxu0 }
 0x93f   : > { %v5435_v22 = vmul.f32 %v8204_v52, %v5406_v63  ;;  %v5450_v10 = vadd.f32 %v5434_v6, %v8432_v55  ;;  %v5404_v1 = vcombine.high %v5378_v58, %v5378_v58  ;;  %v5430_v28 = vmul.f32 %v8204_v52, %v5378_v58 }
 0x940   : > { %v5389_v18 = vadd.f32 %v6276_v60, %v5683_v8  ;;  %v5380_v40 = vpop.f32.mrf.mxu0 }
 0x941   : > { %v5451_v16 = vadd.f32 %v5435_v22, %v8433_v41  ;;  %5467 = vst.msk [vmem:[%s8212_s19 + $0x30] sm:$0xf] %vm5454_vm6, %v5450_v10  ;;  %v5431_v36 = vmul.f32 %v8204_v52, %v5404_v1  ;;  %v5446_v42 = vadd.f32 %v5430_v28, %v8434_v49  ;;  %v5381_v38 = vadd.f32 %v5683_v8, %v5380_v40 }
 0x942   : > { %v5407_v47 = vcombine.high %v5389_v18, %v5389_v18  ;;  %v5436_v14 = vmul.f32 %v8204_v52, %v5389_v18 }
 0x943   : > { %5468 = vst.msk [vmem:[%s8212_s19 + $0x34] sm:$0xf] %vm5454_vm6, %v5451_v16  ;;  %v5447_v7 = vadd.f32 %v5431_v36, %v8435_v33  ;;  %5463 = vst.msk [vmem:[%s8212_s19 + $0x20] sm:$0xf] %vm5454_vm6, %v5446_v42  ;;  %v5405_v61 = vcombine.high %v5381_v38, %v5381_v38  ;;  %v5432_v44 = vmul.f32 %v8204_v52, %v5381_v38 }
 0x944   : > { %v5437_v2 = vmul.f32 %v8204_v52, %v5407_v47  ;;  %v5452_v25 = vadd.f32 %v5436_v14, %v8436_v35 }
 0x945   : > { %5464 = vst.msk [vmem:[%s8212_s19 + $0x24] sm:$0xf] %vm5454_vm6, %v5447_v7  ;;  %v5433_v8 = vmul.f32 %v8204_v52, %v5405_v61  ;;  %v5448_v51 = vadd.f32 %v5432_v44, %v8437_v9 }
 0x946   : > { %v5453_v46 = vadd.f32 %v5437_v2, %v8438_v45  ;;  %5469 = vst.msk [vmem:[%s8212_s19 + $0x38] sm:$0xf] %vm5454_vm6, %v5452_v25 }
 0x947   : > { %v5449_v48 = vadd.f32 %v5433_v8, %v8439_v15  ;;  %5465 = vst.msk [vmem:[%s8212_s19 + $0x28] sm:$0xf] %vm5454_vm6, %v5448_v51 }
 0x948   : > { %5470 = vst.msk [vmem:[%s8212_s19 + $0x3c] sm:$0xf] %vm5454_vm6, %v5453_v46 }
 0x949   : > { %5466 = vst.msk [vmem:[%s8212_s19 + $0x2c] sm:$0xf] %vm5454_vm6, %v5449_v48 }
 0x94a PF: > { %s19_s11 = sadd.s32 1, %s6508_s11   ;;  %s8440_s30 = smov %s6504_s10 }
 0x94b   : > { %p16_p5 = scmp.ge.s32.totalorder %s19_s11, 4   ;;  %s8441_s10 = smov %s8443_s12 }
 0x94d   :  { %18 = sbr.rel (!%p16_p5) target bundleno = 2 (0x2), region = 95 }

</bundles_post_ra>
